<compile_context>
chip_gen: v6e
topology: v6e:2x2x1
jax: 0.10.0
libtpu: 0.0.40
codegen_flags: <defaults>
</compile_context>

<pallas_src>
import functools

import jax
import jax.numpy as jnp
from jax import lax
from jax.experimental import pallas as pl
from jax.experimental.pallas import tpu as pltpu


def _round_up(x, m):
    return ((x + m - 1) // m) * m


def _vmem_limit_bytes():
    """Generation-aware VMEM limit: ~3/4 of physical (96 MiB on v5e/v6e,
    48 MiB on v7x), capped at 100 MiB."""
    cap = 64 * 1024 * 1024
    try:
        info = pltpu.get_tpu_info()
        cap = int(getattr(info, "vmem_capacity_bytes", cap) or cap)
    except Exception:
        pass
    return int(min(cap * 3 // 4, 100 * 1024 * 1024))


def _resblock_kernel(xf_ref, w3_ref, b3_ref, w1_ref, b1_ref, o_ref, *, Wp):
    # xf_ref : (1, Lin, Cp) f32   flattened zero-padded images of this batch block
    # w3_ref : (9, Cp, Cp)  bf16  folded 3x3 weights (BN1 absorbed), tap k = dy*3+dx
    # b3_ref : (1, Cp)      f32   folded bias/shift for conv3+BN1
    # w1_ref : (Cp, Cp)     bf16  folded 1x1 weights (BN2 absorbed)
    # b1_ref : (1, Cp)      f32   folded bias/shift for conv1+BN2
    # o_ref  : (1, M, Cp)   f32   flattened output rows (junk halo rows/cols
    #                             included; discarded in the wrapper)
    M, Cp = o_ref.shape[1], o_ref.shape[2]

    xf = xf_ref[0]                                        # (Lin, Cp) f32
    # ReLU commutes with zero padding (ReLU(0) == 0); cast to bf16 ONCE.
    r_bf = jnp.maximum(xf, 0.0).astype(jnp.bfloat16)      # (Lin, Cp) bf16

    # Conv3x3 (+bias, +BN1 folded) as 9 accumulating MXU matmuls.  Output flat
    # row i corresponds to padded position (i // Wp, i % Wp); tap (dy, dx)
    # reads flat row i + dy*Wp + dx — a contiguous leading-dim slice, so no
    # im2col slab and no concatenate.
    acc = jnp.zeros((M, Cp), jnp.float32)
    for dy in range(3):
        for dx in range(3):
            off = dy * Wp + dx
            tap = r_bf[off:off + M]                       # (M, Cp) bf16
            acc = acc + jnp.dot(tap, w3_ref[dy * 3 + dx],
                                preferred_element_type=jnp.float32)

    # Bias/BN1 + ReLU in f32 (VPU), then Conv1x1 (+bias, +BN2 folded).
    y = jnp.maximum(acc + b3_ref[...], 0.0)               # (M, Cp) f32
    z = jnp.dot(y.astype(jnp.bfloat16), w1_ref[...],
                preferred_element_type=jnp.float32)
    z = z + b1_ref[...]                                   # (M, Cp) f32

    # Residual add with the pre-ReLU input: the unpadded pixel matching output
    # flat row i sits at flat row i + Wp + 1 of the padded buffer.
    x_center = xf[Wp + 1:Wp + 1 + M]                      # (M, Cp) f32
    o_ref[0] = x_center + z


def _fold_and_pack(params, C, Cp):
    """Fold BN (inference) + conv bias into the conv weights, pad channels to
    lane-dense Cp, reshape the 3x3 weight to (9, Cp, Cp), cast weights to bf16."""
    w3, b3, s1, t1, w1, b1, s2, t2 = params
    # conv + bias b, then y*s + t  ==  conv(w*s) + (s*b + t)
    w3f = w3 * s1[None, None, None, :]
    b3f = s1 * b3 + t1
    w1f = w1 * s2[None, :]
    b1f = s2 * b1 + t2

    pc = Cp - C
    w3p = jnp.pad(w3f, ((0, 0), (0, 0), (0, pc), (0, pc)))
    w1p = jnp.pad(w1f, ((0, pc), (0, pc)))
    b3p = jnp.pad(b3f, ((0, pc),)).reshape(1, Cp).astype(jnp.float32)
    b1p = jnp.pad(b1f, ((0, pc),)).reshape(1, Cp).astype(jnp.float32)

    # (ky, kx, Cin, Cout) -> (9, Cp, Cp); tap index k = ky*3 + kx matches the
    # (dy, dx) loop order inside the kernel.
    w3_3d = w3p.reshape(9, Cp, Cp).astype(jnp.bfloat16)
    w1_2d = w1p.astype(jnp.bfloat16)
    return w3_3d, b3p, w1_2d, b1p


def resblock_pallas(x_nchw, params):
    """x_nchw: (N, C, H, W) float32. Returns (N, C, H, W) float32."""
    N, C, H, W = x_nchw.shape
    Cp = _round_up(max(C, 1), 128)                   # lane-dense channel count
    Hp, Wp = H + 2, W + 2                            # +1 halo on each side
    m_elem = Hp * Wp                                 # flattened rows per image

    # Batch block size: target ~1024 matmul rows per grid step, but keep >=2
    # grid steps when N >= 2 (v7x has two TensorCores).
    tN = max(1, min(N, 1024 // m_elem if m_elem <= 1024 else 1))
    if N >= 2 and -(-N // tN) < 2:
        tN = -(-N // 2)
    NB = -(-N // tN)
    Np = NB * tN

    M = tN * m_elem                                  # real output rows / step
    Mp = _round_up(M, 16)                            # sublane-aligned matmul M
    Lin = _round_up(Mp + 2 * Wp + 2, 16)             # input rows / step (taps stay in-bounds)

    w3_3d, b3p, w1_2d, b1p = _fold_and_pack(params, C, Cp)

    # NCHW -> NHWC, pad batch / spatial halo / channels, flatten each batch
    # block's images into one lane-dense (rows, Cp) slab.  Single XLA pass.
    x_nhwc = jnp.transpose(x_nchw, (0, 2, 3, 1)).astype(jnp.float32)
    xp = jnp.pad(x_nhwc, ((0, Np - N), (1, 1), (1, 1), (0, Cp - C)))
    xflat = xp.reshape(NB, M, Cp)
    xflat = jnp.pad(xflat, ((0, 0), (0, Lin - M), (0, 0)))

    kernel = functools.partial(_resblock_kernel, Wp=Wp)
    out2d = pl.pallas_call(
        kernel,
        out_shape=jax.ShapeDtypeStruct((NB, Mp, Cp), jnp.float32),
        grid_spec=pltpu.PrefetchScalarGridSpec(
            num_scalar_prefetch=0,
            grid=(NB,),
            in_specs=[
                pl.BlockSpec((1, Lin, Cp), lambda n: (n, 0, 0)),
                # Constant index_maps -> weights/biases stay resident in VMEM.
                pl.BlockSpec((9, Cp, Cp), lambda n: (0, 0, 0)),
                pl.BlockSpec((1, Cp), lambda n: (0, 0)),
                pl.BlockSpec((Cp, Cp), lambda n: (0, 0)),
                pl.BlockSpec((1, Cp), lambda n: (0, 0)),
            ],
            out_specs=pl.BlockSpec((1, Mp, Cp), lambda n: (n, 0, 0)),
        ),
        compiler_params=pltpu.CompilerParams(
            dimension_semantics=("parallel",),
            vmem_limit_bytes=_vmem_limit_bytes()),
    )(xflat, w3_3d, b3p, w1_2d, b1p)

    out = out2d[:, :M, :].reshape(Np, Hp, Wp, Cp)[:N, :H, :W, :C]
    # TODO(synk): if the surrounding model consumes NHWC, drop this transpose.
    return jnp.transpose(out, (0, 3, 1, 2))


def make_params(key, dim):
    """Deterministic parameter init mirroring the module's __init__."""
    k3, kb3, k1, kb1 = jax.random.split(key, 4)
    eps = 1e-5

    # Conv2d(dim, dim, 3): kaiming_normal_(fan_out, relu) -> std = sqrt(2/(dim*9))
    std3 = (2.0 / (dim * 3 * 3)) ** 0.5
    w3 = jax.random.normal(k3, (3, 3, dim, dim), jnp.float32) * std3  # (kh,kw,Cin,Cout)
    bound3 = 1.0 / (dim * 3 * 3) ** 0.5
    b3 = jax.random.uniform(kb3, (dim,), jnp.float32, -bound3, bound3)

    # Conv2d(dim, dim, 1): std = sqrt(2 / dim)
    std1 = (2.0 / dim) ** 0.5
    w1 = jax.random.normal(k1, (dim, dim), jnp.float32) * std1         # (Cin,Cout)
    bound1 = 1.0 / dim ** 0.5
    b1 = jax.random.uniform(kb1, (dim,), jnp.float32, -bound1, bound1)

    # BN (inference): gamma=1, beta=0, running_mean=0, running_var=1
    gamma = jnp.ones((dim,), jnp.float32)
    beta = jnp.zeros((dim,), jnp.float32)
    mean = jnp.zeros((dim,), jnp.float32)
    var = jnp.ones((dim,), jnp.float32)
    scale = gamma / jnp.sqrt(var + eps)
    shift = beta - mean * scale
    return (w3, b3, scale, shift, w1, b1, scale, shift)


def resblock_reference(x_nchw, params):
    """Pure-JAX reference (lax.conv).  Conv operands are cast to bf16 with f32
    accumulation to mirror the kernel's MXU precision; everything else f32."""
    w3, b3, s1, t1, w1, b1, s2, t2 = params
    r = jnp.maximum(x_nchw, 0.0)
    w3_oihw = jnp.transpose(w3, (3, 2, 0, 1))
    y = lax.conv_general_dilated(
        r.astype(jnp.bfloat16), w3_oihw.astype(jnp.bfloat16),
        (1, 1), ((1, 1), (1, 1)),
        dimension_numbers=("NCHW", "OIHW", "NCHW"),
        preferred_element_type=jnp.float32)
    y = y + b3[None, :, None, None]
    y = y * s1[None, :, None, None] + t1[None, :, None, None]
    y = jnp.maximum(y, 0.0)
    w1_oihw = jnp.transpose(w1, (1, 0))[:, :, None, None]
    z = lax.conv_general_dilated(
        y.astype(jnp.bfloat16), w1_oihw.astype(jnp.bfloat16),
        (1, 1), ((0, 0), (0, 0)),
        dimension_numbers=("NCHW", "OIHW", "NCHW"),
        preferred_element_type=jnp.float32)
    z = z + b1[None, :, None, None]
    z = z * s2[None, :, None, None] + t2[None, :, None, None]
    return x_nchw + z


if __name__ == "__main__":
    key = jax.random.PRNGKey(0)
    kx, kp = jax.random.split(key)

    N, C, H, W = 2, 4, 16, 16
    x = jax.random.normal(kx, (N, C, H, W), jnp.float32)
    params = make_params(kp, C)

    out = jax.block_until_ready(resblock_pallas(x, params))
    ref = resblock_reference(x, params)

    assert out.shape == (N, C, H, W)
    assert out.dtype == jnp.float32
    assert jnp.allclose(out, ref, atol=1e-2, rtol=1e-2), "mismatch vs reference"

    print("KERNEL_OK")
</pallas_src>

<mosaic_0001>
module attributes {stable_mosaic.version = 11 : i64} {
  func.func @_resblock_kernel(%arg0: i32, %arg1: memref<1x384x128xf32, #tpu.memory_space<vmem>>, %arg2: memref<9x128x128xbf16, #tpu.memory_space<vmem>>, %arg3: memref<1x128xf32, #tpu.memory_space<vmem>>, %arg4: memref<128x128xbf16, #tpu.memory_space<vmem>>, %arg5: memref<1x128xf32, #tpu.memory_space<vmem>>, %arg6: memref<1x336x128xf32, #tpu.memory_space<vmem>>) attributes {dimension_semantics = [#tpu.dimension_semantics<parallel>], iteration_bounds = array<i64: 2>, scalar_prefetch = 0 : i64, scratch_operands = 0 : i64, tpu.core_type = #tpu.core_type<tc>, window_params = [{transform_indices = @transform_0, window_bounds = array<i64: 1, 384, 128>}, {pipeline_mode = #tpu.pipeline_mode<synchronous>, transform_indices = @transform_1, window_bounds = array<i64: 9, 128, 128>}, {pipeline_mode = #tpu.pipeline_mode<synchronous>, transform_indices = @transform_2, window_bounds = array<i64: 1, 128>}, {pipeline_mode = #tpu.pipeline_mode<synchronous>, transform_indices = @transform_3, window_bounds = array<i64: 128, 128>}, {pipeline_mode = #tpu.pipeline_mode<synchronous>, transform_indices = @transform_4, window_bounds = array<i64: 1, 128>}, {transform_indices = @transform_5, window_bounds = array<i64: 1, 336, 128>}]} {
    %c0 = arith.constant 0 : index
    %c0_0 = arith.constant 0 : index
    %c0_1 = arith.constant 0 : index
    %0 = vector.load %arg1[%c0, %c0_0, %c0_1] : memref<1x384x128xf32, #tpu.memory_space<vmem>>, vector<1x384x128xf32>
    %1 = vector.shape_cast %0 : vector<1x384x128xf32> to vector<384x128xf32>
    %cst = arith.constant 0.000000e+00 : f32
    %2 = vector.broadcast %cst : f32 to vector<384x128xf32>
    %3 = arith.maximumf %1, %2 : vector<384x128xf32>
    %4 = arith.truncf %3 : vector<384x128xf32> to vector<384x128xbf16>
    %cst_2 = arith.constant 0.000000e+00 : f32
    %5 = vector.broadcast %cst_2 : f32 to vector<336x128xf32>
    %6 = vector.extract_strided_slice %4 {offsets = [0, 0], sizes = [336, 128], strides = [1, 1]} : vector<384x128xbf16> to vector<336x128xbf16>
    %c0_3 = arith.constant 0 : index
    %c0_4 = arith.constant 0 : index
    %c0_5 = arith.constant 0 : index
    %7 = vector.load %arg2[%c0_3, %c0_4, %c0_5] : memref<9x128x128xbf16, #tpu.memory_space<vmem>>, vector<1x128x128xbf16>
    %8 = vector.shape_cast %7 : vector<1x128x128xbf16> to vector<128x128xbf16>
    %cst_6 = arith.constant dense<0.000000e+00> : vector<336x128xf32>
    %9 = tpu.matmul %6, %8, %cst_6 {dimension_numbers = #tpu.dot_dimension_numbers<[1], [0], [0], [1], [0, 0, 1, 1], [], []>} : vector<336x128xbf16>, vector<128x128xbf16>, vector<336x128xf32> -> vector<336x128xf32>
    %10 = arith.addf %5, %9 : vector<336x128xf32>
    %11 = vector.extract_strided_slice %4 {offsets = [1, 0], sizes = [336, 128], strides = [1, 1]} : vector<384x128xbf16> to vector<336x128xbf16>
    %c1 = arith.constant 1 : index
    %c0_7 = arith.constant 0 : index
    %c0_8 = arith.constant 0 : index
    %12 = vector.load %arg2[%c1, %c0_7, %c0_8] : memref<9x128x128xbf16, #tpu.memory_space<vmem>>, vector<1x128x128xbf16>
    %13 = vector.shape_cast %12 : vector<1x128x128xbf16> to vector<128x128xbf16>
    %cst_9 = arith.constant dense<0.000000e+00> : vector<336x128xf32>
    %14 = tpu.matmul %11, %13, %cst_9 {dimension_numbers = #tpu.dot_dimension_numbers<[1], [0], [0], [1], [0, 0, 1, 1], [], []>} : vector<336x128xbf16>, vector<128x128xbf16>, vector<336x128xf32> -> vector<336x128xf32>
    %15 = arith.addf %10, %14 : vector<336x128xf32>
    %16 = vector.extract_strided_slice %4 {offsets = [2, 0], sizes = [336, 128], strides = [1, 1]} : vector<384x128xbf16> to vector<336x128xbf16>
    %c2 = arith.constant 2 : index
    %c0_10 = arith.constant 0 : index
    %c0_11 = arith.constant 0 : index
    %17 = vector.load %arg2[%c2, %c0_10, %c0_11] : memref<9x128x128xbf16, #tpu.memory_space<vmem>>, vector<1x128x128xbf16>
    %18 = vector.shape_cast %17 : vector<1x128x128xbf16> to vector<128x128xbf16>
    %cst_12 = arith.constant dense<0.000000e+00> : vector<336x128xf32>
    %19 = tpu.matmul %16, %18, %cst_12 {dimension_numbers = #tpu.dot_dimension_numbers<[1], [0], [0], [1], [0, 0, 1, 1], [], []>} : vector<336x128xbf16>, vector<128x128xbf16>, vector<336x128xf32> -> vector<336x128xf32>
    %20 = arith.addf %15, %19 : vector<336x128xf32>
    %21 = vector.extract_strided_slice %4 {offsets = [18, 0], sizes = [336, 128], strides = [1, 1]} : vector<384x128xbf16> to vector<336x128xbf16>
    %c3 = arith.constant 3 : index
    %c0_13 = arith.constant 0 : index
    %c0_14 = arith.constant 0 : index
    %22 = vector.load %arg2[%c3, %c0_13, %c0_14] : memref<9x128x128xbf16, #tpu.memory_space<vmem>>, vector<1x128x128xbf16>
    %23 = vector.shape_cast %22 : vector<1x128x128xbf16> to vector<128x128xbf16>
    %cst_15 = arith.constant dense<0.000000e+00> : vector<336x128xf32>
    %24 = tpu.matmul %21, %23, %cst_15 {dimension_numbers = #tpu.dot_dimension_numbers<[1], [0], [0], [1], [0, 0, 1, 1], [], []>} : vector<336x128xbf16>, vector<128x128xbf16>, vector<336x128xf32> -> vector<336x128xf32>
    %25 = arith.addf %20, %24 : vector<336x128xf32>
    %26 = vector.extract_strided_slice %4 {offsets = [19, 0], sizes = [336, 128], strides = [1, 1]} : vector<384x128xbf16> to vector<336x128xbf16>
    %c4 = arith.constant 4 : index
    %c0_16 = arith.constant 0 : index
    %c0_17 = arith.constant 0 : index
    %27 = vector.load %arg2[%c4, %c0_16, %c0_17] : memref<9x128x128xbf16, #tpu.memory_space<vmem>>, vector<1x128x128xbf16>
    %28 = vector.shape_cast %27 : vector<1x128x128xbf16> to vector<128x128xbf16>
    %cst_18 = arith.constant dense<0.000000e+00> : vector<336x128xf32>
    %29 = tpu.matmul %26, %28, %cst_18 {dimension_numbers = #tpu.dot_dimension_numbers<[1], [0], [0], [1], [0, 0, 1, 1], [], []>} : vector<336x128xbf16>, vector<128x128xbf16>, vector<336x128xf32> -> vector<336x128xf32>
    %30 = arith.addf %25, %29 : vector<336x128xf32>
    %31 = vector.extract_strided_slice %4 {offsets = [20, 0], sizes = [336, 128], strides = [1, 1]} : vector<384x128xbf16> to vector<336x128xbf16>
    %c5 = arith.constant 5 : index
    %c0_19 = arith.constant 0 : index
    %c0_20 = arith.constant 0 : index
    %32 = vector.load %arg2[%c5, %c0_19, %c0_20] : memref<9x128x128xbf16, #tpu.memory_space<vmem>>, vector<1x128x128xbf16>
    %33 = vector.shape_cast %32 : vector<1x128x128xbf16> to vector<128x128xbf16>
    %cst_21 = arith.constant dense<0.000000e+00> : vector<336x128xf32>
    %34 = tpu.matmul %31, %33, %cst_21 {dimension_numbers = #tpu.dot_dimension_numbers<[1], [0], [0], [1], [0, 0, 1, 1], [], []>} : vector<336x128xbf16>, vector<128x128xbf16>, vector<336x128xf32> -> vector<336x128xf32>
    %35 = arith.addf %30, %34 : vector<336x128xf32>
    %36 = vector.extract_strided_slice %4 {offsets = [36, 0], sizes = [336, 128], strides = [1, 1]} : vector<384x128xbf16> to vector<336x128xbf16>
    %c6 = arith.constant 6 : index
    %c0_22 = arith.constant 0 : index
    %c0_23 = arith.constant 0 : index
    %37 = vector.load %arg2[%c6, %c0_22, %c0_23] : memref<9x128x128xbf16, #tpu.memory_space<vmem>>, vector<1x128x128xbf16>
    %38 = vector.shape_cast %37 : vector<1x128x128xbf16> to vector<128x128xbf16>
    %cst_24 = arith.constant dense<0.000000e+00> : vector<336x128xf32>
    %39 = tpu.matmul %36, %38, %cst_24 {dimension_numbers = #tpu.dot_dimension_numbers<[1], [0], [0], [1], [0, 0, 1, 1], [], []>} : vector<336x128xbf16>, vector<128x128xbf16>, vector<336x128xf32> -> vector<336x128xf32>
    %40 = arith.addf %35, %39 : vector<336x128xf32>
    %41 = vector.extract_strided_slice %4 {offsets = [37, 0], sizes = [336, 128], strides = [1, 1]} : vector<384x128xbf16> to vector<336x128xbf16>
    %c7 = arith.constant 7 : index
    %c0_25 = arith.constant 0 : index
    %c0_26 = arith.constant 0 : index
    %42 = vector.load %arg2[%c7, %c0_25, %c0_26] : memref<9x128x128xbf16, #tpu.memory_space<vmem>>, vector<1x128x128xbf16>
    %43 = vector.shape_cast %42 : vector<1x128x128xbf16> to vector<128x128xbf16>
    %cst_27 = arith.constant dense<0.000000e+00> : vector<336x128xf32>
    %44 = tpu.matmul %41, %43, %cst_27 {dimension_numbers = #tpu.dot_dimension_numbers<[1], [0], [0], [1], [0, 0, 1, 1], [], []>} : vector<336x128xbf16>, vector<128x128xbf16>, vector<336x128xf32> -> vector<336x128xf32>
    %45 = arith.addf %40, %44 : vector<336x128xf32>
    %46 = vector.extract_strided_slice %4 {offsets = [38, 0], sizes = [336, 128], strides = [1, 1]} : vector<384x128xbf16> to vector<336x128xbf16>
    %c8 = arith.constant 8 : index
    %c0_28 = arith.constant 0 : index
    %c0_29 = arith.constant 0 : index
    %47 = vector.load %arg2[%c8, %c0_28, %c0_29] : memref<9x128x128xbf16, #tpu.memory_space<vmem>>, vector<1x128x128xbf16>
    %48 = vector.shape_cast %47 : vector<1x128x128xbf16> to vector<128x128xbf16>
    %cst_30 = arith.constant dense<0.000000e+00> : vector<336x128xf32>
    %49 = tpu.matmul %46, %48, %cst_30 {dimension_numbers = #tpu.dot_dimension_numbers<[1], [0], [0], [1], [0, 0, 1, 1], [], []>} : vector<336x128xbf16>, vector<128x128xbf16>, vector<336x128xf32> -> vector<336x128xf32>
    %50 = arith.addf %45, %49 : vector<336x128xf32>
    %c0_31 = arith.constant 0 : index
    %c0_32 = arith.constant 0 : index
    %51 = vector.load %arg3[%c0_31, %c0_32] : memref<1x128xf32, #tpu.memory_space<vmem>>, vector<1x128xf32>
    %52 = vector.broadcast %51 : vector<1x128xf32> to vector<336x128xf32>
    %53 = arith.addf %50, %52 : vector<336x128xf32>
    %cst_33 = arith.constant 0.000000e+00 : f32
    %54 = vector.broadcast %cst_33 : f32 to vector<336x128xf32>
    %55 = arith.maximumf %53, %54 : vector<336x128xf32>
    %56 = arith.truncf %55 : vector<336x128xf32> to vector<336x128xbf16>
    %c0_34 = arith.constant 0 : index
    %c0_35 = arith.constant 0 : index
    %57 = vector.load %arg4[%c0_34, %c0_35] : memref<128x128xbf16, #tpu.memory_space<vmem>>, vector<128x128xbf16>
    %cst_36 = arith.constant dense<0.000000e+00> : vector<336x128xf32>
    %58 = tpu.matmul %56, %57, %cst_36 {dimension_numbers = #tpu.dot_dimension_numbers<[1], [0], [0], [1], [0, 0, 1, 1], [], []>} : vector<336x128xbf16>, vector<128x128xbf16>, vector<336x128xf32> -> vector<336x128xf32>
    %c0_37 = arith.constant 0 : index
    %c0_38 = arith.constant 0 : index
    %59 = vector.load %arg5[%c0_37, %c0_38] : memref<1x128xf32, #tpu.memory_space<vmem>>, vector<1x128xf32>
    %60 = vector.broadcast %59 : vector<1x128xf32> to vector<336x128xf32>
    %61 = arith.addf %58, %60 : vector<336x128xf32>
    %62 = vector.extract_strided_slice %1 {offsets = [19, 0], sizes = [336, 128], strides = [1, 1]} : vector<384x128xf32> to vector<336x128xf32>
    %63 = arith.addf %62, %61 : vector<336x128xf32>
    %c0_39 = arith.constant 0 : index
    %c0_40 = arith.constant 0 : index
    %c0_41 = arith.constant 0 : index
    %64 = vector.load %arg6[%c0_39, %c0_40, %c0_41] : memref<1x336x128xf32, #tpu.memory_space<vmem>>, vector<1x336x128xf32>
    %65 = vector.shape_cast %64 : vector<1x336x128xf32> to vector<336x128xf32>
    %66 = vector.shape_cast %63 : vector<336x128xf32> to vector<1x336x128xf32>
    tpu.vector_store %arg6[%c0_39, %c0_40, %c0_41], %66 {strides = array<i32>} : memref<1x336x128xf32, #tpu.memory_space<vmem>>, vector<1x336x128xf32>,
    return
  }
  func.func @transform_0(%arg0: i32) -> (i32, i32, i32) {
    %c0_i32 = arith.constant 0 : i32
    %c0_i32_0 = arith.constant 0 : i32
    %c0_i32_1 = arith.constant 0 : i32
    return %arg0, %c0_i32, %c0_i32_0 : i32, i32, i32
  }
  func.func @transform_1(%arg0: i32) -> (i32, i32, i32) {
    %c0_i32 = arith.constant 0 : i32
    %c0_i32_0 = arith.constant 0 : i32
    %c0_i32_1 = arith.constant 0 : i32
    %c0_i32_2 = arith.constant 0 : i32
    return %c0_i32, %c0_i32_0, %c0_i32_1 : i32, i32, i32
  }
  func.func @transform_2(%arg0: i32) -> (i32, i32) {
    %c0_i32 = arith.constant 0 : i32
    %c0_i32_0 = arith.constant 0 : i32
    %c0_i32_1 = arith.constant 0 : i32
    return %c0_i32, %c0_i32_0 : i32, i32
  }
  func.func @transform_3(%arg0: i32) -> (i32, i32) {
    %c0_i32 = arith.constant 0 : i32
    %c0_i32_0 = arith.constant 0 : i32
    %c0_i32_1 = arith.constant 0 : i32
    return %c0_i32, %c0_i32_0 : i32, i32
  }
  func.func @transform_4(%arg0: i32) -> (i32, i32) {
    %c0_i32 = arith.constant 0 : i32
    %c0_i32_0 = arith.constant 0 : i32
    %c0_i32_1 = arith.constant 0 : i32
    return %c0_i32, %c0_i32_0 : i32, i32
  }
  func.func @transform_5(%arg0: i32) -> (i32, i32, i32) {
    %c0_i32 = arith.constant 0 : i32
    %c0_i32_0 = arith.constant 0 : i32
    %c0_i32_1 = arith.constant 0 : i32
    return %arg0, %c0_i32, %c0_i32_0 : i32, i32, i32
  }
}

</mosaic_0001>

<bundles_post_ra>
// kernel: tpu_custom_call.1
= control target key start
LH: loop header
LB: loop body
LE: loop exit
PB: predicated region body
PF: predicated region fallthrough
CT: control target
= control target key end

     0   :  { %10 = vsyncpa [#allocation3], 0  ;;  %s8333_s0 = inlined_call_operand.hbm [shape: f32[2,384,128], index: 0, kind: input, shape index: {}]   ;;  %s8334_s1 = inlined_call_operand.hbm [shape: bf16[9,128,128], index: 1, kind: input, shape index: {}]   ;;  %s8335_s2 = inlined_call_operand.vmem [shape: f32[1,128], index: 2, kind: input, shape index: {}]   ;;  %s8336_s3 = inlined_call_operand.hbm [shape: bf16[128,128], index: 3, kind: input, shape index: {}]   ;;  %s8337_s4 = inlined_call_operand.vmem [shape: f32[1,128], index: 4, kind: input, shape index: {}]   ;;  %s8338_s5 = inlined_call_operand.hbm [shape: f32[2,336,128], index: 5, kind: output, shape index: {}]  }
   0x1   :  { %12 = vsyncpa [#allocation3 + $0x1], 0 }
   0x2   :  { %13 = vsyncpa [#allocation6], 0 }
   0x3   :  { %14 = vsyncpa [#allocation4], 0 }
   0x4   :  { %16 = vsyncpa [#allocation4 + $0x1], 0  ;;  %s6253_s18 = smov 0   ;;  %s6255_s19 = smov 0  }
   0x5   :  { %s6257_s20 = smov 0   ;;  %s6259_s21 = smov 0  }
   0x6 LB: > { %s6274_s22 = sadd.s32 4294967295, %s6209_s21   ;;  %s4474_s23 = sadd.s32 4294967294, %s6209_s21   ;;  %s6209_s21 = sphi %s6259_s21, %s8691_s21   ;;  %s6205_s20 = sphi %s6257_s20, %s8690_s20   ;;  %s6201_s19 = sphi %s6255_s19, %s8689_s19   ;;  %s6197_s18 = sphi %s6253_s18, %s8688_s18  }
   0x7   : > { %p42_p0 = scmp.ne.s32.totalorder %s6201_s19, %s6197_s18  ;;  %p8339_p1 = scmp.eq.s32.totalorder %s6274_s22, 0 }
   0x8   : > { %p156_p3 = scmp.eq.s32.totalorder %s4474_s23, 1  ;;  %p4475_p5 = scmp.ge.s32.totalorder %s6209_s21, 1 }
   0x9   : > { %p6283_p4 = por %p8339_p1, %p42_p0  ;;  %p163_p7 = scmp.lt.s32.totalorder %s6209_s21, 3 }
   0xa   : > { %p6288_p6 = por %p156_p3, %p42_p0  ;;  %s6211_s27 = smov [#allocation5]  }
   0xb   : > { %s8438_s24 = scalar_select %p6283_p4, 1, 0 }
   0xc   : > { %s8439_s25 = scalar_select %p6288_p6, 1, 0 }
   0xd   : > { %p6293_p8 = pnand %p4475_p5, %p163_p7  ;;  %s175_s28 = sshll.u32 %s6211_s27, 4  ;;  %s176_s28 = int_to_ptr.vmem [resolvable:$true] %s175_s28 }
   0xe   : > { %s6212_s30 = smov [#allocation7]   ;;  %s6072_s7 = scalar_lea.vmem %s176_s28, 9216 }
   0xf   : > { %s8440_s26 = scalar_select %p6293_p8, 1, 0 }
  0x10   : > { %p5875_p9 = pneg %p6293_p8  ;;  %s191_s6 = sshll.u32 %s6212_s30, 4  ;;  %s192_s6 = int_to_ptr.vmem [resolvable:$true] %s191_s6 }
  0x11   : > { %p6073_p13 = scmp.ne.s32.totalorder %s176_s28, %s6072_s7  ;;  %p6080_p5 = scmp.lt.s32.totalorder %s176_s28, %s176_s28 }
  0x12   : > { %p6302_p11 = pnand %p5875_p9, %p8339_p1  ;;  %p6081_p7 = scmp.lt.s32.totalorder %s6072_s7, %s6072_s7 }
  0x14   : > { %p6063_p12 = pneg %p6302_p11  ;;  %p6082_p10 = por %p6081_p7, %p6080_p5 }
  0x16   : > { %p6075_p0 = pnand %p6073_p13, %p6063_p12 }
  0x18   : > { %p6076_p3 = pneg %p6075_p0 }
  0x1a   : > { %p6083_p9 = pnand %p6082_p10, %p6076_p3 }
  0x1c   : > { %6086 = shalt.err (!%p6083_p9)
}
  0x1d   : > { %s6213_s8 = smov 64   ;;  %s6214_s9 = smov 4  }
  0x1e   : > { %5878 = dma.hbm_to_vmem [thread:$0]  (!%p6302_p11), %s8334_s1, 9216, %s176_s28, [#allocation6], %s6213_s8, %s6213_s8, %s6214_s9  }
  0x1f   : > { %s6098_s12 = scalar_lea.vmem %s192_s6, 1024  ;;  %p6106_p2 = scmp.lt.s32.totalorder %s192_s6, %s192_s6 }
  0x20   : > { %p6099_p1 = scmp.ne.s32.totalorder %s192_s6, %s6098_s12  ;;  %p6107_p6 = scmp.lt.s32.totalorder %s6098_s12, %s6098_s12 }
  0x22   : > { %p6101_p13 = pnand %p6099_p1, %p6063_p12  ;;  %p6108_p5 = por %p6107_p6, %p6106_p2 }
  0x24   : > { %p6102_p0 = pneg %p6101_p13 }
  0x26   : > { %p6109_p10 = pnand %p6108_p5, %p6102_p0 }
  0x28   : > { %6112 = shalt.err (!%p6109_p10)
}
  0x29   : > { %5881 = dma.hbm_to_vmem [thread:$0]  (!%p6302_p11), %s8336_s3, 1024, %s192_s6, [#allocation6], %s6213_s8, %s6213_s8, %s6214_s9  }
  0x2a   : > { %s6325_s15 = sadd.s32 1, %s6209_s21   ;;  %s29_s16 = sadd.s32 1, %s6205_s20 }
  0x2b   : > { %s26_s17 = ssub.s32 %s6209_s21, %s6325_s15  ;;  %p36_p1 = scmp.ne.s32.totalorder %s6205_s20, %s6201_s19 }
  0x2c   : > { %p27_p2 = scmp.eq.s32.totalorder %s26_s17, 0  ;;  %p37_p6 = scmp.eq.s32.totalorder %s6209_s21, 0 }
  0x2d   : > { %p8442_p12 = scmp.eq.s32.totalorder %s6274_s22, 1  ;;  %p5892_p7 = scmp.lt.s32.totalorder %s6209_s21, 2 }
  0x2e   : > { %s6341_s27 = scalar_select %p27_p2, %s6205_s20, %s29_s16  }
  0x2f   : > { %p6335_p3 = por %p8442_p12, %p36_p1  ;;  %p38_p9 = por %p37_p6, %p36_p1 }
  0x30   : > { %s208_s28 = sand.u32 1, %s6205_s20   ;;  %s5859_s30 = smul.u32 6144, %s6209_s21 }
  0x31   : > { %s8443_s23 = scalar_select %p6335_p3, 1, 0 }
  0x32   : > { %s5858_s29 = smul.u32 384, %s208_s28  ;;  %p6345_p11 = pnand %p5892_p7, %p38_p9 }
  0x33   : > { %s6352_s9 = scalar_lea.hbm %s8333_s0, %s5859_s30  ;;  %s6356_s12 = scalar_lea.sflag [#allocation3], %s208_s28 }
  0x34   : > { %s212_s10 = scalar_lea.vmem [#allocation2], %s5858_s29  ;;  %s6113_s13 = scalar_lea.hbm %s6352_s9, 6144 }
  0x35   : > { %s219_s11 = sshll.u32 %s212_s10, 4  ;;  %p6114_p13 = scmp.ne.s32.totalorder %s6352_s9, %s6113_s13  ;;  %s6354_s11 = int_to_ptr.vmem [resolvable:$true] %s219_s11 }
  0x36   : > { %p6115_p0 = pneg %p6345_p11  ;;  %s6118_s17 = scalar_lea.hbm %s8333_s0, 12288 }
  0x37   : > { %p6119_p1 = scmp.lt.s32.totalorder %s6352_s9, %s8333_s0  ;;  %p6120_p2 = scmp.lt.s32.totalorder %s6118_s17, %s6113_s13 }
  0x38   : > { %p6116_p5 = pnand %p6115_p0, %p6114_p13 }
  0x39   : > { %p6121_p6 = por %p6120_p2, %p6119_p1 }
  0x3a   : > { %p6117_p10 = pneg %p6116_p5 }
  0x3c   : > { %p6122_p12 = pnand %p6121_p6, %p6117_p10 }
  0x3e   : > { %6125 = shalt.err (!%p6122_p12)
}
  0x3f   : > { %s6126_s28 = scalar_lea.vmem %s6354_s11, 6144  ;;  %s6215_s29 = smov [#allocation2]  }
  0x40   : > { %p6127_p7 = scmp.ne.s32.totalorder %s6354_s11, %s6126_s28  ;;  %s6131_s8 = sshll.u32 %s6215_s29, 4  ;;  %s6132_s8 = int_to_ptr.vmem [resolvable:$false] %s6131_s8 }
  0x41   : > { %s6133_s10 = scalar_lea.vmem %s6132_s8, 12288  ;;  %p6134_p5 = scmp.lt.s32.totalorder %s6354_s11, %s6132_s8 }
  0x42   : > { %p6129_p9 = pnand %p6127_p7, %p6115_p0  ;;  %p6135_p3 = scmp.lt.s32.totalorder %s6133_s10, %s6126_s28 }
  0x44   : > { %p6130_p13 = pneg %p6129_p9  ;;  %p6136_p4 = por %p6135_p3, %p6134_p5 }
  0x46   : > { %p6137_p8 = pnand %p6136_p4, %p6130_p13 }
  0x48   : > { %6140 = shalt.err (!%p6137_p8)
}
  0x49   : > { %s6216_s13 = smov 128   ;;  %s6217_s14 = smov 8  }
  0x4a   : > { %5885 = dma.hbm_to_vmem [thread:$0]  (!%p6345_p11), %s6352_s9, 6144, %s6354_s11, %s6356_s12, %s6216_s13, %s6216_s13, %s6217_s14  }
  0x4b   : > { %p8445_p0 = scmp.ne.s32.totalorder %s8440_s26, 0 }
  0x4d   : > { %231 = sbr.rel (%p8445_p0) target bundleno = 1379 (0x563), region = 40 }
  0x52   : > { %s6380_s16 = sand.u32 1, %s6201_s19   ;;  %p8446_p4 = scmp.ne.s32.totalorder %s8438_s24, 0 }
  0x53   : > { %s5860_s17 = smul.u32 384, %s6380_s16  ;;  %s234_s30 = scalar_lea.sflag [#allocation3], %s6380_s16 }
  0x55   : > { %s6384_s7 = scalar_lea.vmem [#allocation2], %s5860_s17 }
  0x56   : > { %6184 = dma.done.wait (%p8446_p4), %s234_s30, 6144  }
  0x57   : > { %6186 = vsyncadd (%p8446_p4), %s234_s30, 4294961152  ;;  %p8447_p8 = scmp.eq.s32.totalorder %s6274_s22, 0 }
  0x59   : > { %6188 = dma.done.wait (%p8447_p8), [#allocation6], 10240   ;;  %p8448_p3 = pmov %p8447_p8 }
  0x5a   : > { %v8411_v0 = vmov 0.0   ;;  %vm6219_vm0 = vmmov 0   ;;  %v5938_v1 = vld [vmem:[#allocation5 + $0x78] sm:$0xff]   ;;  %v5940_v3 = vld [vmem:[#allocation5 + $0x70] sm:$0xff]   ;;  %v5942_v5 = vld [vmem:[#allocation5 + $0x68] sm:$0xff]   ;;  %vm1157_vm2 = vcmask 1046528  }
  0x5b   : > { %6190 = vsyncadd (%p8448_p3), [#allocation6], 4294957056  ;;  %4858 = vmatprep.subr.bf16.mxu0 %v8411_v0  ;;  %4958 = vmatprep.subr.bf16.mxu1 %v8411_v0  ;;  %v5939_v2 = vld [vmem:[#allocation5 + $0x38] sm:$0xff]   ;;  %v5941_v4 = vld [vmem:[#allocation5 + $0x30] sm:$0xff]   ;;  %vm426_vm1 = vsmask.f32 7424 }
  0x5c   : > { %4874 = vmatprep.mubr.msk.bf16.mxu0 %vm6219_vm0, %v8411_v0  ;;  %4974 = vmatprep.mubr.msk.bf16.mxu1 %vm6219_vm0, %v8411_v0  ;;  %v5943_v6 = vld [vmem:[#allocation5 + $0x28] sm:$0xff]   ;;  %v5944_v7 = vld [vmem:[#allocation5 + $0x60] sm:$0xff]   ;;  %v5946_v9 = vld [vmem:[#allocation5 + $0x58] sm:$0xff]   ;;  %vm1842_vm3 = vsmask.f32 6400  ;;  %vm2266_vm4 = vcmask 1045504  }
  0x5d   : > { %4859 = vmatpush3.bf16.msra.mxu0 %v5938_v1  ;;  %4959 = vmatpush3.bf16.msra.mxu1 %v5939_v2  ;;  %v5945_v8 = vld [vmem:[#allocation5 + $0x20] sm:$0xff]   ;;  %v5947_v10 = vld [vmem:[#allocation5 + $0x18] sm:$0xff]   ;;  %v274_v12 = vld [vmem:[%s6384_s7 + $0x8] sm:$0xff]  ;;  %vm2951_vm5 = vsmask.f32 5376  ;;  %vm3373_vm6 = vcmask 1044480  }
  0x5e   : > { %4860 = vmatprep.subr.bf16.mxu0 %v8411_v0  ;;  %4960 = vmatprep.subr.bf16.mxu1 %v8411_v0  ;;  %v273_v11 = vld [vmem:[%s6384_s7] sm:$0xff]  ;;  %v275_v13 = vld [vmem:[%s6384_s7 + $0x10] sm:$0xff]  ;;  %v276_v14 = vld [vmem:[%s6384_s7 + $0x18] sm:$0xff]  ;;  %v322_v16 = vmax.f32 %v274_v12, 0.0  ;;  %s5861_s11 = smul.u32 336, %s6380_s16  ;;  %vm4155_vm7 = vcmask 1042432  }
  0x5f   : > { %v321_v15 = vmax.f32 %v273_v11, 0.0  ;;  %v323_v17 = vmax.f32 %v275_v13, 0.0  ;;  %v5948_v18 = vld [vmem:[#allocation5 + $0x50] sm:$0xff]   ;;  %v324_v19 = vmax.f32 %v276_v14, 0.0  ;;  %v277_v20 = vld [vmem:[%s6384_s7 + $0x20] sm:$0xff]  ;;  %v278_v23 = vld [vmem:[%s6384_s7 + $0x28] sm:$0xff] }
  0x60   : > { %v5949_v21 = vld [vmem:[#allocation5 + $0x10] sm:$0xff]   ;;  %v325_v26 = vmax.f32 %v277_v20, 0.0  ;;  %v5950_v27 = vld [vmem:[#allocation5 + $0x48] sm:$0xff]   ;;  %v326_v30 = vmax.f32 %v278_v23, 0.0  ;;  %v5952_v36 = vld [vmem:[#allocation5 + $0x40] sm:$0xff]   ;;  %s8115_s12 = scalar_lea.vmem [#allocation8], %s5861_s11 }
  0x61   : > { %4861 = vmatpush3.bf16.msra.mxu0 %v5940_v3  ;;  %4961 = vmatpush3.bf16.msra.mxu1 %v5941_v4  ;;  %v6414_v22 = vpack.c.bf16 %v322_v16, %v321_v15  ;;  %v6418_v24 = vpack.c.bf16 %v324_v19, %v323_v17  ;;  %v5951_v32 = vld [vmem:[#allocation5 + $0x8] sm:$0xff]   ;;  %v5953_v37 = vld [vmem:[#allocation5] sm:$0xff]   ;;  %v279_v42 = vld [vmem:[%s6384_s7 + $0x30] sm:$0xff]  ;;  %s5862_s28 = smul.u32 5376, %s6274_s22  ;;  %s4382_s29 = sshll.u32 %s8115_s12, 4  ;;  %s8287_s29 = int_to_ptr.vmem [resolvable:$true] %s4382_s29 }
  0x62   : > { %4862 = vmatprep.subr.bf16.mxu0 %v8411_v0  ;;  %4962 = vmatprep.subr.bf16.mxu1 %v8411_v0  ;;  %v6430_v40 = vpack.c.bf16 %v326_v30, %v325_v26  ;;  %v280_v43 = vld [vmem:[%s6384_s7 + $0x38] sm:$0xff]  ;;  %v327_v47 = vmax.f32 %v279_v42, 0.0  ;;  %v5955_v52 = vld [vmem:[#allocation5 + $0xb0] sm:$0xff]   ;;  %v281_v53 = vld [vmem:[%s6384_s7 + $0x40] sm:$0xff]  ;;  %s4369_s22 = scalar_lea.sflag [#allocation4], %s6380_s16  ;;  %s6141_s14 = scalar_lea.vmem %s8287_s29, 5376 }
  0x63   : > { %v430_v25 = vshll.u32 %v6414_v22, 16  ;;  %v428_v28 = vshrl.u32 %v6414_v22, 16  ;;  %v435_v29 = vshll.u32 %v6418_v24, 16  ;;  %v439_v31 = vshrl.u32 %v6418_v24, 16  ;;  %v5954_v45 = vld [vmem:[#allocation5 + $0xb8] sm:$0xff]   ;;  %v282_v54 = vld [vmem:[%s6384_s7 + $0x48] sm:$0xff]  ;;  %s8285_s13 = scalar_lea.hbm %s8338_s5, %s5862_s28  ;;  %p6142_p11 = scmp.ne.s32.totalorder %s8287_s29, %s6141_s14 }
  0x64   : > { %8449 = vst [vmem:[#allocation12_spill] sm:$0xff] %v6430_v40  ;;  %v6440_v46 = vshll.u32 %v6430_v40, 16  ;;  %v328_v48 = vmax.f32 %v280_v43, 0.0  ;;  %v329_v55 = vmax.f32 %v281_v53, 0.0  ;;  %v6457_v57 = vshrl.u32 %v6430_v40, 16  ;;  %v5956_v60 = vld [vmem:[#allocation5 + $0xa8] sm:$0xff]  }
  0x65   : > { %4863 = vmatpush3.bf16.msra.mxu0 %v5942_v5  ;;  %4963 = vmatpush3.bf16.msra.mxu1 %v5943_v6  ;;  %v432_v33 = vrot.slane %v430_v25, 1  ;;  %v6426_v34 = vrot.slane %v435_v29, 2  ;;  %v6428_v35 = vrot.slane %v439_v31, 1  ;;  %v437_v39 = vrot.slane %v435_v29, 1  ;;  %v283_v1 = vld [vmem:[%s6384_s7 + $0x50] sm:$0xff]  ;;  %v5961_v2 = vld [vmem:[#allocation5 + $0xf8] sm:$0xff]  }
  0x66   : > { %4864 = vmatprep.subr.bf16.mxu0 %v8411_v0  ;;  %4964 = vmatprep.subr.bf16.mxu1 %v8411_v0  ;;  %v445_v50 = vrot.slane %v6440_v46, 1  ;;  %v6446_v51 = vpack.c.bf16 %v328_v48, %v327_v47  ;;  %v330_v59 = vmax.f32 %v282_v54, 0.0  ;;  %v284_v3 = vld [vmem:[%s6384_s7 + $0x58] sm:$0xff]  ;;  %v5957_v4 = vld [vmem:[#allocation5 + $0xa0] sm:$0xff]   ;;  %v5962_v5 = vld [vmem:[#allocation5 + $0xf0] sm:$0xff]   ;;  %v331_v6 = vmax.f32 %v283_v1, 0.0 }
  0x67   : > { %v433_v38 = vor.u32 %v432_v33, %v428_v28  ;;  %v441_v49 = vor.u32 %v439_v31, %v437_v39  ;;  %v5958_v11 = vld [vmem:[#allocation5 + $0x98] sm:$0xff]   ;;  %v285_v12 = vld [vmem:[%s6384_s7 + $0x60] sm:$0xff]  ;;  %v286_v13 = vld [vmem:[%s6384_s7 + $0x68] sm:$0xff]  ;;  %p8685_p10 = scmp.ne.s32.totalorder %s8443_s23, 0  ;;  %s6220_s17 = smov [#allocation8]  }
  0x68   : > { %8450 = vst [vmem:[#allocation13_spill] sm:$0xff] %v6446_v51  ;;  %v6460_v58 = vshll.u32 %v6446_v51, 16  ;;  %v449_v61 = vor.u32 %v6457_v57, %v445_v50  ;;  %v6468_v63 = vpack.c.bf16 %v330_v59, %v329_v55  ;;  %v287_v17 = vld [vmem:[%s6384_s7 + $0x70] sm:$0xff]  ;;  %v333_v19 = vmax.f32 %v285_v12, 0.0  ;;  %v5965_v25 = vld [vmem:[#allocation5 + $0xe0] sm:$0xff]   ;;  %v290_v29 = vld [vmem:[%s6384_s7 + $0x88] sm:$0xff] }
  0x69   : > { %4865 = vmatpush3.bf16.msra.mxu0 %v5944_v7  ;;  %4965 = vmatpush3.bf16.msra.mxu1 %v5945_v8  ;;  %v438_v44 = vsel %vm426_vm1, %v433_v38, %v437_v39  ;;  %v446_v56 = vsel %vm426_vm1, %v441_v49, %v445_v50  ;;  %v6478_v8 = vshrl.u32 %v6446_v51, 16  ;;  %v334_v20 = vmax.f32 %v286_v13, 0.0  ;;  %v5959_v23 = vld [vmem:[#allocation5 + $0x90] sm:$0xff]   ;;  %v289_v28 = vld [vmem:[%s6384_s7 + $0x80] sm:$0xff]  ;;  %v5966_v47 = vld [vmem:[#allocation5 + $0xd8] sm:$0xff]   ;;  %p6143_p1 = pnand %p6142_p11, %p8685_p10  ;;  %s6145_s30 = sshll.u32 %s6220_s17, 4  ;;  %s6146_s30 = int_to_ptr.vmem [resolvable:$false] %s6145_s30 }
  0x6a   : > { %4866 = vmatprep.subr.bf16.mxu0 %v8411_v0  ;;  %4966 = vmatprep.subr.bf16.mxu1 %v8411_v0  ;;  %v453_v62 = vrot.slane %v6460_v58, 1  ;;  %8451 = vst [vmem:[#allocation14_spill] sm:$0xff] %v6468_v63  ;;  %v6500_v26 = vshrl.u32 %v6468_v63, 16  ;;  %v337_v38 = vmax.f32 %v289_v28, 0.0  ;;  %v5964_v53 = vld [vmem:[#allocation5 + $0x80] sm:$0xff]   ;;  %v5967_v55 = vld [vmem:[#allocation5 + $0xd0] sm:$0xff]   ;;  %p6148_p6 = scmp.lt.s32.totalorder %s8287_s29, %s6146_s30 }
  0x6b   : > { %v6509_v33 = vpack.c.bf16 %v334_v20, %v333_v19  ;;  %p6144_p2 = pneg %p6143_p1  ;;  %s6147_s24 = scalar_lea.vmem %s6146_s30, 10752 }
  0x6c   : > { %v454_v7 = vsel %vm426_vm1, %v449_v61, %v453_v62  ;;  %v457_v14 = vor.u32 %v6478_v8, %v453_v62  ;;  %p6149_p12 = scmp.lt.s32.totalorder %s6147_s24, %s6141_s14 }
  0x6d   : > { %4867 = vmatpush3.bf16.msra.mxu0 %v5946_v9  ;;  %4967 = vmatpush3.bf16.msra.mxu1 %v5947_v10  ;;  %v6481_v9 = vshll.u32 %v6468_v63, 16  ;;  %v332_v10 = vmax.f32 %v284_v3, 0.0  ;;  %8453 = vst [vmem:[#allocation16_spill] sm:$0xff] %v6509_v33  ;;  %v6528_v49 = vshll.u32 %v6509_v33, 16  ;;  %v6532_v54 = vshrl.u32 %v6509_v33, 16 }
  0x6e   : > { %4868 = vmatprep.subr.bf16.mxu0 %v8411_v0  ;;  %4968 = vmatprep.subr.bf16.mxu1 %v8411_v0  ;;  %p6150_p7 = por %p6149_p12, %p6148_p6 }
  0x6f   : > { %v461_v15 = vrot.slane %v6481_v9, 1  ;;  %v6492_v16 = vpack.c.bf16 %v332_v10, %v331_v6  ;;  %8455 = vst [vmem:[#allocation18_spill] sm:$0xff] %v6528_v49  ;;  %v477_v3 = vrot.slane %v6528_v49, 1  ;;  %v5968_v6 = vld [vmem:[#allocation5 + $0xc8] sm:$0xff]  }
  0x70   : > { %v294_v10 = vld [vmem:[%s6384_s7 + $0xa8] sm:$0xff]  ;;  %p6151_p9 = pnand %p6150_p7, %p6144_p2 }
  0x71   : > { %4869 = vmatpush3.bf16.msra.mxu0 %v5948_v18  ;;  %4969 = vmatpush3.bf16.msra.mxu1 %v5949_v21  ;;  %8452 = vst [vmem:[#allocation15_spill] sm:$0xff] %v6492_v16  ;;  %v5963_v18 = vld [vmem:[#allocation5 + $0xe8] sm:$0xff]   ;;  %v288_v21 = vld [vmem:[%s6384_s7 + $0x78] sm:$0xff]  ;;  %v462_v30 = vsel %vm426_vm1, %v457_v14, %v461_v15  ;;  %v6507_v31 = vshll.u32 %v6492_v16, 16  ;;  %v465_v39 = vor.u32 %v6500_v26, %v461_v15  ;;  %v6525_v48 = vshrl.u32 %v6492_v16, 16 }
  0x72   : > { %4870 = vmatprep.subr.bf16.mxu0 %v8411_v0  ;;  %4970 = vmatprep.subr.bf16.mxu1 %v8411_v0  ;;  %v342_v13 = vmax.f32 %v294_v10, 0.0  ;;  %v481_v14 = vor.u32 %v6532_v54, %v477_v3 }
  0x73   : > { %v469_v42 = vrot.slane %v6507_v31, 1 }
  0x75   : > { %4871 = vmatpush3.bf16.msra.mxu0 %v5950_v27  ;;  %4971 = vmatpush3.bf16.msra.mxu1 %v5951_v32  ;;  %v335_v27 = vmax.f32 %v287_v17, 0.0  ;;  %v336_v32 = vmax.f32 %v288_v21, 0.0 }
  0x76   : > { %4872 = vmatprep.subr.bf16.mxu0 %v8411_v0  ;;  %4972 = vmatprep.subr.bf16.mxu1 %v8411_v0 }
  0x77   : > { %v6519_v43 = vpack.c.bf16 %v336_v32, %v335_v27 }
  0x79   : > { %4873 = vmatpush3.bf16.msra.mxu0 %v5952_v36  ;;  %4973 = vmatpush3.bf16.msra.mxu1 %v5953_v37  ;;  %v5960_v36 = vld [vmem:[#allocation5 + $0x88] sm:$0xff]   ;;  %v291_v37 = vld [vmem:[%s6384_s7 + $0x90] sm:$0xff]  ;;  %8454 = vst [vmem:[#allocation17_spill] sm:$0xff] %v6519_v43  ;;  %v6538_v59 = vshll.u32 %v6519_v43, 16  ;;  %v6543_v62 = vshrl.u32 %v6519_v43, 16 }
  0x7a   : > { %5058 = vmatprep.subr.bf16.mxu0 %v8411_v0  ;;  %5158 = vmatprep.subr.bf16.mxu1 %v8411_v0  ;;  %v339_v50 = vmax.f32 %v291_v37, 0.0 }
  0x7c   : > { %4875 = vmatmul.mubr.bf16.vlgmr.msra.gmra.mxu0 %v438_v44  ;;  %4975 = vmatmul.mubr.bf16.vlgmr.msra.gmra.mxu1 %v6414_v22  ;;  %v338_v44 = vmax.f32 %v290_v29, 0.0  ;;  %v296_v29 = vld [vmem:[%s6384_s7 + $0xb8] sm:$0xff] }
  0x7d   : > { %5059 = vmatpush3.bf16.msra.mxu0 %v5954_v45  ;;  %4878 = vmatprep.mubr.msk.bf16.mxu0 %vm6219_vm0, %v8411_v0  ;;  %v292_v45 = vld [vmem:[%s6384_s7 + $0x98] sm:$0xff] }
  0x7e   : > { %4978 = vmatprep.mubr.msk.bf16.mxu1 %vm6219_vm0, %v8411_v0  ;;  %5060 = vmatprep.subr.bf16.mxu0 %v8411_v0  ;;  %v340_v61 = vmax.f32 %v292_v45, 0.0  ;;  %v297_v45 = vld [vmem:[%s6384_s7 + $0xc0] sm:$0xff] }
  0x7f   : > { %5159 = vmatpush3.bf16.msra.mxu1 %v5961_v2  ;;  %v473_v2 = vor.u32 %v6525_v48, %v469_v42 }
  0x80   : > { %5160 = vmatprep.subr.bf16.mxu1 %v8411_v0  ;;  %v6571_v15 = vpack.c.bf16 %v340_v61, %v339_v50  ;;  %v345_v50 = vmax.f32 %v297_v45, 0.0  ;;  %v304_v45 = vld [vmem:[%s6384_s7 + $0xf8] sm:$0xff] }
  0x81   : > { %5061 = vmatpush3.bf16.msra.mxu0 %v5955_v52  ;;  %v293_v52 = vld [vmem:[%s6384_s7 + $0xa0] sm:$0xff] }
  0x82   : > { %5062 = vmatprep.subr.bf16.mxu0 %v8411_v0  ;;  %v341_v1 = vmax.f32 %v293_v52, 0.0  ;;  %8457 = vst [vmem:[#allocation20_spill] sm:$0xff] %v6571_v15  ;;  %v6576_v19 = vshll.u32 %v6571_v15, 16 }
  0x83   : > { %5161 = vmatpush3.bf16.msra.mxu1 %v5962_v5 }
  0x84   : > { %4879 = vmatmul.mubr.bf16.gmra.mxu0 %v446_v56  ;;  %4979 = vmatmul.mubr.bf16.gmra.mxu1 %v6418_v24  ;;  %v470_v56 = vsel %vm426_vm1, %v465_v39, %v469_v42  ;;  %v501_v27 = vrot.slane %v6576_v19, 1  ;;  %v6591_v28 = vpack.c.bf16 %v342_v13, %v341_v1 }
  0x85   : > { %4882 = vmatprep.mubr.msk.bf16.mxu0 %vm6219_vm0, %v8411_v0  ;;  %4982 = vmatprep.mubr.msk.bf16.mxu1 %vm6219_vm0, %v8411_v0 }
  0x86   : > { %5063 = vmatpush3.bf16.msra.mxu0 %v5956_v60  ;;  %5162 = vmatprep.subr.bf16.mxu1 %v8411_v0  ;;  %v6540_v60 = vpack.c.bf16 %v338_v44, %v337_v38  ;;  %8458 = vst [vmem:[#allocation21_spill] sm:$0xff] %v6591_v28  ;;  %v344_v38 = vmax.f32 %v296_v29, 0.0 }
  0x87   : > { %5064 = vmatprep.subr.bf16.mxu0 %v8411_v0  ;;  %5163 = vmatpush3.bf16.msra.mxu1 %v5963_v18 }
  0x88   : > { %5164 = vmatprep.subr.bf16.mxu1 %v8411_v0  ;;  %8456 = vst [vmem:[#allocation19_spill] sm:$0xff] %v6540_v60  ;;  %v6554_v5 = vshll.u32 %v6540_v60, 16  ;;  %v6562_v12 = vshrl.u32 %v6540_v60, 16 }
  0x8a   : > { %5065 = vmatpush3.bf16.msra.mxu0 %v5957_v4  ;;  %v485_v4 = vrot.slane %v6538_v59, 1  ;;  %v493_v18 = vrot.slane %v6554_v5, 1 }
  0x8b   : > { %5066 = vmatprep.subr.bf16.mxu0 %v8411_v0  ;;  %5165 = vmatpush3.bf16.msra.mxu1 %v5965_v25 }
  0x8c   : > { %4883 = vmatmul.mubr.bf16.gmra.mxu0 %v454_v7  ;;  %4983 = vmatmul.mubr.bf16.gmra.mxu1 %v6430_v40  ;;  %v5969_v7 = vld [vmem:[#allocation5 + $0xc0] sm:$0xff]   ;;  %v486_v17 = vsel %vm426_vm1, %v481_v14, %v485_v4  ;;  %v489_v20 = vor.u32 %v6543_v62, %v485_v4  ;;  %v497_v25 = vor.u32 %v6562_v12, %v493_v18  ;;  %v300_v4 = vld [vmem:[%s6384_s7 + $0xd8] sm:$0xff] }
  0x8d   : > { %4886 = vmatprep.mubr.msk.bf16.mxu0 %vm6219_vm0, %v8411_v0  ;;  %4986 = vmatprep.mubr.msk.bf16.mxu1 %vm6219_vm0, %v8411_v0  ;;  %v348_v13 = vmax.f32 %v300_v4, 0.0 }
  0x8e   : > { %5067 = vmatpush3.bf16.msra.mxu0 %v5958_v11  ;;  %5166 = vmatprep.subr.bf16.mxu1 %v8411_v0  ;;  %v478_v11 = vsel %vm426_vm1, %v473_v2, %v477_v3  ;;  %v494_v21 = vsel %vm426_vm1, %v489_v20, %v493_v18  ;;  %v502_v32 = vsel %vm426_vm1, %v497_v25, %v501_v27  ;;  %v299_v3 = vld [vmem:[%s6384_s7 + $0xd0] sm:$0xff]  ;;  %v301_v20 = vld [vmem:[%s6384_s7 + $0xe0] sm:$0xff] }
  0x8f   : > { %5068 = vmatprep.subr.bf16.mxu0 %v8411_v0  ;;  %5167 = vmatpush3.bf16.msra.mxu1 %v5966_v47  ;;  %v298_v47 = vld [vmem:[%s6384_s7 + $0xc8] sm:$0xff] }
  0x90   : > { %5168 = vmatprep.subr.bf16.mxu1 %v8411_v0 }
  0x92   : > { %5069 = vmatpush3.bf16.msra.mxu0 %v5959_v23  ;;  %v295_v23 = vld [vmem:[%s6384_s7 + $0xb0] sm:$0xff] }
  0x93   : > { %5070 = vmatprep.subr.bf16.mxu0 %v8411_v0  ;;  %5169 = vmatpush3.bf16.msra.mxu1 %v5967_v55  ;;  %v343_v37 = vmax.f32 %v295_v23, 0.0  ;;  %v349_v23 = vmax.f32 %v301_v20, 0.0 }
  0x94   : > { %4887 = vmatmul.mubr.bf16.gmra.mxu0 %v462_v30  ;;  %4987 = vmatmul.mubr.bf16.gmra.mxu1 %v6446_v51  ;;  %v6597_v30 = vshrl.u32 %v6571_v15, 16 }
  0x95   : > { %4890 = vmatprep.mubr.msk.bf16.mxu0 %vm6219_vm0, %v8411_v0  ;;  %4990 = vmatprep.mubr.msk.bf16.mxu1 %vm6219_vm0, %v8411_v0  ;;  %v6608_v44 = vpack.c.bf16 %v344_v38, %v343_v37 }
  0x96   : > { %5071 = vmatpush3.bf16.msra.mxu0 %v5960_v36  ;;  %5170 = vmatprep.subr.bf16.mxu1 %v8411_v0  ;;  %v6601_v36 = vshll.u32 %v6591_v28, 16  ;;  %v505_v39 = vor.u32 %v6597_v30, %v501_v27 }
  0x97   : > { %5072 = vmatprep.subr.bf16.mxu0 %v8411_v0  ;;  %5171 = vmatpush3.bf16.msra.mxu1 %v5968_v6  ;;  %8460 = vst [vmem:[#allocation23_spill] sm:$0xff] %v6608_v44  ;;  %v6619_v55 = vshll.u32 %v6608_v44, 16  ;;  %v347_v6 = vmax.f32 %v299_v3, 0.0  ;;  %v6634_v10 = vshrl.u32 %v6608_v44, 16 }
  0x98   : > { %5172 = vmatprep.subr.bf16.mxu1 %v8411_v0  ;;  %8459 = vst [vmem:[#allocation22_spill] sm:$0xff] %v6601_v36  ;;  %v509_v42 = vrot.slane %v6601_v36, 1 }
  0x99   : > { %8462 = vst [vmem:[#allocation25_spill] sm:$0xff] %v6619_v55  ;;  %v517_v1 = vrot.slane %v6619_v55, 1  ;;  %8464 = vst [vmem:[#allocation27_spill] sm:$0xff] %v6634_v10  ;;  %v6644_v18 = vpack.c.bf16 %v348_v13, %v347_v6  ;;  %v305_v6 = vld [vmem:[%s6384_s7 + $0x100] sm:$0xff] }
  0x9a   : > { %5073 = vmatpush3.bf16.msra.mxu0 %v5964_v53  ;;  %v510_v52 = vsel %vm426_vm1, %v505_v39, %v509_v42  ;;  %v6616_v53 = vshrl.u32 %v6591_v28, 16  ;;  %v353_v13 = vmax.f32 %v305_v6, 0.0 }
  0x9b   : > { %5258 = vmatprep.subr.bf16.mxu0 %v8411_v0  ;;  %5173 = vmatpush3.bf16.msra.mxu1 %v5969_v7  ;;  %v521_v14 = vor.u32 %v6634_v10, %v517_v1  ;;  %8466 = vst [vmem:[#allocation29_spill] sm:$0xff] %v6644_v18  ;;  %v6655_v29 = vshll.u32 %v6644_v18, 16 }
  0x9c   : > { %4891 = vmatmul.mubr.bf16.gmra.mxu0 %v470_v56  ;;  %4991 = vmatmul.mubr.bf16.gmra.mxu1 %v6468_v63  ;;  %8461 = vst [vmem:[#allocation24_spill] sm:$0xff] %v6616_v53  ;;  %v346_v56 = vmax.f32 %v298_v47, 0.0  ;;  %v513_v61 = vor.u32 %v6616_v53, %v509_v42  ;;  %v303_v42 = vld [vmem:[%s6384_s7 + $0xf0] sm:$0xff] }
  0x9d   : > { %4894 = vmatprep.mubr.msk.bf16.mxu0 %vm6219_vm0, %v8411_v0  ;;  %4994 = vmatprep.mubr.msk.bf16.mxu1 %vm6219_vm0, %v8411_v0  ;;  %8468 = vst [vmem:[#allocation31_spill] sm:$0xff] %v6655_v29  ;;  %v533_v38 = vrot.slane %v6655_v29, 1  ;;  %v351_v47 = vmax.f32 %v303_v42, 0.0 }
  0x9e   : > { %5358 = vmatprep.subr.bf16.mxu1 %v8411_v0  ;;  %v6626_v2 = vpack.c.bf16 %v346_v56, %v345_v50  ;;  %v518_v7 = vsel %vm426_vm1, %v513_v61, %v517_v1  ;;  %v352_v61 = vmax.f32 %v304_v45, 0.0 }
  0xa0   : > { %8463 = vst [vmem:[#allocation26_spill] sm:$0xff] %v6626_v2  ;;  %v6652_v27 = vshrl.u32 %v6626_v2, 16  ;;  %v6680_v4 = vpack.c.bf16 %v352_v61, %v351_v47 }
  0xa2   : > { %8467 = vst [vmem:[#allocation30_spill] sm:$0xff] %v6652_v27  ;;  %8472 = vst [vmem:[#allocation35_spill] sm:$0xff] %v6680_v4  ;;  %v6691_v20 = vshll.u32 %v6680_v4, 16  ;;  %v6706_v47 = vshrl.u32 %v6680_v4, 16 }
  0xa4   : > { %4895 = vmatmul.mubr.bf16.gmra.mxu0 %v478_v11  ;;  %4995 = vmatmul.mubr.bf16.gmra.mxu1 %v6492_v16  ;;  %v6637_v11 = vshll.u32 %v6626_v2, 16  ;;  %8474 = vst [vmem:[#allocation37_spill] sm:$0xff] %v6691_v20  ;;  %8476 = vst [vmem:[#allocation39_spill] sm:$0xff] %v6706_v47 }
  0xa5   : > { %4898 = vmatprep.mubr.msk.bf16.mxu0 %vm6219_vm0, %v8411_v0  ;;  %4998 = vmatprep.mubr.msk.bf16.mxu1 %vm6219_vm0, %v8411_v0 }
  0xa6   : > { %8465 = vst [vmem:[#allocation28_spill] sm:$0xff] %v6637_v11 }
  0xac   : > { %4899 = vmatmul.mubr.bf16.gmra.mxu0 %v486_v17  ;;  %4999 = vmatmul.mubr.bf16.gmra.mxu1 %v6509_v33  ;;  %v525_v17 = vrot.slane %v6637_v11, 1 }
  0xad   : > { %4902 = vmatprep.mubr.msk.bf16.mxu0 %vm6219_vm0, %v8411_v0  ;;  %5002 = vmatprep.mubr.msk.bf16.mxu1 %vm6219_vm0, %v8411_v0 }
  0xae   : > { %v526_v25 = vsel %vm426_vm1, %v521_v14, %v525_v17  ;;  %v529_v37 = vor.u32 %v6652_v27, %v525_v17 }
  0xb0   : > { %v534_v50 = vsel %vm426_vm1, %v529_v37, %v533_v38  ;;  %v307_v37 = vld [vmem:[%s6384_s7 + $0x110] sm:$0xff] }
  0xb1   : > { %v355_v42 = vmax.f32 %v307_v37, 0.0 }
  0xb4   : > { %4903 = vmatmul.mubr.bf16.gmra.mxu0 %v494_v21  ;;  %5003 = vmatmul.mubr.bf16.gmra.mxu1 %v6519_v43  ;;  %v302_v21 = vld [vmem:[%s6384_s7 + $0xe8] sm:$0xff] }
  0xb5   : > { %4906 = vmatprep.mubr.msk.bf16.mxu0 %vm6219_vm0, %v8411_v0  ;;  %5006 = vmatprep.mubr.msk.bf16.mxu1 %vm6219_vm0, %v8411_v0 }
  0xbc   : > { %4907 = vmatmul.mubr.bf16.gmra.mxu0 %v502_v32  ;;  %5007 = vmatmul.mubr.bf16.gmra.mxu1 %v6540_v60  ;;  %v350_v32 = vmax.f32 %v302_v21, 0.0 }
  0xbd   : > { %4910 = vmatprep.mubr.msk.bf16.mxu0 %vm6219_vm0, %v8411_v0  ;;  %5010 = vmatprep.mubr.msk.bf16.mxu1 %vm6219_vm0, %v8411_v0 }
  0xbe   : > { %v6662_v39 = vpack.c.bf16 %v350_v32, %v349_v23 }
  0xc0   : > { %8469 = vst [vmem:[#allocation32_spill] sm:$0xff] %v6662_v39  ;;  %v6673_v56 = vshll.u32 %v6662_v39, 16  ;;  %v6688_v17 = vshrl.u32 %v6662_v39, 16 }
  0xc2   : > { %8471 = vst [vmem:[#allocation34_spill] sm:$0xff] %v6673_v56  ;;  %v541_v3 = vrot.slane %v6673_v56, 1  ;;  %8473 = vst [vmem:[#allocation36_spill] sm:$0xff] %v6688_v17 }
  0xc4   : > { %4911 = vmatmul.mubr.bf16.gmra.mxu0 %v510_v52  ;;  %5011 = vmatmul.mubr.bf16.gmra.mxu1 %v6571_v15  ;;  %v6670_v52 = vshrl.u32 %v6644_v18, 16  ;;  %v545_v23 = vor.u32 %v6688_v17, %v541_v3 }
  0xc5   : > { %4914 = vmatprep.mubr.msk.bf16.mxu0 %vm6219_vm0, %v8411_v0  ;;  %5014 = vmatprep.mubr.msk.bf16.mxu1 %vm6219_vm0, %v8411_v0 }
  0xc6   : > { %8470 = vst [vmem:[#allocation33_spill] sm:$0xff] %v6670_v52  ;;  %v537_v1 = vor.u32 %v6670_v52, %v533_v38  ;;  %v308_v38 = vld [vmem:[%s6384_s7 + $0x118] sm:$0xff] }
  0xc7   : > { %v356_v61 = vmax.f32 %v308_v38, 0.0 }
  0xc8   : > { %v542_v14 = vsel %vm426_vm1, %v537_v1, %v541_v3 }
  0xc9   : > { %v6716_v6 = vpack.c.bf16 %v356_v61, %v355_v42  ;;  %v311_v61 = vld [vmem:[%s6384_s7 + $0x130] sm:$0xff] }
  0xcb   : > { %8478 = vst [vmem:[#allocation41_spill] sm:$0xff] %v6716_v6  ;;  %v6727_v37 = vshll.u32 %v6716_v6, 16 }
  0xcc   : > { %4915 = vmatmul.mubr.bf16.gmra.mxu0 %v518_v7  ;;  %5015 = vmatmul.mubr.bf16.gmra.mxu1 %v6591_v28  ;;  %v306_v7 = vld [vmem:[%s6384_s7 + $0x108] sm:$0xff] }
  0xcd   : > { %4918 = vmatprep.mubr.msk.bf16.mxu0 %vm6219_vm0, %v8411_v0  ;;  %5018 = vmatprep.mubr.msk.bf16.mxu1 %vm6219_vm0, %v8411_v0  ;;  %v354_v21 = vmax.f32 %v306_v7, 0.0  ;;  %v309_v7 = vld [vmem:[%s6384_s7 + $0x120] sm:$0xff]  ;;  %8480 = vst [vmem:[#allocation43_spill] sm:$0xff] %v6727_v37  ;;  %v565_v42 = vrot.slane %v6727_v37, 1  ;;  %v314_v37 = vld [vmem:[%s6384_s7 + $0x148] sm:$0xff] }
  0xcf   : > { %v6698_v32 = vpack.c.bf16 %v354_v21, %v353_v13  ;;  %v310_v13 = vld [vmem:[%s6384_s7 + $0x128] sm:$0xff] }
  0xd1   : > { %8475 = vst [vmem:[#allocation38_spill] sm:$0xff] %v6698_v32 }
  0xd4   : > { %4919 = vmatmul.mubr.bf16.gmra.mxu0 %v526_v25  ;;  %5019 = vmatmul.mubr.bf16.gmra.mxu1 %v6608_v44  ;;  %v549_v25 = vrot.slane %v6691_v20, 1 }
  0xd5   : > { %4922 = vmatprep.mubr.msk.bf16.mxu0 %vm6219_vm0, %v8411_v0  ;;  %5022 = vmatprep.mubr.msk.bf16.mxu1 %vm6219_vm0, %v8411_v0 }
  0xd6   : > { %v550_v45 = vsel %vm426_vm1, %v545_v23, %v549_v25  ;;  %v553_v1 = vor.u32 %v6706_v47, %v549_v25  ;;  %v6724_v23 = vshrl.u32 %v6698_v32, 16  ;;  %v358_v25 = vmax.f32 %v310_v13, 0.0 }
  0xd8   : > { %8479 = vst [vmem:[#allocation42_spill] sm:$0xff] %v6724_v23 }
  0xdc   : > { %4923 = vmatmul.mubr.bf16.gmra.mxu0 %v534_v50  ;;  %5023 = vmatmul.mubr.bf16.gmra.mxu1 %v6626_v2  ;;  %v6709_v50 = vshll.u32 %v6698_v32, 16 }
  0xdd   : > { %4926 = vmatprep.mubr.msk.bf16.mxu0 %vm6219_vm0, %v8411_v0  ;;  %5026 = vmatprep.mubr.msk.bf16.mxu1 %vm6219_vm0, %v8411_v0 }
  0xde   : > { %8477 = vst [vmem:[#allocation40_spill] sm:$0xff] %v6709_v50  ;;  %v557_v3 = vrot.slane %v6709_v50, 1 }
  0xe0   : > { %v558_v21 = vsel %vm426_vm1, %v553_v1, %v557_v3  ;;  %v561_v38 = vor.u32 %v6724_v23, %v557_v3  ;;  %v312_v1 = vld [vmem:[%s6384_s7 + $0x138] sm:$0xff] }
  0xe1   : > { %v360_v3 = vmax.f32 %v312_v1, 0.0 }
  0xe2   : > { %v566_v13 = vsel %vm426_vm1, %v561_v38, %v565_v42  ;;  %v313_v38 = vld [vmem:[%s6384_s7 + $0x140] sm:$0xff] }
  0xe3   : > { %v361_v1 = vmax.f32 %v313_v38, 0.0 }
  0xe4   : > { %4927 = vmatmul.mubr.bf16.gmra.mxu0 %v542_v14  ;;  %5027 = vmatmul.mubr.bf16.gmra.mxu1 %v6644_v18  ;;  %v357_v14 = vmax.f32 %v309_v7, 0.0  ;;  %v359_v7 = vmax.f32 %v311_v61, 0.0 }
  0xe5   : > { %4930 = vmatprep.mubr.msk.bf16.mxu0 %vm6219_vm0, %v8411_v0  ;;  %5030 = vmatprep.mubr.msk.bf16.mxu1 %vm6219_vm0, %v8411_v0 }
  0xe6   : > { %v6752_v61 = vpack.c.bf16 %v360_v3, %v359_v7 }
  0xe8   : > { %8484 = vst [vmem:[#allocation47_spill] sm:$0xff] %v6752_v61  ;;  %v6763_v23 = vshll.u32 %v6752_v61, 16 }
  0xea   : > { %8486 = vst [vmem:[#allocation49_spill] sm:$0xff] %v6763_v23  ;;  %v581_v3 = vrot.slane %v6763_v23, 1  ;;  %v5982_v23 = vld [vmem:[#allocation5 + $0x158] sm:$0xff]  }
  0xec   : > { %4931 = vmatmul.mubr.bf16.gmra.mxu0 %v550_v45  ;;  %5031 = vmatmul.mubr.bf16.gmra.mxu1 %v6662_v39  ;;  %v6734_v45 = vpack.c.bf16 %v358_v25, %v357_v14 }
  0xed   : > { %4934 = vmatprep.mubr.msk.bf16.mxu0 %vm6219_vm0, %v8411_v0  ;;  %5034 = vmatprep.mubr.msk.bf16.mxu1 %vm6219_vm0, %v8411_v0 }
  0xee   : > { %8481 = vst [vmem:[#allocation44_spill] sm:$0xff] %v6734_v45  ;;  %v6745_v41 = vshll.u32 %v6734_v45, 16  ;;  %v6760_v50 = vshrl.u32 %v6734_v45, 16 }
  0xf0   : > { %8483 = vst [vmem:[#allocation46_spill] sm:$0xff] %v6745_v41  ;;  %v573_v25 = vrot.slane %v6745_v41, 1  ;;  %8485 = vst [vmem:[#allocation48_spill] sm:$0xff] %v6760_v50  ;;  %v316_v41 = vld [vmem:[%s6384_s7 + $0x158] sm:$0xff] }
  0xf1   : > { %v364_v47 = vmax.f32 %v316_v41, 0.0 }
  0xf2   : > { %v577_v7 = vor.u32 %v6760_v50, %v573_v25  ;;  %v5983_v50 = vld [vmem:[#allocation5 + $0x150] sm:$0xff]  }
  0xf4   : > { %4935 = vmatmul.mubr.bf16.gmra.mxu0 %v558_v21  ;;  %5035 = vmatmul.mubr.bf16.gmra.mxu1 %v6680_v4  ;;  %v6742_v21 = vshrl.u32 %v6716_v6, 16 }
  0xf5   : > { %4938 = vmatprep.mubr.msk.bf16.mxu0 %vm6219_vm0, %v8411_v0  ;;  %5038 = vmatprep.mubr.msk.bf16.mxu1 %vm6219_vm0, %v8411_v0 }
  0xf6   : > { %8482 = vst [vmem:[#allocation45_spill] sm:$0xff] %v6742_v21  ;;  %v569_v14 = vor.u32 %v6742_v21, %v565_v42  ;;  %v362_v42 = vmax.f32 %v314_v37, 0.0  ;;  %v6777_v21 = vshrl.u32 %v6752_v61, 16  ;;  %v582_v37 = vsel %vm426_vm1, %v577_v7, %v581_v3 }
  0xf8   : > { %v6770_v38 = vpack.c.bf16 %v362_v42, %v361_v1  ;;  %8488 = vst [vmem:[#allocation51_spill] sm:$0xff] %v6777_v21 }
  0xfa   : > { %8487 = vst [vmem:[#allocation50_spill] sm:$0xff] %v6770_v38 }
  0xfc   : > { %4939 = vmatmul.mubr.bf16.gmra.mxu0 %v566_v13  ;;  %5039 = vmatmul.mubr.bf16.gmra.mxu1 %v6698_v32  ;;  %v574_v13 = vsel %vm426_vm1, %v569_v14, %v573_v25  ;;  %v315_v14 = vld [vmem:[%s6384_s7 + $0x150] sm:$0xff]  ;;  %v585_v25 = vor.u32 %v6777_v21, %v581_v3 }
  0xfd   : > { %4942 = vmatprep.mubr.msk.bf16.mxu0 %vm6219_vm0, %v8411_v0  ;;  %5042 = vmatprep.mubr.msk.bf16.mxu1 %vm6219_vm0, %v8411_v0  ;;  %v363_v20 = vmax.f32 %v315_v14, 0.0  ;;  %v6794_v14 = vshrl.u32 %v6770_v38, 16 }
  0xff   : > { %v6788_v42 = vpack.c.bf16 %v364_v47, %v363_v20  ;;  %8491 = vst [vmem:[#allocation54_spill] sm:$0xff] %v6794_v14 }
 0x101   : > { %8490 = vst [vmem:[#allocation53_spill] sm:$0xff] %v6788_v42  ;;  %v6797_v41 = vshll.u32 %v6788_v42, 16 }
 0x103   : > { %8492 = vst [vmem:[#allocation55_spill] sm:$0xff] %v6797_v41  ;;  %v597_v47 = vrot.slane %v6797_v41, 1  ;;  %v5970_v41 = vld [vmem:[#allocation5 + $0x138] sm:$0xff]  }
 0x104   : > { %4943 = vmatmul.mubr.bf16.gmra.mxu0 %v574_v13  ;;  %5043 = vmatmul.mubr.bf16.gmra.mxu1 %v6716_v6  ;;  %v6781_v13 = vshll.u32 %v6770_v38, 16 }
 0x105   : > { %4946 = vmatprep.mubr.msk.bf16.mxu0 %vm6219_vm0, %v8411_v0  ;;  %5046 = vmatprep.mubr.msk.bf16.mxu1 %vm6219_vm0, %v8411_v0 }
 0x106   : > { %8489 = vst [vmem:[#allocation52_spill] sm:$0xff] %v6781_v13  ;;  %v589_v1 = vrot.slane %v6781_v13, 1  ;;  %v5979_v13 = vld [vmem:[#allocation5 + $0x168] sm:$0xff]  }
 0x108   : > { %v590_v7 = vsel %vm426_vm1, %v585_v25, %v589_v1  ;;  %v593_v20 = vor.u32 %v6794_v14, %v589_v1  ;;  %v1159_v25 = vrot.slane %v6418_v24, 1  ;;  %v1161_v1 = vrot.slane %v6430_v40, 1 }
 0x10a   : > { %v598_v3 = vsel %vm426_vm1, %v593_v20, %v597_v47  ;;  %v1162_v20 = vsel %vm1157_vm2, %v1159_v25, %v1161_v1  ;;  %v5971_v47 = vld [vmem:[#allocation5 + $0x130] sm:$0xff]  }
 0x10c   : > { %4947 = vmatmul.mubr.bf16.gmra.mxu0 %v582_v37  ;;  %5047 = vmatmul.mubr.bf16.gmra.mxu1 %v6734_v45  ;;  %v1158_v37 = vrot.slane %v6414_v22, 1  ;;  %v1163_v22 = vrot.slane %v6446_v51, 1 }
 0x10d   : > { %4950 = vmatprep.mubr.msk.bf16.mxu0 %vm6219_vm0, %v8411_v0  ;;  %5050 = vmatprep.mubr.msk.bf16.mxu1 %vm6219_vm0, %v8411_v0 }
 0x114   : > { %4951 = vmatmul.mubr.bf16.gmra.mxu0 %v590_v7  ;;  %5051 = vmatmul.mubr.bf16.gmra.mxu1 %v6752_v61  ;;  %v1160_v7 = vsel %vm1157_vm2, %v1158_v37, %v1159_v25  ;;  %v5972_v37 = vld [vmem:[#allocation5 + $0x128] sm:$0xff]   ;;  %v5973_v25 = vld [vmem:[#allocation5 + $0x120] sm:$0xff]  }
 0x115   : > { %4954 = vmatprep.mubr.msk.bf16.mxu0 %vm6219_vm0, %v8411_v0  ;;  %5054 = vmatprep.mubr.msk.bf16.mxu1 %vm6219_vm0, %v8411_v0 }
 0x11c   : > { %4955 = vmatmul.mubr.bf16.gmra.mxu0 %v598_v3  ;;  %5055 = vmatmul.mubr.bf16.gmra.mxu1 %v6770_v38  ;;  %v1164_v3 = vsel %vm1157_vm2, %v1161_v1, %v1163_v22 }
 0x11d   : > { %5074 = vmatprep.mubr.msk.bf16.mxu0 %vm6219_vm0, %v8411_v0  ;;  %5174 = vmatprep.mubr.msk.bf16.mxu1 %vm6219_vm0, %v8411_v0 }
 0x124   : > { %5075 = vmatmul.mubr.bf16.vlgmr.msra.gmra.mxu0 %v1160_v7  ;;  %5175 = vmatmul.mubr.bf16.vlgmr.msra.gmra.mxu1 %v1162_v20  ;;  %v5977_v7 = vld [vmem:[#allocation5 + $0x178] sm:$0xff]  }
 0x125   : > { %5259 = vmatpush3.bf16.msra.mxu0 %v5970_v41  ;;  %5078 = vmatprep.mubr.msk.bf16.mxu0 %vm6219_vm0, %v8411_v0  ;;  %v1165_v41 = vrot.slane %v6468_v63, 1 }
 0x126   : > { %5178 = vmatprep.mubr.msk.bf16.mxu1 %vm6219_vm0, %v8411_v0  ;;  %5260 = vmatprep.subr.bf16.mxu0 %v8411_v0 }
 0x127   : > { %5359 = vmatpush3.bf16.msra.mxu1 %v5977_v7  ;;  %v1166_v1 = vsel %vm1157_vm2, %v1163_v22, %v1165_v41  ;;  %v5975_v7 = vld [vmem:[#allocation5 + $0x110] sm:$0xff]  }
 0x128   : > { %5360 = vmatprep.subr.bf16.mxu1 %v8411_v0 }
 0x129   : > { %5261 = vmatpush3.bf16.msra.mxu0 %v5971_v47  ;;  %v5978_v47 = vld [vmem:[#allocation5 + $0x170] sm:$0xff]  }
 0x12a   : > { %5262 = vmatprep.subr.bf16.mxu0 %v8411_v0 }
 0x12b   : > { %5361 = vmatpush3.bf16.msra.mxu1 %v5978_v47 }
 0x12c   : > { %5079 = vmatmul.mubr.bf16.gmra.mxu0 %v1162_v20  ;;  %5179 = vmatmul.mubr.bf16.gmra.mxu1 %v1164_v3  ;;  %v5974_v20 = vld [vmem:[#allocation5 + $0x118] sm:$0xff]  }
 0x12d   : > { %5082 = vmatprep.mubr.msk.bf16.mxu0 %vm6219_vm0, %v8411_v0  ;;  %5182 = vmatprep.mubr.msk.bf16.mxu1 %vm6219_vm0, %v8411_v0 }
 0x12e   : > { %5263 = vmatpush3.bf16.msra.mxu0 %v5972_v37  ;;  %v1167_v37 = vrot.slane %v6492_v16, 1  ;;  %5362 = vmatprep.subr.bf16.mxu1 %v8411_v0 }
 0x12f   : > { %5264 = vmatprep.subr.bf16.mxu0 %v8411_v0  ;;  %5363 = vmatpush3.bf16.msra.mxu1 %v5979_v13 }
 0x130   : > { %5364 = vmatprep.subr.bf16.mxu1 %v8411_v0  ;;  %v1168_v22 = vsel %vm1157_vm2, %v1165_v41, %v1167_v37  ;;  %v1169_v41 = vrot.slane %v6509_v33, 1 }
 0x132   : > { %5265 = vmatpush3.bf16.msra.mxu0 %v5973_v25  ;;  %v5981_v25 = vld [vmem:[#allocation5 + $0x160] sm:$0xff]  }
 0x133   : > { %5266 = vmatprep.subr.bf16.mxu0 %v8411_v0  ;;  %5365 = vmatpush3.bf16.msra.mxu1 %v5981_v25 }
 0x134   : > { %5083 = vmatmul.mubr.bf16.gmra.mxu0 %v1164_v3  ;;  %5183 = vmatmul.mubr.bf16.gmra.mxu1 %v1166_v1  ;;  %v5976_v3 = vld [vmem:[#allocation5 + $0x108] sm:$0xff]  }
 0x135   : > { %5086 = vmatprep.mubr.msk.bf16.mxu0 %vm6219_vm0, %v8411_v0  ;;  %5186 = vmatprep.mubr.msk.bf16.mxu1 %vm6219_vm0, %v8411_v0 }
 0x136   : > { %5267 = vmatpush3.bf16.msra.mxu0 %v5974_v20  ;;  %5366 = vmatprep.subr.bf16.mxu1 %v8411_v0 }
 0x137   : > { %5268 = vmatprep.subr.bf16.mxu0 %v8411_v0  ;;  %5367 = vmatpush3.bf16.msra.mxu1 %v5982_v23 }
 0x138   : > { %5368 = vmatprep.subr.bf16.mxu1 %v8411_v0 }
 0x13a   : > { %5269 = vmatpush3.bf16.msra.mxu0 %v5975_v7  ;;  %v5980_v7 = vld [vmem:[#allocation5 + $0x100] sm:$0xff]  }
 0x13b   : > { %5270 = vmatprep.subr.bf16.mxu0 %v8411_v0  ;;  %5369 = vmatpush3.bf16.msra.mxu1 %v5983_v50 }
 0x13c   : > { %v702_v47 = vpop.f32.mrf.mxu0  ;;  %5087 = vmatmul.mubr.bf16.gmra.mxu0 %v1166_v1  ;;  %v951_v20 = vpop.f32.mrf.mxu1  ;;  %5187 = vmatmul.mubr.bf16.gmra.mxu1 %v1168_v22 }
 0x13d   : > { %5090 = vmatprep.mubr.msk.bf16.mxu0 %vm6219_vm0, %v8411_v0  ;;  %v6846_v14 = vadd.f32 %v951_v20, %v702_v47  ;;  %5190 = vmatprep.mubr.msk.bf16.mxu1 %vm6219_vm0, %v8411_v0 }
 0x13e   : > { %v4876_v13 = vpop.f32.mrf.mxu0  ;;  %5271 = vmatpush3.bf16.msra.mxu0 %v5976_v3  ;;  %v4976_v21 = vpop.f32.mrf.mxu1  ;;  %5370 = vmatprep.subr.bf16.mxu1 %v8411_v0 }
 0x13f   : > { %5272 = vmatprep.subr.bf16.mxu0 %v8411_v0  ;;  %v1170_v13 = vsel %vm1157_vm2, %v1167_v37, %v1169_v41  ;;  %v1171_v37 = vrot.slane %v6519_v43, 1 }
 0x140   : > { %v705_v1 = vpop.f32.mrf.mxu0  ;;  %v954_v25 = vpop.f32.mrf.mxu1 }
 0x141   : > { %v6854_v47 = vadd.f32 %v954_v25, %v705_v1 }
 0x142   : > { %v4877_v20 = vpop.f32.mrf.mxu0  ;;  %5273 = vmatpush3.bf16.msra.mxu0 %v5980_v7  ;;  %v4977_v3 = vpop.f32.mrf.mxu1  ;;  %v5984_v7 = vld [vmem:[#allocation5 + $0x148] sm:$0xff]  }
 0x143   : > { %5458 = vmatprep.subr.bf16.mxu0 %v8411_v0  ;;  %5371 = vmatpush3.bf16.msra.mxu1 %v5984_v7 }
 0x144   : > { %v710_v21 = vpop.f32.mrf.mxu0  ;;  %5091 = vmatmul.mubr.bf16.gmra.mxu0 %v1168_v22  ;;  %v959_v56 = vpop.f32.mrf.mxu1  ;;  %5191 = vmatmul.mubr.bf16.gmra.mxu1 %v1170_v13 }
 0x145   : > { %5094 = vmatprep.mubr.msk.bf16.mxu0 %vm6219_vm0, %v8411_v0  ;;  %v6860_v23 = vadd.f32 %v959_v56, %v710_v21  ;;  %5194 = vmatprep.mubr.msk.bf16.mxu1 %vm6219_vm0, %v8411_v0  ;;  %v1172_v56 = vsel %vm1157_vm2, %v1169_v41, %v1171_v37  ;;  %v5985_v21 = vld [vmem:[#allocation5 + $0x140] sm:$0xff]  }
 0x146   : > { %v4880_v1 = vpop.f32.mrf.mxu0  ;;  %v4980_v25 = vpop.f32.mrf.mxu1  ;;  %5372 = vmatprep.subr.bf16.mxu1 %v8411_v0 }
 0x147   : > { %5373 = vmatpush3.bf16.msra.mxu1 %v5985_v21 }
 0x148   : > { %v713_v20 = vpop.f32.mrf.mxu0  ;;  %v962_v50 = vpop.f32.mrf.mxu1  ;;  %5558 = vmatprep.subr.bf16.mxu1 %v8411_v0 }
 0x149   : > { %v6867_v22 = vadd.f32 %v962_v50, %v713_v20  ;;  %v1173_v20 = vrot.slane %v6540_v60, 1 }
 0x14a   : > { %v4881_v3 = vpop.f32.mrf.mxu0  ;;  %v4981_v1 = vpop.f32.mrf.mxu1 }
 0x14b   : > { %v1174_v1 = vsel %vm1157_vm2, %v1171_v37, %v1173_v20 }
 0x14c   : > { %v718_v17 = vpop.f32.mrf.mxu0  ;;  %5095 = vmatmul.mubr.bf16.gmra.mxu0 %v1170_v13  ;;  %v967_v29 = vpop.f32.mrf.mxu1  ;;  %5195 = vmatmul.mubr.bf16.gmra.mxu1 %v1172_v56 }
 0x14d   : > { %5098 = vmatprep.mubr.msk.bf16.mxu0 %vm6219_vm0, %v8411_v0  ;;  %v6872_v25 = vadd.f32 %v967_v29, %v718_v17  ;;  %5198 = vmatprep.mubr.msk.bf16.mxu1 %vm6219_vm0, %v8411_v0 }
 0x14e   : > { %v4884_v7 = vpop.f32.mrf.mxu0  ;;  %v4984_v41 = vpop.f32.mrf.mxu1 }
 0x14f   : > { %v1175_v41 = vrot.slane %v6571_v15, 1 }
 0x150   : > { %v721_v50 = vpop.f32.mrf.mxu0  ;;  %v970_v3 = vpop.f32.mrf.mxu1 }
 0x151   : > { %v6878_v13 = vadd.f32 %v970_v3, %v721_v50 }
 0x152   : > { %v4885_v21 = vpop.f32.mrf.mxu0  ;;  %v4985_v52 = vpop.f32.mrf.mxu1 }
 0x154   : > { %v726_v11 = vpop.f32.mrf.mxu0  ;;  %5099 = vmatmul.mubr.bf16.gmra.mxu0 %v1172_v56  ;;  %v975_v29 = vpop.f32.mrf.mxu1  ;;  %5199 = vmatmul.mubr.bf16.gmra.mxu1 %v1174_v1  ;;  %v1176_v56 = vsel %vm1157_vm2, %v1173_v20, %v1175_v41 }
 0x155   : > { %5102 = vmatprep.mubr.msk.bf16.mxu0 %vm6219_vm0, %v8411_v0  ;;  %v6883_v17 = vadd.f32 %v975_v29, %v726_v11  ;;  %5202 = vmatprep.mubr.msk.bf16.mxu1 %vm6219_vm0, %v8411_v0 }
 0x156   : > { %v4888_v7 = vpop.f32.mrf.mxu0  ;;  %v4988_v50 = vpop.f32.mrf.mxu1 }
 0x157   : > { %v1177_v7 = vrot.slane %v6591_v28, 1 }
 0x158   : > { %v729_v3 = vpop.f32.mrf.mxu0  ;;  %v978_v21 = vpop.f32.mrf.mxu1 }
 0x159   : > { %v6888_v37 = vadd.f32 %v978_v21, %v729_v3 }
 0x15a   : > { %v4889_v52 = vpop.f32.mrf.mxu0  ;;  %v4989_v27 = vpop.f32.mrf.mxu1 }
 0x15c   : > { %v734_v55 = vpop.f32.mrf.mxu0  ;;  %5103 = vmatmul.mubr.bf16.gmra.mxu0 %v1174_v1  ;;  %v983_v10 = vpop.f32.mrf.mxu1  ;;  %5203 = vmatmul.mubr.bf16.gmra.mxu1 %v1176_v56  ;;  %v1178_v1 = vsel %vm1157_vm2, %v1175_v41, %v1177_v7 }
 0x15d   : > { %5106 = vmatprep.mubr.msk.bf16.mxu0 %vm6219_vm0, %v8411_v0  ;;  %v6893_v11 = vadd.f32 %v983_v10, %v734_v55  ;;  %5206 = vmatprep.mubr.msk.bf16.mxu1 %vm6219_vm0, %v8411_v0 }
 0x15e   : > { %v4892_v29 = vpop.f32.mrf.mxu0  ;;  %v4992_v50 = vpop.f32.mrf.mxu1 }
 0x15f   : > { %v1179_v29 = vrot.slane %v6608_v44, 1 }
 0x160   : > { %v737_v3 = vpop.f32.mrf.mxu0  ;;  %v986_v21 = vpop.f32.mrf.mxu1 }
 0x161   : > { %v6898_v20 = vadd.f32 %v986_v21, %v737_v3 }
 0x162   : > { %v4893_v27 = vpop.f32.mrf.mxu0  ;;  %v4993_v52 = vpop.f32.mrf.mxu1 }
 0x163   : > { %8493 = vst [vmem:[#allocation56_spill] sm:$0xff] %v6898_v20 }
 0x164   : > { %v742_v36 = vpop.f32.mrf.mxu0  ;;  %5107 = vmatmul.mubr.bf16.gmra.mxu0 %v1176_v56  ;;  %v991_v53 = vpop.f32.mrf.mxu1  ;;  %5207 = vmatmul.mubr.bf16.gmra.mxu1 %v1178_v1  ;;  %v1180_v56 = vsel %vm1157_vm2, %v1177_v7, %v1179_v29 }
 0x165   : > { %5110 = vmatprep.mubr.msk.bf16.mxu0 %vm6219_vm0, %v8411_v0  ;;  %v6903_v55 = vadd.f32 %v991_v53, %v742_v36  ;;  %5210 = vmatprep.mubr.msk.bf16.mxu1 %vm6219_vm0, %v8411_v0 }
 0x166   : > { %v4896_v10 = vpop.f32.mrf.mxu0  ;;  %v4996_v50 = vpop.f32.mrf.mxu1 }
 0x167   : > { %v1181_v10 = vrot.slane %v6626_v2, 1 }
 0x168   : > { %v745_v3 = vpop.f32.mrf.mxu0  ;;  %v994_v21 = vpop.f32.mrf.mxu1 }
 0x169   : > { %v6908_v41 = vadd.f32 %v994_v21, %v745_v3 }
 0x16a   : > { %v4897_v27 = vpop.f32.mrf.mxu0  ;;  %v4997_v52 = vpop.f32.mrf.mxu1 }
 0x16b   : > { %8494 = vst [vmem:[#allocation57_spill] sm:$0xff] %v6908_v41 }
 0x16c   : > { %v750_v20 = vpop.f32.mrf.mxu0  ;;  %5111 = vmatmul.mubr.bf16.gmra.mxu0 %v1178_v1  ;;  %v999_v28 = vpop.f32.mrf.mxu1  ;;  %5211 = vmatmul.mubr.bf16.gmra.mxu1 %v1180_v56  ;;  %v1182_v1 = vsel %vm1157_vm2, %v1179_v29, %v1181_v10 }
 0x16d   : > { %5114 = vmatprep.mubr.msk.bf16.mxu0 %vm6219_vm0, %v8411_v0  ;;  %v6913_v36 = vadd.f32 %v999_v28, %v750_v20  ;;  %5214 = vmatprep.mubr.msk.bf16.mxu1 %vm6219_vm0, %v8411_v0 }
 0x16e   : > { %v4900_v53 = vpop.f32.mrf.mxu0  ;;  %v5000_v50 = vpop.f32.mrf.mxu1 }
 0x16f   : > { %v1183_v53 = vrot.slane %v6644_v18, 1 }
 0x170   : > { %v753_v3 = vpop.f32.mrf.mxu0  ;;  %v1002_v21 = vpop.f32.mrf.mxu1 }
 0x171   : > { %v6918_v7 = vadd.f32 %v1002_v21, %v753_v3 }
 0x172   : > { %v4901_v27 = vpop.f32.mrf.mxu0  ;;  %v5001_v52 = vpop.f32.mrf.mxu1 }
 0x173   : > { %8495 = vst [vmem:[#allocation58_spill] sm:$0xff] %v6918_v7 }
 0x174   : > { %v758_v41 = vpop.f32.mrf.mxu0  ;;  %5115 = vmatmul.mubr.bf16.gmra.mxu0 %v1180_v56  ;;  %v1007_v44 = vpop.f32.mrf.mxu1  ;;  %5215 = vmatmul.mubr.bf16.gmra.mxu1 %v1182_v1  ;;  %v1184_v56 = vsel %vm1157_vm2, %v1181_v10, %v1183_v53 }
 0x175   : > { %5118 = vmatprep.mubr.msk.bf16.mxu0 %vm6219_vm0, %v8411_v0  ;;  %v6923_v28 = vadd.f32 %v1007_v44, %v758_v41  ;;  %5218 = vmatprep.mubr.msk.bf16.mxu1 %vm6219_vm0, %v8411_v0 }
 0x176   : > { %v4904_v20 = vpop.f32.mrf.mxu0  ;;  %v5004_v50 = vpop.f32.mrf.mxu1 }
 0x177   : > { %v1185_v20 = vrot.slane %v6662_v39, 1 }
 0x178   : > { %v761_v3 = vpop.f32.mrf.mxu0  ;;  %v1010_v21 = vpop.f32.mrf.mxu1 }
 0x179   : > { %v6928_v29 = vadd.f32 %v1010_v21, %v761_v3 }
 0x17a   : > { %v4905_v27 = vpop.f32.mrf.mxu0  ;;  %v5005_v52 = vpop.f32.mrf.mxu1 }
 0x17b   : > { %8496 = vst [vmem:[#allocation59_spill] sm:$0xff] %v6928_v29 }
 0x17c   : > { %v766_v7 = vpop.f32.mrf.mxu0  ;;  %5119 = vmatmul.mubr.bf16.gmra.mxu0 %v1182_v1  ;;  %v1015_v2 = vpop.f32.mrf.mxu1  ;;  %5219 = vmatmul.mubr.bf16.gmra.mxu1 %v1184_v56  ;;  %v1186_v1 = vsel %vm1157_vm2, %v1183_v53, %v1185_v20 }
 0x17d   : > { %5122 = vmatprep.mubr.msk.bf16.mxu0 %vm6219_vm0, %v8411_v0  ;;  %v6933_v44 = vadd.f32 %v1015_v2, %v766_v7  ;;  %5222 = vmatprep.mubr.msk.bf16.mxu1 %vm6219_vm0, %v8411_v0 }
 0x17e   : > { %v4908_v41 = vpop.f32.mrf.mxu0  ;;  %v5008_v50 = vpop.f32.mrf.mxu1 }
 0x17f   : > { %v1187_v41 = vrot.slane %v6680_v4, 1 }
 0x180   : > { %v769_v3 = vpop.f32.mrf.mxu0  ;;  %v1018_v21 = vpop.f32.mrf.mxu1 }
 0x181   : > { %v6938_v10 = vadd.f32 %v1018_v21, %v769_v3 }
 0x182   : > { %v4909_v27 = vpop.f32.mrf.mxu0  ;;  %v5009_v52 = vpop.f32.mrf.mxu1 }
 0x183   : > { %8497 = vst [vmem:[#allocation60_spill] sm:$0xff] %v6938_v10 }
 0x184   : > { %v774_v29 = vpop.f32.mrf.mxu0  ;;  %5123 = vmatmul.mubr.bf16.gmra.mxu0 %v1184_v56  ;;  %v1023_v18 = vpop.f32.mrf.mxu1  ;;  %5223 = vmatmul.mubr.bf16.gmra.mxu1 %v1186_v1  ;;  %v1188_v56 = vsel %vm1157_vm2, %v1185_v20, %v1187_v41 }
 0x185   : > { %5126 = vmatprep.mubr.msk.bf16.mxu0 %vm6219_vm0, %v8411_v0  ;;  %v6943_v2 = vadd.f32 %v1023_v18, %v774_v29  ;;  %5226 = vmatprep.mubr.msk.bf16.mxu1 %vm6219_vm0, %v8411_v0 }
 0x186   : > { %v4912_v7 = vpop.f32.mrf.mxu0  ;;  %v5012_v50 = vpop.f32.mrf.mxu1 }
 0x187   : > { %v1189_v7 = vrot.slane %v6698_v32, 1 }
 0x188   : > { %v777_v3 = vpop.f32.mrf.mxu0  ;;  %v1026_v21 = vpop.f32.mrf.mxu1 }
 0x189   : > { %v6948_v53 = vadd.f32 %v1026_v21, %v777_v3 }
 0x18a   : > { %v4913_v27 = vpop.f32.mrf.mxu0  ;;  %v5013_v52 = vpop.f32.mrf.mxu1 }
 0x18b   : > { %8498 = vst [vmem:[#allocation61_spill] sm:$0xff] %v6948_v53 }
 0x18c   : > { %v782_v10 = vpop.f32.mrf.mxu0  ;;  %5127 = vmatmul.mubr.bf16.gmra.mxu0 %v1186_v1  ;;  %v1031_v39 = vpop.f32.mrf.mxu1  ;;  %5227 = vmatmul.mubr.bf16.gmra.mxu1 %v1188_v56  ;;  %v1190_v1 = vsel %vm1157_vm2, %v1187_v41, %v1189_v7 }
 0x18d   : > { %5130 = vmatprep.mubr.msk.bf16.mxu0 %vm6219_vm0, %v8411_v0  ;;  %v6953_v18 = vadd.f32 %v1031_v39, %v782_v10  ;;  %5230 = vmatprep.mubr.msk.bf16.mxu1 %vm6219_vm0, %v8411_v0 }
 0x18e   : > { %v4916_v29 = vpop.f32.mrf.mxu0  ;;  %v5016_v50 = vpop.f32.mrf.mxu1 }
 0x18f   : > { %v1191_v29 = vrot.slane %v6716_v6, 1 }
 0x190   : > { %v785_v3 = vpop.f32.mrf.mxu0  ;;  %v1034_v21 = vpop.f32.mrf.mxu1 }
 0x191   : > { %v6958_v20 = vadd.f32 %v1034_v21, %v785_v3 }
 0x192   : > { %v4917_v27 = vpop.f32.mrf.mxu0  ;;  %v5017_v52 = vpop.f32.mrf.mxu1 }
 0x193   : > { %8499 = vst [vmem:[#allocation62_spill] sm:$0xff] %v6958_v20 }
 0x194   : > { %v790_v53 = vpop.f32.mrf.mxu0  ;;  %5131 = vmatmul.mubr.bf16.gmra.mxu0 %v1188_v56  ;;  %v1039_v4 = vpop.f32.mrf.mxu1  ;;  %5231 = vmatmul.mubr.bf16.gmra.mxu1 %v1190_v1  ;;  %v1192_v56 = vsel %vm1157_vm2, %v1189_v7, %v1191_v29 }
 0x195   : > { %5134 = vmatprep.mubr.msk.bf16.mxu0 %vm6219_vm0, %v8411_v0  ;;  %v6963_v39 = vadd.f32 %v1039_v4, %v790_v53  ;;  %5234 = vmatprep.mubr.msk.bf16.mxu1 %vm6219_vm0, %v8411_v0 }
 0x196   : > { %v4920_v10 = vpop.f32.mrf.mxu0  ;;  %v5020_v50 = vpop.f32.mrf.mxu1 }
 0x197   : > { %v1193_v10 = vrot.slane %v6734_v45, 1 }
 0x198   : > { %v793_v3 = vpop.f32.mrf.mxu0  ;;  %v1042_v21 = vpop.f32.mrf.mxu1 }
 0x199   : > { %v6968_v41 = vadd.f32 %v1042_v21, %v793_v3 }
 0x19a   : > { %v4921_v27 = vpop.f32.mrf.mxu0  ;;  %v5021_v52 = vpop.f32.mrf.mxu1 }
 0x19b   : > { %8500 = vst [vmem:[#allocation63_spill] sm:$0xff] %v6968_v41 }
 0x19c   : > { %v798_v20 = vpop.f32.mrf.mxu0  ;;  %5135 = vmatmul.mubr.bf16.gmra.mxu0 %v1190_v1  ;;  %v1047_v32 = vpop.f32.mrf.mxu1  ;;  %5235 = vmatmul.mubr.bf16.gmra.mxu1 %v1192_v56  ;;  %v1194_v1 = vsel %vm1157_vm2, %v1191_v29, %v1193_v10 }
 0x19d   : > { %5138 = vmatprep.mubr.msk.bf16.mxu0 %vm6219_vm0, %v8411_v0  ;;  %v6973_v4 = vadd.f32 %v1047_v32, %v798_v20  ;;  %5238 = vmatprep.mubr.msk.bf16.mxu1 %vm6219_vm0, %v8411_v0 }
 0x19e   : > { %v4924_v53 = vpop.f32.mrf.mxu0  ;;  %v5024_v50 = vpop.f32.mrf.mxu1 }
 0x19f   : > { %v1195_v53 = vrot.slane %v6752_v61, 1  ;;  %v317_v61 = vld [vmem:[%s6384_s7 + $0x160] sm:$0xff] }
 0x1a0   : > { %v801_v3 = vpop.f32.mrf.mxu0  ;;  %v1050_v21 = vpop.f32.mrf.mxu1 }
 0x1a1   : > { %v6978_v7 = vadd.f32 %v1050_v21, %v801_v3 }
 0x1a2   : > { %v4925_v27 = vpop.f32.mrf.mxu0  ;;  %v5025_v52 = vpop.f32.mrf.mxu1 }
 0x1a3   : > { %8501 = vst [vmem:[#allocation64_spill] sm:$0xff] %v6978_v7 }
 0x1a4   : > { %v806_v41 = vpop.f32.mrf.mxu0  ;;  %5139 = vmatmul.mubr.bf16.gmra.mxu0 %v1192_v56  ;;  %v1055_v6 = vpop.f32.mrf.mxu1  ;;  %5239 = vmatmul.mubr.bf16.gmra.mxu1 %v1194_v1  ;;  %v1196_v56 = vsel %vm1157_vm2, %v1193_v10, %v1195_v53 }
 0x1a5   : > { %5142 = vmatprep.mubr.msk.bf16.mxu0 %vm6219_vm0, %v8411_v0  ;;  %v6983_v32 = vadd.f32 %v1055_v6, %v806_v41  ;;  %5242 = vmatprep.mubr.msk.bf16.mxu1 %vm6219_vm0, %v8411_v0 }
 0x1a6   : > { %v4928_v20 = vpop.f32.mrf.mxu0  ;;  %v5028_v50 = vpop.f32.mrf.mxu1 }
 0x1a7   : > { %8502 = vst [vmem:[#allocation65_spill] sm:$0xff] %v6983_v32  ;;  %v1197_v50 = vrot.slane %v6770_v38, 1  ;;  %v318_v32 = vld [vmem:[%s6384_s7 + $0x168] sm:$0xff] }
 0x1a8   : > { %v809_v3 = vpop.f32.mrf.mxu0  ;;  %v1058_v21 = vpop.f32.mrf.mxu1 }
 0x1a9   : > { %v6988_v29 = vadd.f32 %v1058_v21, %v809_v3 }
 0x1aa   : > { %v4929_v27 = vpop.f32.mrf.mxu0  ;;  %v5029_v52 = vpop.f32.mrf.mxu1 }
 0x1ab   : > { %8503 = vst [vmem:[#allocation66_spill] sm:$0xff] %v6988_v29  ;;  %v1198_v52 = vsel %vm1157_vm2, %v1195_v53, %v1197_v50  ;;  %v366_v53 = vmax.f32 %v318_v32, 0.0 }
 0x1ac   : > { %v814_v7 = vpop.f32.mrf.mxu0  ;;  %5143 = vmatmul.mubr.bf16.gmra.mxu0 %v1194_v1  ;;  %v1063_v6 = vpop.f32.mrf.mxu1  ;;  %5243 = vmatmul.mubr.bf16.gmra.mxu1 %v1196_v56 }
 0x1ad   : > { %5146 = vmatprep.mubr.msk.bf16.mxu0 %vm6219_vm0, %v8411_v0  ;;  %v6993_v41 = vadd.f32 %v1063_v6, %v814_v7  ;;  %5246 = vmatprep.mubr.msk.bf16.mxu1 %vm6219_vm0, %v8411_v0 }
 0x1ae   : > { %v4932_v20 = vpop.f32.mrf.mxu0  ;;  %v5032_v3 = vpop.f32.mrf.mxu1 }
 0x1af   : > { %8504 = vst [vmem:[#allocation67_spill] sm:$0xff] %v6993_v41  ;;  %v1199_v3 = vrot.slane %v6788_v42, 1 }
 0x1b0   : > { %v817_v10 = vpop.f32.mrf.mxu0  ;;  %v1066_v21 = vpop.f32.mrf.mxu1 }
 0x1b1   : > { %v6998_v27 = vadd.f32 %v1066_v21, %v817_v10  ;;  %v365_v10 = vmax.f32 %v317_v61, 0.0  ;;  %v1200_v38 = vsel %vm1157_vm2, %v1197_v50, %v1199_v3 }
 0x1b2   : > { %v4933_v1 = vpop.f32.mrf.mxu0  ;;  %v5033_v29 = vpop.f32.mrf.mxu1 }
 0x1b3   : > { %8505 = vst [vmem:[#allocation68_spill] sm:$0xff] %v6998_v27  ;;  %v7013_v41 = vpack.c.bf16 %v366_v53, %v365_v10  ;;  %v1846_v53 = vrot.slane %v6457_v57, 1 }
 0x1b4   : > { %v822_v45 = vpop.f32.mrf.mxu0  ;;  %5147 = vmatmul.mubr.bf16.gmra.mxu0 %v1196_v56  ;;  %v1071_v7 = vpop.f32.mrf.mxu1  ;;  %5247 = vmatmul.mubr.bf16.gmra.mxu1 %v1198_v52 }
 0x1b5   : > { %5150 = vmatprep.mubr.msk.bf16.mxu0 %vm6219_vm0, %v8411_v0  ;;  %v7005_v6 = vadd.f32 %v1071_v7, %v822_v45  ;;  %5250 = vmatprep.mubr.msk.bf16.mxu1 %vm6219_vm0, %v8411_v0 }
 0x1b6   : > { %v4936_v20 = vpop.f32.mrf.mxu0  ;;  %v5036_v29 = vpop.f32.mrf.mxu1 }
 0x1b7   : > { %v1531_v29 = vrot.slane %v7013_v41, 1 }
 0x1b8   : > { %v825_v21 = vpop.f32.mrf.mxu0  ;;  %v1074_v1 = vpop.f32.mrf.mxu1 }
 0x1b9   : > { %v7010_v27 = vadd.f32 %v1074_v1, %v825_v21 }
 0x1ba   : > { %v4937_v56 = vpop.f32.mrf.mxu0  ;;  %v5037_v45 = vpop.f32.mrf.mxu1 }
 0x1bb   : > { %8506 = vst [vmem:[#allocation69_spill] sm:$0xff] %v7010_v27  ;;  %v1532_v45 = vsel %vm1157_vm2, %v1199_v3, %v1531_v29  ;;  %v2268_v3 = vrot.slane %v6430_v40, 2 }
 0x1bc   : > { %v830_v7 = vpop.f32.mrf.mxu0  ;;  %5151 = vmatmul.mubr.bf16.gmra.mxu0 %v1198_v52  ;;  %v1079_v20 = vpop.f32.mrf.mxu1  ;;  %5251 = vmatmul.mubr.bf16.gmra.mxu1 %v1200_v38  ;;  %v1847_v52 = vrot.slane %v6440_v46, 2 }
 0x1bd   : > { %5154 = vmatprep.mubr.msk.bf16.mxu0 %vm6219_vm0, %v8411_v0  ;;  %v7017_v61 = vadd.f32 %v1079_v20, %v830_v7  ;;  %5254 = vmatprep.mubr.msk.bf16.mxu1 %vm6219_vm0, %v8411_v0 }
 0x1be   : > { %v4940_v32 = vpop.f32.mrf.mxu0  ;;  %v5040_v21 = vpop.f32.mrf.mxu1 }
 0x1bf   : > { %8507 = vst [vmem:[#allocation70_spill] sm:$0xff] %v7017_v61  ;;  %v1848_v21 = vor.u32 %v1847_v52, %v1846_v53  ;;  %v5986_v52 = vld [vmem:[#allocation5 + $0x1b8] sm:$0xff]  }
 0x1c0   : > { %v833_v50 = vpop.f32.mrf.mxu0  ;;  %v1082_v10 = vpop.f32.mrf.mxu1 }
 0x1c1   : > { %v7024_v1 = vadd.f32 %v1082_v10, %v833_v50  ;;  %v2267_v50 = vrot.slane %v6418_v24, 2 }
 0x1c2   : > { %v4941_v56 = vpop.f32.mrf.mxu0  ;;  %v5041_v7 = vpop.f32.mrf.mxu1 }
 0x1c3   : > { %v8509_v56 = vor.u32 %v6426_v34, %v6428_v35  ;;  %v2269_v24 = vsel %vm2266_vm4, %v2267_v50, %v2268_v3  ;;  %v5987_v34 = vld [vmem:[#allocation5 + $0x1b0] sm:$0xff]  }
 0x1c4   : > { %v838_v20 = vpop.f32.mrf.mxu0  ;;  %5155 = vmatmul.mubr.bf16.gmra.mxu0 %v1200_v38  ;;  %v1087_v32 = vpop.f32.mrf.mxu1  ;;  %5255 = vmatmul.mubr.bf16.gmra.mxu1 %v1532_v45  ;;  %v1851_v45 = vrot.slane %v6460_v58, 2 }
 0x1c5   : > { %5274 = vmatprep.mubr.msk.bf16.mxu0 %vm6219_vm0, %v8411_v0  ;;  %v7029_v61 = vadd.f32 %v1087_v32, %v838_v20  ;;  %5374 = vmatprep.mubr.msk.bf16.mxu1 %vm6219_vm0, %v8411_v0  ;;  %v1849_v53 = vsel %vm1842_vm3, %v8509_v56, %v1848_v21 }
 0x1c6   : > { %v4944_v27 = vpop.f32.mrf.mxu0  ;;  %v5044_v29 = vpop.f32.mrf.mxu1 }
 0x1c7   : > { %8508 = vst [vmem:[#allocation71_spill] sm:$0xff] %v7029_v61  ;;  %v1850_v27 = vrot.slane %v6478_v8, 1  ;;  %v8510_v61 = vmov 0.0  }
 0x1c8   : > { %v841_v38 = vpop.f32.mrf.mxu0  ;;  %v1090_v10 = vpop.f32.mrf.mxu1 }
 0x1c9   : > { %v7041_v7 = vadd.f32 %v1090_v10, %v841_v38  ;;  %v1852_v40 = vor.u32 %v1851_v45, %v1850_v27  ;;  %v2270_v38 = vrot.slane %v6446_v51, 2  ;;  %v1854_v27 = vrot.slane %v6500_v26, 1 }
 0x1ca   : > { %v4945_v20 = vpop.f32.mrf.mxu0  ;;  %v5045_v32 = vpop.f32.mrf.mxu1 }
 0x1cb   : > { %v5988_v32 = vld [vmem:[#allocation5 + $0x1a8] sm:$0xff]  }
 0x1cc   : > { %v846_v29 = vpop.f32.mrf.mxu0  ;;  %5275 = vmatmul.mubr.bf16.vlgmr.msra.gmra.mxu0 %v1849_v53  ;;  %v1095_v0 = vpop.f32.mrf.mxu1  ;;  %5375 = vmatmul.mubr.bf16.vlgmr.msra.gmra.mxu1 %v2269_v24  ;;  %v7058_v24 = vsel %vm2266_vm4, %v2268_v3, %v2270_v38  ;;  %v2272_v3 = vrot.slane %v6468_v63, 2 }
 0x1cd   : > { %5459 = vmatpush3.bf16.msra.mxu0 %v5986_v52  ;;  %v7044_v35 = vadd.f32 %v1095_v0, %v846_v29  ;;  %5278 = vmatprep.mubr.msk.bf16.mxu0 %vm6219_vm0, %v8510_v61  ;;  %v1853_v52 = vsel %vm1842_vm3, %v1848_v21, %v1852_v40  ;;  %v1855_v0 = vrot.slane %v6481_v9, 2 }
 0x1ce   : > { %v4948_v56 = vpop.f32.mrf.mxu0  ;;  %5378 = vmatprep.mubr.msk.bf16.mxu1 %vm6219_vm0, %v8510_v61  ;;  %v5048_v50 = vpop.f32.mrf.mxu1  ;;  %5460 = vmatprep.subr.bf16.mxu0 %v8510_v61 }
 0x1cf   : > { %v1856_v21 = vor.u32 %v1855_v0, %v1854_v27  ;;  %v1858_v27 = vrot.slane %v6525_v48, 1  ;;  %v1859_v0 = vrot.slane %v6507_v31, 2 }
 0x1d0   : > { %v849_v10 = vpop.f32.mrf.mxu0  ;;  %v1098_v53 = vpop.f32.mrf.mxu1 }
 0x1d1   : > { %5461 = vmatpush3.bf16.msra.mxu0 %v5987_v34  ;;  %v7055_v45 = vadd.f32 %v1098_v53, %v849_v10  ;;  %v5989_v53 = vld [vmem:[#allocation5 + $0x1a0] sm:$0xff]  }
 0x1d2   : > { %v4949_v20 = vpop.f32.mrf.mxu0  ;;  %5462 = vmatprep.subr.bf16.mxu0 %v8510_v61  ;;  %v5049_v29 = vpop.f32.mrf.mxu1 }
 0x1d3   : > { %8511 = vst [vmem:[#allocation72_spill] sm:$0xff] %v7055_v45  ;;  %v5993_v20 = vld [vmem:[#allocation5 + $0x1f8] sm:$0xff]   ;;  %v1857_v45 = vsel %vm1842_vm3, %v1852_v40, %v1856_v21 }
 0x1d4   : > { %v854_v56 = vpop.f32.mrf.mxu0  ;;  %5279 = vmatmul.mubr.bf16.gmra.mxu0 %v1853_v52  ;;  %v1103_v50 = vpop.f32.mrf.mxu1  ;;  %5379 = vmatmul.mubr.bf16.gmra.mxu1 %v7058_v24 }
 0x1d5   : > { %5282 = vmatprep.mubr.msk.bf16.mxu0 %vm6219_vm0, %v8510_v61  ;;  %v7064_v34 = vadd.f32 %v1103_v50, %v854_v56  ;;  %5382 = vmatprep.mubr.msk.bf16.mxu1 %vm6219_vm0, %v8510_v61 }
 0x1d6   : > { %v4952_v10 = vpop.f32.mrf.mxu0  ;;  %5463 = vmatpush3.bf16.msra.mxu0 %v5988_v32  ;;  %v5052_v29 = vpop.f32.mrf.mxu1  ;;  %5559 = vmatpush3.bf16.msra.mxu1 %v5993_v20  ;;  %v7077_v32 = vsel %vm2266_vm4, %v2270_v38, %v2272_v3 }
 0x1d7   : > { %5464 = vmatprep.subr.bf16.mxu0 %v8510_v61  ;;  %5560 = vmatprep.subr.bf16.mxu1 %v8510_v61  ;;  %v5990_v10 = vld [vmem:[#allocation5 + $0x198] sm:$0xff]   ;;  %v5994_v29 = vld [vmem:[#allocation5 + $0x1f0] sm:$0xff]  }
 0x1d8   : > { %v857_v52 = vpop.f32.mrf.mxu0  ;;  %v1106_v51 = vpop.f32.mrf.mxu1 }
 0x1d9   : > { %v7074_v56 = vadd.f32 %v1106_v51, %v857_v52  ;;  %v1860_v51 = vor.u32 %v1859_v0, %v1858_v27  ;;  %v1862_v0 = vrot.slane %v6532_v54, 1 }
 0x1da   : > { %v4953_v50 = vpop.f32.mrf.mxu0  ;;  %5465 = vmatpush3.bf16.msra.mxu0 %v5989_v53  ;;  %v5053_v63 = vpop.f32.mrf.mxu1  ;;  %5561 = vmatpush3.bf16.msra.mxu1 %v5994_v29  ;;  %v5991_v53 = vld [vmem:[#allocation5 + $0x190] sm:$0xff]  }
 0x1db   : > { %8512 = vst [vmem:[#allocation73_spill] sm:$0xff] %v7074_v56  ;;  %5466 = vmatprep.subr.bf16.mxu0 %v8510_v61  ;;  %v2274_v63 = vrot.slane %v6492_v16, 2  ;;  %v5995_v50 = vld [vmem:[#allocation5 + $0x1e8] sm:$0xff]   ;;  %5562 = vmatprep.subr.bf16.mxu1 %v8510_v61  ;;  %v1861_v27 = vsel %vm1842_vm3, %v1856_v21, %v1860_v51  ;;  %v5997_v16 = vld [vmem:[#allocation5 + $0x1e0] sm:$0xff]  }
 0x1dc   : > { %v862_v20 = vpop.f32.mrf.mxu0  ;;  %5283 = vmatmul.mubr.bf16.gmra.mxu0 %v1857_v45  ;;  %v1111_v40 = vpop.f32.mrf.mxu1  ;;  %5383 = vmatmul.mubr.bf16.gmra.mxu1 %v7077_v32 }
 0x1dd   : > { %5286 = vmatprep.mubr.msk.bf16.mxu0 %vm6219_vm0, %v8510_v61  ;;  %v7083_v52 = vadd.f32 %v1111_v40, %v862_v20  ;;  %5386 = vmatprep.mubr.msk.bf16.mxu1 %vm6219_vm0, %v8510_v61  ;;  %v1863_v20 = vrot.slane %v6528_v49, 2 }
 0x1de   : > { %v4956_v38 = vpop.f32.mrf.mxu0  ;;  %5467 = vmatpush3.bf16.msra.mxu0 %v5990_v10  ;;  %v5056_v45 = vpop.f32.mrf.mxu1  ;;  %5563 = vmatpush3.bf16.msra.mxu1 %v5995_v50 }
 0x1df   : > { %8513 = vst [vmem:[#allocation74_spill] sm:$0xff] %v7083_v52  ;;  %5468 = vmatprep.subr.bf16.mxu0 %v8510_v61  ;;  %5564 = vmatprep.subr.bf16.mxu1 %v8510_v61  ;;  %v7097_v38 = vsel %vm2266_vm4, %v2272_v3, %v2274_v63  ;;  %v5992_v45 = vld [vmem:[#allocation5 + $0x188] sm:$0xff]  }
 0x1e0   : > { %v865_v29 = vpop.f32.mrf.mxu0  ;;  %v1114_v56 = vpop.f32.mrf.mxu1 }
 0x1e1   : > { %v7094_v40 = vadd.f32 %v1114_v56, %v865_v29  ;;  %v1864_v56 = vor.u32 %v1863_v20, %v1862_v0  ;;  %v5998_v29 = vld [vmem:[#allocation5 + $0x1d8] sm:$0xff]  }
 0x1e2   : > { %v4957_v10 = vpop.f32.mrf.mxu0  ;;  %5469 = vmatpush3.bf16.msra.mxu0 %v5991_v53  ;;  %v5057_v52 = vpop.f32.mrf.mxu1  ;;  %5565 = vmatpush3.bf16.msra.mxu1 %v5997_v16  ;;  %v5996_v53 = vld [vmem:[#allocation5 + $0x180] sm:$0xff]  }
 0x1e3   : > { %5470 = vmatprep.subr.bf16.mxu0 %v8510_v61  ;;  %v2276_v52 = vrot.slane %v6509_v33, 2  ;;  %5566 = vmatprep.subr.bf16.mxu1 %v8510_v61  ;;  %v1865_v10 = vsel %vm1842_vm3, %v1860_v51, %v1864_v56 }
 0x1e4   : > { %v1304_v50 = vpop.f32.mrf.mxu0  ;;  %5287 = vmatmul.mubr.bf16.gmra.mxu0 %v1861_v27  ;;  %v1616_v49 = vpop.f32.mrf.mxu1  ;;  %5387 = vmatmul.mubr.bf16.gmra.mxu1 %v7097_v38 }
 0x1e5   : > { %v1471_v21 = vadd.f32 %v1304_v50, %v6846_v14  ;;  %5290 = vmatprep.mubr.msk.bf16.mxu0 %vm6219_vm0, %v8510_v61  ;;  %5390 = vmatprep.mubr.msk.bf16.mxu1 %vm6219_vm0, %v8510_v61  ;;  %v1866_v50 = vrot.slane %v6543_v62, 1 }
 0x1e6   : > { %v5076_v3 = vpop.f32.mrf.mxu0  ;;  %5471 = vmatpush3.bf16.msra.mxu0 %v5992_v45  ;;  %v5176_v16 = vpop.f32.mrf.mxu1  ;;  %5567 = vmatpush3.bf16.msra.mxu1 %v5998_v29  ;;  %v1867_v45 = vrot.slane %v6538_v59, 2 }
 0x1e7   : > { %v7107_v27 = vadd.f32 %v1616_v49, %v1471_v21  ;;  %5472 = vmatprep.subr.bf16.mxu0 %v8510_v61  ;;  %5568 = vmatprep.subr.bf16.mxu1 %v8510_v61  ;;  %v7117_v21 = vsel %vm2266_vm4, %v2274_v63, %v2276_v52  ;;  %v5999_v3 = vld [vmem:[#allocation5 + $0x1d0] sm:$0xff]  }
 0x1e8   : > { %v1307_v14 = vpop.f32.mrf.mxu0  ;;  %v1619_v20 = vpop.f32.mrf.mxu1  ;;  %v1868_v63 = vor.u32 %v1867_v45, %v1866_v50  ;;  %v1870_v50 = vrot.slane %v6562_v12, 1  ;;  %v1871_v45 = vrot.slane %v6554_v5, 2 }
 0x1e9   : > { %v1472_v0 = vadd.f32 %v1307_v14, %v6854_v47 }
 0x1ea   : > { %v5077_v49 = vpop.f32.mrf.mxu0  ;;  %5473 = vmatpush3.bf16.msra.mxu0 %v5996_v53  ;;  %v5177_v29 = vpop.f32.mrf.mxu1  ;;  %5569 = vmatpush3.bf16.msra.mxu1 %v5999_v3  ;;  %v2278_v53 = vrot.slane %v6519_v43, 2 }
 0x1eb   : > { %v7119_v16 = vadd.f32 %v1619_v20, %v1472_v0  ;;  %5658 = vmatprep.subr.bf16.mxu0 %v8510_v61  ;;  %5570 = vmatprep.subr.bf16.mxu1 %v8510_v61  ;;  %v6000_v0 = vld [vmem:[#allocation5 + $0x1c8] sm:$0xff]  }
 0x1ec   : > { %v1312_v47 = vpop.f32.mrf.mxu0  ;;  %5291 = vmatmul.mubr.bf16.gmra.mxu0 %v1865_v10  ;;  %v1624_v14 = vpop.f32.mrf.mxu1  ;;  %5391 = vmatmul.mubr.bf16.gmra.mxu1 %v7117_v21  ;;  %v7138_v43 = vsel %vm2266_vm4, %v2276_v52, %v2278_v53  ;;  %v2280_v52 = vrot.slane %v6540_v60, 2 }
 0x1ed   : > { %v1473_v51 = vadd.f32 %v1312_v47, %v6860_v23  ;;  %5294 = vmatprep.mubr.msk.bf16.mxu0 %vm6219_vm0, %v8510_v61  ;;  %5394 = vmatprep.mubr.msk.bf16.mxu1 %vm6219_vm0, %v8510_v61  ;;  %v1869_v47 = vsel %vm1842_vm3, %v1864_v56, %v1868_v63 }
 0x1ee   : > { %v5080_v49 = vpop.f32.mrf.mxu0  ;;  %v5180_v10 = vpop.f32.mrf.mxu1  ;;  %5571 = vmatpush3.bf16.msra.mxu1 %v6000_v0 }
 0x1ef   : > { %v7130_v20 = vadd.f32 %v1624_v14, %v1473_v51  ;;  %5572 = vmatprep.subr.bf16.mxu1 %v8510_v61  ;;  %v6001_v51 = vld [vmem:[#allocation5 + $0x1c0] sm:$0xff]  }
 0x1f0   : > { %v1315_v23 = vpop.f32.mrf.mxu0  ;;  %v1627_v29 = vpop.f32.mrf.mxu1 }
 0x1f1   : > { %v1474_v3 = vadd.f32 %v1315_v23, %v6867_v22  ;;  %v1872_v23 = vor.u32 %v1871_v45, %v1870_v50  ;;  %v1875_v50 = vrot.slane %v6576_v19, 2 }
 0x1f2   : > { %v5081_v49 = vpop.f32.mrf.mxu0  ;;  %v5181_v10 = vpop.f32.mrf.mxu1  ;;  %5573 = vmatpush3.bf16.msra.mxu1 %v6001_v51 }
 0x1f3   : > { %v7140_v14 = vadd.f32 %v1627_v29, %v1474_v3  ;;  %5758 = vmatprep.subr.bf16.mxu1 %v8510_v61  ;;  %v1873_v10 = vsel %vm1842_vm3, %v1868_v63, %v1872_v23 }
 0x1f4   : > { %v1320_v0 = vpop.f32.mrf.mxu0  ;;  %5295 = vmatmul.mubr.bf16.gmra.mxu0 %v1869_v47  ;;  %v1632_v56 = vpop.f32.mrf.mxu1  ;;  %5395 = vmatmul.mubr.bf16.gmra.mxu1 %v7138_v43 }
 0x1f5   : > { %v1475_v22 = vadd.f32 %v1320_v0, %v6872_v25  ;;  %5298 = vmatprep.mubr.msk.bf16.mxu0 %vm6219_vm0, %v8510_v61  ;;  %5398 = vmatprep.mubr.msk.bf16.mxu1 %vm6219_vm0, %v8510_v61  ;;  %v1874_v0 = vrot.slane %v6597_v30, 1 }
 0x1f6   : > { %v5084_v49 = vpop.f32.mrf.mxu0  ;;  %v5184_v29 = vpop.f32.mrf.mxu1 }
 0x1f7   : > { %v7150_v3 = vadd.f32 %v1632_v56, %v1475_v22  ;;  %v7157_v49 = vsel %vm2266_vm4, %v2278_v53, %v2280_v52  ;;  %v2282_v53 = vrot.slane %v6571_v15, 2 }
 0x1f8   : > { %v1323_v47 = vpop.f32.mrf.mxu0  ;;  %v1635_v51 = vpop.f32.mrf.mxu1 }
 0x1f9   : > { %8514 = vst [vmem:[#allocation75_spill] sm:$0xff] %v7150_v3  ;;  %v1476_v25 = vadd.f32 %v1323_v47, %v6878_v13  ;;  %v1876_v13 = vor.u32 %v1875_v50, %v1874_v0  ;;  %v7175_v50 = vsel %vm2266_vm4, %v2280_v52, %v2282_v53  ;;  %v8521_v52 = vld [vmem:[#allocation21_spill] sm:$0xff] }
 0x1fa   : > { %v5085_v45 = vpop.f32.mrf.mxu0  ;;  %v5185_v33 = vpop.f32.mrf.mxu1 }
 0x1fb   : > { %v7159_v60 = vadd.f32 %v1635_v51, %v1476_v25  ;;  %v8517_v45 = vld [vmem:[#allocation24_spill] sm:$0xff] }
 0x1fc   : > { %v1328_v22 = vpop.f32.mrf.mxu0  ;;  %5299 = vmatmul.mubr.bf16.gmra.mxu0 %v1873_v10  ;;  %v1640_v29 = vpop.f32.mrf.mxu1  ;;  %5399 = vmatmul.mubr.bf16.gmra.mxu1 %v7157_v49  ;;  %v1877_v10 = vsel %vm1842_vm3, %v1872_v23, %v1876_v13  ;;  %8519 = vst [vmem:[#allocation24_spill] sm:$0xff] %v7175_v50 }
 0x1fd   : > { %8515 = vst [vmem:[#allocation76_spill] sm:$0xff] %v7159_v60  ;;  %v1477_v56 = vadd.f32 %v1328_v22, %v6883_v17  ;;  %5302 = vmatprep.mubr.msk.bf16.mxu0 %vm6219_vm0, %v8510_v61  ;;  %5402 = vmatprep.mubr.msk.bf16.mxu1 %vm6219_vm0, %v8510_v61  ;;  %v1878_v22 = vrot.slane %v8517_v45, 1  ;;  %v8518_v60 = vld [vmem:[#allocation22_spill] sm:$0xff] }
 0x1fe   : > { %v5088_v63 = vpop.f32.mrf.mxu0  ;;  %v5188_v33 = vpop.f32.mrf.mxu1  ;;  %v1879_v3 = vrot.slane %v8518_v60, 2 }
 0x1ff   : > { %v7168_v47 = vadd.f32 %v1640_v29, %v1477_v56 }
 0x200   : > { %v1331_v25 = vpop.f32.mrf.mxu0  ;;  %v1643_v17 = vpop.f32.mrf.mxu1 }
 0x201   : > { %8516 = vst [vmem:[#allocation77_spill] sm:$0xff] %v7168_v47  ;;  %v1478_v51 = vadd.f32 %v1331_v25, %v6888_v37  ;;  %v1880_v37 = vor.u32 %v1879_v3, %v1878_v22  ;;  %v2284_v25 = vrot.slane %v8521_v52, 2 }
 0x202   : > { %v5089_v0 = vpop.f32.mrf.mxu0  ;;  %v5189_v15 = vpop.f32.mrf.mxu1 }
 0x203   : > { %v7177_v63 = vadd.f32 %v1643_v17, %v1478_v51  ;;  %v7193_v22 = vsel %vm2266_vm4, %v2282_v53, %v2284_v25  ;;  %v8528_v53 = vld [vmem:[#allocation23_spill] sm:$0xff] }
 0x204   : > { %v1336_v56 = vpop.f32.mrf.mxu0  ;;  %5303 = vmatmul.mubr.bf16.gmra.mxu0 %v1877_v10  ;;  %v1648_v33 = vpop.f32.mrf.mxu1  ;;  %5403 = vmatmul.mubr.bf16.gmra.mxu1 %v7175_v50  ;;  %v8523_v10 = vld [vmem:[#allocation56_spill] sm:$0xff]  ;;  %v8525_v50 = vld [vmem:[#allocation25_spill] sm:$0xff] }
 0x205   : > { %8520 = vst [vmem:[#allocation78_spill] sm:$0xff] %v7177_v63  ;;  %v1479_v29 = vadd.f32 %v1336_v56, %v6893_v11  ;;  %5306 = vmatprep.mubr.msk.bf16.mxu0 %vm6219_vm0, %v8510_v61  ;;  %5406 = vmatprep.mubr.msk.bf16.mxu1 %vm6219_vm0, %v8510_v61  ;;  %v1881_v56 = vsel %vm1842_vm3, %v1876_v13, %v1880_v37  ;;  %v8524_v63 = vld [vmem:[#allocation27_spill] sm:$0xff]  ;;  %v1883_v60 = vrot.slane %v8525_v50, 2  ;;  %8526 = vst [vmem:[#allocation56_spill] sm:$0xff] %v7193_v22 }
 0x206   : > { %v5092_v23 = vpop.f32.mrf.mxu0  ;;  %v5192_v15 = vpop.f32.mrf.mxu1  ;;  %v1882_v47 = vrot.slane %v8524_v63, 1 }
 0x207   : > { %v7186_v51 = vadd.f32 %v1648_v33, %v1479_v29 }
 0x208   : > { %v1339_v17 = vpop.f32.mrf.mxu0  ;;  %v1651_v11 = vpop.f32.mrf.mxu1  ;;  %v1884_v13 = vor.u32 %v1883_v60, %v1882_v47 }
 0x209   : > { %8522 = vst [vmem:[#allocation79_spill] sm:$0xff] %v7186_v51  ;;  %v1480_v0 = vadd.f32 %v1339_v17, %v8523_v10  ;;  %v2286_v10 = vrot.slane %v8528_v53, 2 }
 0x20a   : > { %v5093_v3 = vpop.f32.mrf.mxu0  ;;  %v5193_v52 = vpop.f32.mrf.mxu1 }
 0x20b   : > { %v7195_v23 = vadd.f32 %v1651_v11, %v1480_v0  ;;  %v7211_v47 = vsel %vm2266_vm4, %v2284_v25, %v2286_v10  ;;  %v8535_v25 = vld [vmem:[#allocation26_spill] sm:$0xff] }
 0x20c   : > { %v1344_v29 = vpop.f32.mrf.mxu0  ;;  %5307 = vmatmul.mubr.bf16.gmra.mxu0 %v1881_v56  ;;  %v1656_v15 = vpop.f32.mrf.mxu1  ;;  %5407 = vmatmul.mubr.bf16.gmra.mxu1 %v7193_v22  ;;  %v8530_v56 = vld [vmem:[#allocation57_spill] sm:$0xff]  ;;  %v8532_v22 = vld [vmem:[#allocation28_spill] sm:$0xff] }
 0x20d   : > { %8527 = vst [vmem:[#allocation27_spill] sm:$0xff] %v7195_v23  ;;  %v1481_v33 = vadd.f32 %v1344_v29, %v6903_v55  ;;  %5310 = vmatprep.mubr.msk.bf16.mxu0 %vm6219_vm0, %v8510_v61  ;;  %5410 = vmatprep.mubr.msk.bf16.mxu1 %vm6219_vm0, %v8510_v61  ;;  %v1885_v29 = vsel %vm1842_vm3, %v1880_v37, %v1884_v13  ;;  %v8531_v23 = vld [vmem:[#allocation30_spill] sm:$0xff]  ;;  %v1887_v50 = vrot.slane %v8532_v22, 2  ;;  %8533 = vst [vmem:[#allocation57_spill] sm:$0xff] %v7211_v47 }
 0x20e   : > { %v5096_v17 = vpop.f32.mrf.mxu0  ;;  %v5196_v52 = vpop.f32.mrf.mxu1  ;;  %v1886_v51 = vrot.slane %v8531_v23, 1 }
 0x20f   : > { %v7204_v0 = vadd.f32 %v1656_v15, %v1481_v33 }
 0x210   : > { %v1347_v11 = vpop.f32.mrf.mxu0  ;;  %v1659_v55 = vpop.f32.mrf.mxu1  ;;  %v1888_v37 = vor.u32 %v1887_v50, %v1886_v51 }
 0x211   : > { %8529 = vst [vmem:[#allocation80_spill] sm:$0xff] %v7204_v0  ;;  %v1482_v3 = vadd.f32 %v1347_v11, %v8530_v56  ;;  %v2288_v56 = vrot.slane %v8535_v25, 2 }
 0x212   : > { %v5097_v60 = vpop.f32.mrf.mxu0  ;;  %v5197_v53 = vpop.f32.mrf.mxu1 }
 0x213   : > { %v7213_v17 = vadd.f32 %v1659_v55, %v1482_v3  ;;  %v7229_v51 = vsel %vm2266_vm4, %v2286_v10, %v2288_v56  ;;  %v8542_v10 = vld [vmem:[#allocation29_spill] sm:$0xff] }
 0x214   : > { %v1352_v33 = vpop.f32.mrf.mxu0  ;;  %5311 = vmatmul.mubr.bf16.gmra.mxu0 %v1885_v29  ;;  %v1664_v52 = vpop.f32.mrf.mxu1  ;;  %5411 = vmatmul.mubr.bf16.gmra.mxu1 %v7211_v47  ;;  %v8537_v29 = vld [vmem:[#allocation58_spill] sm:$0xff]  ;;  %v8539_v47 = vld [vmem:[#allocation31_spill] sm:$0xff] }
 0x215   : > { %8534 = vst [vmem:[#allocation30_spill] sm:$0xff] %v7213_v17  ;;  %v1483_v15 = vadd.f32 %v1352_v33, %v6913_v36  ;;  %5314 = vmatprep.mubr.msk.bf16.mxu0 %vm6219_vm0, %v8510_v61  ;;  %5414 = vmatprep.mubr.msk.bf16.mxu1 %vm6219_vm0, %v8510_v61  ;;  %v1889_v33 = vsel %vm1842_vm3, %v1884_v13, %v1888_v37  ;;  %v8538_v17 = vld [vmem:[#allocation33_spill] sm:$0xff]  ;;  %v1891_v22 = vrot.slane %v8539_v47, 2  ;;  %8540 = vst [vmem:[#allocation58_spill] sm:$0xff] %v7229_v51 }
 0x216   : > { %v5100_v11 = vpop.f32.mrf.mxu0  ;;  %v5200_v53 = vpop.f32.mrf.mxu1  ;;  %v1890_v0 = vrot.slane %v8538_v17, 1 }
 0x217   : > { %v7222_v3 = vadd.f32 %v1664_v52, %v1483_v15 }
 0x218   : > { %v1355_v55 = vpop.f32.mrf.mxu0  ;;  %v1667_v36 = vpop.f32.mrf.mxu1  ;;  %v1892_v13 = vor.u32 %v1891_v22, %v1890_v0 }
 0x219   : > { %8536 = vst [vmem:[#allocation81_spill] sm:$0xff] %v7222_v3  ;;  %v1484_v60 = vadd.f32 %v1355_v55, %v8537_v29  ;;  %v2290_v29 = vrot.slane %v8542_v10, 2 }
 0x21a   : > { %v5101_v50 = vpop.f32.mrf.mxu0  ;;  %v5201_v25 = vpop.f32.mrf.mxu1 }
 0x21b   : > { %v7231_v11 = vadd.f32 %v1667_v36, %v1484_v60  ;;  %v7247_v0 = vsel %vm2266_vm4, %v2288_v56, %v2290_v29  ;;  %v8549_v56 = vld [vmem:[#allocation32_spill] sm:$0xff] }
 0x21c   : > { %v1360_v15 = vpop.f32.mrf.mxu0  ;;  %5315 = vmatmul.mubr.bf16.gmra.mxu0 %v1889_v33  ;;  %v1672_v53 = vpop.f32.mrf.mxu1  ;;  %5415 = vmatmul.mubr.bf16.gmra.mxu1 %v7229_v51  ;;  %v8544_v33 = vld [vmem:[#allocation59_spill] sm:$0xff]  ;;  %v8546_v51 = vld [vmem:[#allocation34_spill] sm:$0xff] }
 0x21d   : > { %8541 = vst [vmem:[#allocation33_spill] sm:$0xff] %v7231_v11  ;;  %v1485_v52 = vadd.f32 %v1360_v15, %v6923_v28  ;;  %5318 = vmatprep.mubr.msk.bf16.mxu0 %vm6219_vm0, %v8510_v61  ;;  %5418 = vmatprep.mubr.msk.bf16.mxu1 %vm6219_vm0, %v8510_v61  ;;  %v1893_v15 = vsel %vm1842_vm3, %v1888_v37, %v1892_v13  ;;  %v8545_v11 = vld [vmem:[#allocation36_spill] sm:$0xff]  ;;  %v1895_v47 = vrot.slane %v8546_v51, 2  ;;  %8547 = vst [vmem:[#allocation59_spill] sm:$0xff] %v7247_v0 }
 0x21e   : > { %v5104_v55 = vpop.f32.mrf.mxu0  ;;  %v5204_v25 = vpop.f32.mrf.mxu1  ;;  %v1894_v3 = vrot.slane %v8545_v11, 1 }
 0x21f   : > { %v7240_v60 = vadd.f32 %v1672_v53, %v1485_v52 }
 0x220   : > { %v1363_v36 = vpop.f32.mrf.mxu0  ;;  %v1675_v28 = vpop.f32.mrf.mxu1  ;;  %v1896_v37 = vor.u32 %v1895_v47, %v1894_v3 }
 0x221   : > { %8543 = vst [vmem:[#allocation82_spill] sm:$0xff] %v7240_v60  ;;  %v1486_v50 = vadd.f32 %v1363_v36, %v8544_v33  ;;  %v2292_v33 = vrot.slane %v8549_v56, 2 }
 0x222   : > { %v5105_v22 = vpop.f32.mrf.mxu0  ;;  %v5205_v10 = vpop.f32.mrf.mxu1 }
 0x223   : > { %v7249_v55 = vadd.f32 %v1675_v28, %v1486_v50  ;;  %v7265_v3 = vsel %vm2266_vm4, %v2290_v29, %v2292_v33  ;;  %v8556_v29 = vld [vmem:[#allocation35_spill] sm:$0xff] }
 0x224   : > { %v1368_v52 = vpop.f32.mrf.mxu0  ;;  %5319 = vmatmul.mubr.bf16.gmra.mxu0 %v1893_v15  ;;  %v1680_v25 = vpop.f32.mrf.mxu1  ;;  %5419 = vmatmul.mubr.bf16.gmra.mxu1 %v7247_v0  ;;  %v8551_v15 = vld [vmem:[#allocation60_spill] sm:$0xff]  ;;  %v8553_v0 = vld [vmem:[#allocation37_spill] sm:$0xff] }
 0x225   : > { %8548 = vst [vmem:[#allocation36_spill] sm:$0xff] %v7249_v55  ;;  %v1487_v53 = vadd.f32 %v1368_v52, %v6933_v44  ;;  %5322 = vmatprep.mubr.msk.bf16.mxu0 %vm6219_vm0, %v8510_v61  ;;  %5422 = vmatprep.mubr.msk.bf16.mxu1 %vm6219_vm0, %v8510_v61  ;;  %v1897_v52 = vsel %vm1842_vm3, %v1892_v13, %v1896_v37  ;;  %v8552_v55 = vld [vmem:[#allocation39_spill] sm:$0xff]  ;;  %v1899_v51 = vrot.slane %v8553_v0, 2  ;;  %8554 = vst [vmem:[#allocation60_spill] sm:$0xff] %v7265_v3 }
 0x226   : > { %v5108_v36 = vpop.f32.mrf.mxu0  ;;  %v5208_v10 = vpop.f32.mrf.mxu1  ;;  %v1898_v60 = vrot.slane %v8552_v55, 1 }
 0x227   : > { %v7258_v50 = vadd.f32 %v1680_v25, %v1487_v53 }
 0x228   : > { %v1371_v28 = vpop.f32.mrf.mxu0  ;;  %v1683_v44 = vpop.f32.mrf.mxu1  ;;  %v1900_v13 = vor.u32 %v1899_v51, %v1898_v60 }
 0x229   : > { %8550 = vst [vmem:[#allocation83_spill] sm:$0xff] %v7258_v50  ;;  %v1488_v22 = vadd.f32 %v1371_v28, %v8551_v15  ;;  %v2294_v15 = vrot.slane %v8556_v29, 2 }
 0x22a   : > { %v5109_v47 = vpop.f32.mrf.mxu0  ;;  %v5209_v56 = vpop.f32.mrf.mxu1 }
 0x22b   : > { %v7267_v36 = vadd.f32 %v1683_v44, %v1488_v22  ;;  %v7283_v60 = vsel %vm2266_vm4, %v2292_v33, %v2294_v15  ;;  %v8563_v33 = vld [vmem:[#allocation38_spill] sm:$0xff] }
 0x22c   : > { %v1376_v53 = vpop.f32.mrf.mxu0  ;;  %5323 = vmatmul.mubr.bf16.gmra.mxu0 %v1897_v52  ;;  %v1688_v10 = vpop.f32.mrf.mxu1  ;;  %5423 = vmatmul.mubr.bf16.gmra.mxu1 %v7265_v3  ;;  %v8558_v52 = vld [vmem:[#allocation61_spill] sm:$0xff]  ;;  %v8560_v3 = vld [vmem:[#allocation40_spill] sm:$0xff] }
 0x22d   : > { %8555 = vst [vmem:[#allocation39_spill] sm:$0xff] %v7267_v36  ;;  %v1489_v25 = vadd.f32 %v1376_v53, %v6943_v2  ;;  %5326 = vmatprep.mubr.msk.bf16.mxu0 %vm6219_vm0, %v8510_v61  ;;  %5426 = vmatprep.mubr.msk.bf16.mxu1 %vm6219_vm0, %v8510_v61  ;;  %v1901_v53 = vsel %vm1842_vm3, %v1896_v37, %v1900_v13  ;;  %v8559_v36 = vld [vmem:[#allocation42_spill] sm:$0xff]  ;;  %v1903_v0 = vrot.slane %v8560_v3, 2  ;;  %8561 = vst [vmem:[#allocation61_spill] sm:$0xff] %v7283_v60 }
 0x22e   : > { %v5112_v28 = vpop.f32.mrf.mxu0  ;;  %v5212_v56 = vpop.f32.mrf.mxu1  ;;  %v1902_v50 = vrot.slane %v8559_v36, 1 }
 0x22f   : > { %v7276_v22 = vadd.f32 %v1688_v10, %v1489_v25 }
 0x230   : > { %v1379_v44 = vpop.f32.mrf.mxu0  ;;  %v1691_v2 = vpop.f32.mrf.mxu1  ;;  %v1904_v37 = vor.u32 %v1903_v0, %v1902_v50 }
 0x231   : > { %8557 = vst [vmem:[#allocation84_spill] sm:$0xff] %v7276_v22  ;;  %v1490_v47 = vadd.f32 %v1379_v44, %v8558_v52  ;;  %v2296_v52 = vrot.slane %v8563_v33, 2 }
 0x232   : > { %v5113_v51 = vpop.f32.mrf.mxu0  ;;  %v5213_v29 = vpop.f32.mrf.mxu1 }
 0x233   : > { %v7285_v28 = vadd.f32 %v1691_v2, %v1490_v47  ;;  %v7301_v50 = vsel %vm2266_vm4, %v2294_v15, %v2296_v52  ;;  %v8570_v15 = vld [vmem:[#allocation41_spill] sm:$0xff] }
 0x234   : > { %v1384_v25 = vpop.f32.mrf.mxu0  ;;  %5327 = vmatmul.mubr.bf16.gmra.mxu0 %v1901_v53  ;;  %v1696_v56 = vpop.f32.mrf.mxu1  ;;  %5427 = vmatmul.mubr.bf16.gmra.mxu1 %v7283_v60  ;;  %v8565_v53 = vld [vmem:[#allocation62_spill] sm:$0xff]  ;;  %v8567_v60 = vld [vmem:[#allocation43_spill] sm:$0xff] }
 0x235   : > { %8562 = vst [vmem:[#allocation42_spill] sm:$0xff] %v7285_v28  ;;  %v1491_v10 = vadd.f32 %v1384_v25, %v6953_v18  ;;  %5330 = vmatprep.mubr.msk.bf16.mxu0 %vm6219_vm0, %v8510_v61  ;;  %5430 = vmatprep.mubr.msk.bf16.mxu1 %vm6219_vm0, %v8510_v61  ;;  %v1905_v25 = vsel %vm1842_vm3, %v1900_v13, %v1904_v37  ;;  %v8566_v28 = vld [vmem:[#allocation45_spill] sm:$0xff]  ;;  %v1907_v3 = vrot.slane %v8567_v60, 2  ;;  %8568 = vst [vmem:[#allocation62_spill] sm:$0xff] %v7301_v50 }
 0x236   : > { %v5116_v44 = vpop.f32.mrf.mxu0  ;;  %v5216_v29 = vpop.f32.mrf.mxu1  ;;  %v1906_v22 = vrot.slane %v8566_v28, 1 }
 0x237   : > { %v7294_v47 = vadd.f32 %v1696_v56, %v1491_v10 }
 0x238   : > { %v1387_v2 = vpop.f32.mrf.mxu0  ;;  %v1699_v18 = vpop.f32.mrf.mxu1  ;;  %v1908_v13 = vor.u32 %v1907_v3, %v1906_v22 }
 0x239   : > { %8564 = vst [vmem:[#allocation85_spill] sm:$0xff] %v7294_v47  ;;  %v1492_v51 = vadd.f32 %v1387_v2, %v8565_v53  ;;  %v2298_v53 = vrot.slane %v8570_v15, 2 }
 0x23a   : > { %v5117_v0 = vpop.f32.mrf.mxu0  ;;  %v5217_v33 = vpop.f32.mrf.mxu1 }
 0x23b   : > { %v7303_v44 = vadd.f32 %v1699_v18, %v1492_v51  ;;  %v7319_v22 = vsel %vm2266_vm4, %v2296_v52, %v2298_v53  ;;  %v8577_v52 = vld [vmem:[#allocation44_spill] sm:$0xff] }
 0x23c   : > { %v1392_v10 = vpop.f32.mrf.mxu0  ;;  %5331 = vmatmul.mubr.bf16.gmra.mxu0 %v1905_v25  ;;  %v1704_v29 = vpop.f32.mrf.mxu1  ;;  %5431 = vmatmul.mubr.bf16.gmra.mxu1 %v7301_v50  ;;  %v8572_v25 = vld [vmem:[#allocation63_spill] sm:$0xff]  ;;  %v8574_v50 = vld [vmem:[#allocation46_spill] sm:$0xff] }
 0x23d   : > { %8569 = vst [vmem:[#allocation45_spill] sm:$0xff] %v7303_v44  ;;  %v1493_v56 = vadd.f32 %v1392_v10, %v6963_v39  ;;  %5334 = vmatprep.mubr.msk.bf16.mxu0 %vm6219_vm0, %v8510_v61  ;;  %5434 = vmatprep.mubr.msk.bf16.mxu1 %vm6219_vm0, %v8510_v61  ;;  %v1909_v10 = vsel %vm1842_vm3, %v1904_v37, %v1908_v13  ;;  %v8573_v44 = vld [vmem:[#allocation48_spill] sm:$0xff]  ;;  %v1911_v60 = vrot.slane %v8574_v50, 2  ;;  %8575 = vst [vmem:[#allocation63_spill] sm:$0xff] %v7319_v22 }
 0x23e   : > { %v5120_v2 = vpop.f32.mrf.mxu0  ;;  %v5220_v33 = vpop.f32.mrf.mxu1  ;;  %v1910_v47 = vrot.slane %v8573_v44, 1 }
 0x23f   : > { %v7312_v51 = vadd.f32 %v1704_v29, %v1493_v56 }
 0x240   : > { %v1395_v18 = vpop.f32.mrf.mxu0  ;;  %v1707_v39 = vpop.f32.mrf.mxu1  ;;  %v1912_v37 = vor.u32 %v1911_v60, %v1910_v47 }
 0x241   : > { %8571 = vst [vmem:[#allocation86_spill] sm:$0xff] %v7312_v51  ;;  %v1494_v0 = vadd.f32 %v1395_v18, %v8572_v25  ;;  %v2300_v25 = vrot.slane %v8577_v52, 2 }
 0x242   : > { %v5121_v3 = vpop.f32.mrf.mxu0  ;;  %v5221_v15 = vpop.f32.mrf.mxu1 }
 0x243   : > { %v7321_v2 = vadd.f32 %v1707_v39, %v1494_v0  ;;  %v7337_v47 = vsel %vm2266_vm4, %v2298_v53, %v2300_v25  ;;  %v8585_v53 = vld [vmem:[#allocation47_spill] sm:$0xff] }
 0x244   : > { %v1400_v56 = vpop.f32.mrf.mxu0  ;;  %5335 = vmatmul.mubr.bf16.gmra.mxu0 %v1909_v10  ;;  %v1712_v33 = vpop.f32.mrf.mxu1  ;;  %5435 = vmatmul.mubr.bf16.gmra.mxu1 %v7319_v22  ;;  %v8579_v10 = vld [vmem:[#allocation64_spill] sm:$0xff]  ;;  %v8581_v22 = vld [vmem:[#allocation49_spill] sm:$0xff] }
 0x245   : > { %8576 = vst [vmem:[#allocation48_spill] sm:$0xff] %v7321_v2  ;;  %v1495_v29 = vadd.f32 %v1400_v56, %v6973_v4  ;;  %5338 = vmatprep.mubr.msk.bf16.mxu0 %vm6219_vm0, %v8510_v61  ;;  %5438 = vmatprep.mubr.msk.bf16.mxu1 %vm6219_vm0, %v8510_v61  ;;  %v1913_v56 = vsel %vm1842_vm3, %v1908_v13, %v1912_v37  ;;  %v8580_v2 = vld [vmem:[#allocation51_spill] sm:$0xff]  ;;  %v1915_v50 = vrot.slane %v8581_v22, 2  ;;  %8582 = vst [vmem:[#allocation64_spill] sm:$0xff] %v7337_v47  ;;  %v8589_v22 = vld [vmem:[#allocation52_spill] sm:$0xff] }
 0x246   : > { %v5124_v18 = vpop.f32.mrf.mxu0  ;;  %v5224_v15 = vpop.f32.mrf.mxu1  ;;  %v1914_v51 = vrot.slane %v8580_v2, 1  ;;  %v1919_v2 = vrot.slane %v8589_v22, 2 }
 0x247   : > { %v7330_v0 = vadd.f32 %v1712_v33, %v1495_v29  ;;  %v8584_v33 = vld [vmem:[#allocation65_spill] sm:$0xff] }
 0x248   : > { %v1403_v39 = vpop.f32.mrf.mxu0  ;;  %v1715_v4 = vpop.f32.mrf.mxu1  ;;  %v1916_v13 = vor.u32 %v1915_v50, %v1914_v51 }
 0x249   : > { %8578 = vst [vmem:[#allocation87_spill] sm:$0xff] %v7330_v0  ;;  %v1496_v3 = vadd.f32 %v1403_v39, %v8579_v10  ;;  %v2302_v10 = vrot.slane %v8585_v53, 2 }
 0x24a   : > { %v5125_v60 = vpop.f32.mrf.mxu0  ;;  %v5225_v52 = vpop.f32.mrf.mxu1 }
 0x24b   : > { %v7339_v18 = vadd.f32 %v1715_v4, %v1496_v3  ;;  %v7355_v51 = vsel %vm2266_vm4, %v2300_v25, %v2302_v10  ;;  %v8593_v25 = vld [vmem:[#allocation50_spill] sm:$0xff] }
 0x24c   : > { %v1408_v29 = vpop.f32.mrf.mxu0  ;;  %5339 = vmatmul.mubr.bf16.gmra.mxu0 %v1913_v56  ;;  %v1720_v0 = vpop.f32.mrf.mxu1  ;;  %5439 = vmatmul.mubr.bf16.gmra.mxu1 %v7337_v47  ;;  %v8587_v56 = vld [vmem:[#allocation66_spill] sm:$0xff] }
 0x24d   : > { %8583 = vst [vmem:[#allocation88_spill] sm:$0xff] %v7339_v18  ;;  %v1497_v15 = vadd.f32 %v1408_v29, %v8584_v33  ;;  %5342 = vmatprep.mubr.msk.bf16.mxu0 %vm6219_vm0, %v8510_v61  ;;  %5442 = vmatprep.mubr.msk.bf16.mxu1 %vm6219_vm0, %v8510_v61  ;;  %v1917_v33 = vsel %vm1842_vm3, %v1912_v37, %v1916_v13  ;;  %v8588_v18 = vld [vmem:[#allocation54_spill] sm:$0xff]  ;;  %8590 = vst [vmem:[#allocation66_spill] sm:$0xff] %v7355_v51 }
 0x24e   : > { %v5128_v39 = vpop.f32.mrf.mxu0  ;;  %v5228_v52 = vpop.f32.mrf.mxu1  ;;  %v1918_v47 = vrot.slane %v8588_v18, 1 }
 0x24f   : > { %v7348_v3 = vadd.f32 %v1720_v0, %v1497_v15  ;;  %v8592_v15 = vld [vmem:[#allocation67_spill] sm:$0xff] }
 0x250   : > { %v1411_v4 = vpop.f32.mrf.mxu0  ;;  %v1723_v29 = vpop.f32.mrf.mxu1  ;;  %v1920_v37 = vor.u32 %v1919_v2, %v1918_v47  ;;  %v8596_v47 = vld [vmem:[#allocation55_spill] sm:$0xff] }
 0x251   : > { %8586 = vst [vmem:[#allocation65_spill] sm:$0xff] %v7348_v3  ;;  %v1498_v60 = vadd.f32 %v1411_v4, %v8587_v56  ;;  %v8433_v4 = vshrl.u32 %v6788_v42, 16 }
 0x252   : > { %v5129_v50 = vpop.f32.mrf.mxu0  ;;  %v5229_v53 = vpop.f32.mrf.mxu1 }
 0x253   : > { %v7357_v39 = vadd.f32 %v1723_v29, %v1498_v60  ;;  %v2304_v60 = vrot.slane %v8593_v25, 2  ;;  %v8595_v50 = vld [vmem:[#allocation68_spill] sm:$0xff]  ;;  %v1924_v2 = vrot.slane %v8433_v4, 1 }
 0x254   : > { %v1416_v0 = vpop.f32.mrf.mxu0  ;;  %5343 = vmatmul.mubr.bf16.gmra.mxu0 %v1917_v33  ;;  %v1728_v3 = vpop.f32.mrf.mxu1  ;;  %5443 = vmatmul.mubr.bf16.gmra.mxu1 %v7355_v51  ;;  %v1925_v51 = vrot.slane %v8596_v47, 2 }
 0x255   : > { %8591 = vst [vmem:[#allocation89_spill] sm:$0xff] %v7357_v39  ;;  %v1499_v52 = vadd.f32 %v1416_v0, %v8592_v15  ;;  %5346 = vmatprep.mubr.msk.bf16.mxu0 %vm6219_vm0, %v8510_v61  ;;  %5446 = vmatprep.mubr.msk.bf16.mxu1 %vm6219_vm0, %v8510_v61  ;;  %v1921_v39 = vsel %vm1842_vm3, %v1916_v13, %v1920_v37 }
 0x256   : > { %v5132_v56 = vpop.f32.mrf.mxu0  ;;  %v5232_v29 = vpop.f32.mrf.mxu1  ;;  %v7375_v22 = vsel %vm2266_vm4, %v2302_v10, %v2304_v60  ;;  %v1926_v13 = vor.u32 %v1925_v51, %v1924_v2 }
 0x257   : > { %v7367_v53 = vadd.f32 %v1728_v3, %v1499_v52 }
 0x258   : > { %v1419_v33 = vpop.f32.mrf.mxu0  ;;  %v1731_v15 = vpop.f32.mrf.mxu1  ;;  %v1927_v25 = vsel %vm1842_vm3, %v1920_v37, %v1926_v13 }
 0x259   : > { %8594 = vst [vmem:[#allocation67_spill] sm:$0xff] %v7367_v53  ;;  %v1500_v0 = vadd.f32 %v1419_v33, %v8595_v50  ;;  %v8435_v50 = vshrl.u32 %v7013_v41, 16 }
 0x25a   : > { %v5133_v56 = vpop.f32.mrf.mxu0  ;;  %v5233_v3 = vpop.f32.mrf.mxu1 }
 0x25b   : > { %v7377_v18 = vadd.f32 %v1731_v15, %v1500_v0  ;;  %v8434_v56 = vshll.u32 %v7013_v41, 16  ;;  %v2306_v0 = vrot.slane %v6788_v42, 2  ;;  %v8598_v3 = vld [vmem:[#allocation69_spill] sm:$0xff]  ;;  %v1931_v51 = vrot.slane %v8435_v50, 1 }
 0x25c   : > { %v1424_v52 = vpop.f32.mrf.mxu0  ;;  %5347 = vmatmul.mubr.bf16.gmra.mxu0 %v1921_v39  ;;  %v1736_v33 = vpop.f32.mrf.mxu1  ;;  %5447 = vmatmul.mubr.bf16.gmra.mxu1 %v7375_v22 }
 0x25d   : > { %8597 = vst [vmem:[#allocation68_spill] sm:$0xff] %v7377_v18  ;;  %v1501_v29 = vadd.f32 %v1424_v52, %v7005_v6  ;;  %5350 = vmatprep.mubr.msk.bf16.mxu0 %vm6219_vm0, %v8510_v61  ;;  %5450 = vmatprep.mubr.msk.bf16.mxu1 %vm6219_vm0, %v8510_v61  ;;  %v1934_v2 = vrot.slane %v8434_v56, 2  ;;  %v7397_v18 = vsel %vm2266_vm4, %v2304_v60, %v2306_v0  ;;  %v8436_v56 = vrot.slane %v7013_v41, 2 }
 0x25e   : > { %v5136_v10 = vpop.f32.mrf.mxu0  ;;  %v5236_v6 = vpop.f32.mrf.mxu1 }
 0x25f   : > { %v7388_v39 = vadd.f32 %v1736_v33, %v1501_v29  ;;  %v8599_v6 = vld [vmem:[#allocation70_spill] sm:$0xff]  ;;  %v1935_v37 = vor.u32 %v1934_v2, %v1931_v51  ;;  %v2952_v2 = vrot.slane %v6457_v57, 2 }
 0x260   : > { %v1427_v15 = vpop.f32.mrf.mxu0  ;;  %v1739_v4 = vpop.f32.mrf.mxu1 }
 0x261   : > { %v1502_v52 = vadd.f32 %v1427_v15, %v8598_v3 }
 0x262   : > { %v5137_v10 = vpop.f32.mrf.mxu0  ;;  %v5237_v29 = vpop.f32.mrf.mxu1 }
 0x263   : > { %v7399_v53 = vadd.f32 %v1739_v4, %v1502_v52 }
 0x264   : > { %v1432_v33 = vpop.f32.mrf.mxu0  ;;  %5351 = vmatmul.mubr.bf16.gmra.mxu0 %v1927_v25  ;;  %v1744_v3 = vpop.f32.mrf.mxu1  ;;  %5451 = vmatmul.mubr.bf16.gmra.mxu1 %v7397_v18 }
 0x265   : > { %v1503_v15 = vadd.f32 %v1432_v33, %v8599_v6  ;;  %5354 = vmatprep.mubr.msk.bf16.mxu0 %vm6219_vm0, %v8510_v61  ;;  %5454 = vmatprep.mubr.msk.bf16.mxu1 %vm6219_vm0, %v8510_v61  ;;  %v1936_v33 = vsel %vm1842_vm3, %v1926_v13, %v1935_v37  ;;  %v7415_v6 = vsel %vm2266_vm4, %v2306_v0, %v8436_v56  ;;  %v8600_v13 = vld [vmem:[#allocation71_spill] sm:$0xff] }
 0x266   : > { %v5140_v10 = vpop.f32.mrf.mxu0  ;;  %v5240_v60 = vpop.f32.mrf.mxu1 }
 0x267   : > { %v7408_v4 = vadd.f32 %v1744_v3, %v1503_v15  ;;  %v2953_v10 = vrot.slane %v6440_v46, 3  ;;  %v2955_v15 = vrot.slane %v6478_v8, 2  ;;  %v2956_v3 = vrot.slane %v6460_v58, 3 }
 0x268   : > { %v1435_v52 = vpop.f32.mrf.mxu0  ;;  %v1747_v29 = vpop.f32.mrf.mxu1 }
 0x269   : > { %v1504_v25 = vadd.f32 %v1435_v52, %v7024_v1  ;;  %v2954_v46 = vor.u32 %v2953_v10, %v2952_v2  ;;  %v2957_v8 = vor.u32 %v2956_v3, %v2955_v15 }
 0x26a   : > { %v5141_v51 = vpop.f32.mrf.mxu0  ;;  %v5241_v1 = vpop.f32.mrf.mxu1 }
 0x26b   : > { %v7421_v60 = vadd.f32 %v1747_v29, %v1504_v25  ;;  %v6002_v51 = vld [vmem:[#allocation5 + $0x238] sm:$0xff]  }
 0x26c   : > { %v1440_v52 = vpop.f32.mrf.mxu0  ;;  %5355 = vmatmul.mubr.bf16.gmra.mxu0 %v1936_v33  ;;  %v1752_v50 = vpop.f32.mrf.mxu1  ;;  %5455 = vmatmul.mubr.bf16.gmra.mxu1 %v7415_v6 }
 0x26d   : > { %v1505_v37 = vadd.f32 %v1440_v52, %v8600_v13  ;;  %5474 = vmatprep.mubr.msk.bf16.mxu0 %vm6219_vm0, %v8510_v61  ;;  %5574 = vmatprep.mubr.msk.bf16.mxu1 %vm6219_vm0, %v8510_v61  ;;  %v2958_v52 = vsel %vm2951_vm5, %v2954_v46, %v2957_v8  ;;  %v2959_v13 = vrot.slane %v6500_v26, 2  ;;  %v8601_v46 = vld [vmem:[#allocation72_spill] sm:$0xff] }
 0x26e   : > { %v5144_v57 = vpop.f32.mrf.mxu0  ;;  %v5244_v0 = vpop.f32.mrf.mxu1 }
 0x26f   : > { %v7429_v58 = vadd.f32 %v1752_v50, %v1505_v37  ;;  %v2960_v57 = vrot.slane %v6481_v9, 3 }
 0x270   : > { %v1443_v25 = vpop.f32.mrf.mxu0  ;;  %v1755_v33 = vpop.f32.mrf.mxu1 }
 0x271   : > { %v1506_v29 = vadd.f32 %v1443_v25, %v7041_v7  ;;  %v6003_v7 = vld [vmem:[#allocation5 + $0x230] sm:$0xff]   ;;  %v2961_v9 = vor.u32 %v2960_v57, %v2959_v13 }
 0x272   : > { %v5145_v1 = vpop.f32.mrf.mxu0  ;;  %v5245_v2 = vpop.f32.mrf.mxu1 }
 0x273   : > { %v7435_v56 = vadd.f32 %v1755_v33, %v1506_v29  ;;  %v2962_v29 = vsel %vm2951_vm5, %v2957_v8, %v2961_v9  ;;  %v2963_v33 = vrot.slane %v6525_v48, 2  ;;  %v6004_v1 = vld [vmem:[#allocation5 + $0x228] sm:$0xff]   ;;  %v6005_v48 = vld [vmem:[#allocation5 + $0x220] sm:$0xff]  }
 0x274   : > { %v1448_v10 = vpop.f32.mrf.mxu0  ;;  %5475 = vmatmul.mubr.bf16.vlgmr.msra.gmra.mxu0 %v7058_v24  ;;  %v1760_v15 = vpop.f32.mrf.mxu1  ;;  %5575 = vmatmul.mubr.bf16.vlgmr.msra.gmra.mxu1 %v2958_v52 }
 0x275   : > { %v1507_v50 = vadd.f32 %v1448_v10, %v7044_v35  ;;  %5659 = vmatpush3.bf16.msra.mxu0 %v6002_v51  ;;  %5478 = vmatprep.mubr.msk.bf16.mxu0 %vm6219_vm0, %v8510_v61  ;;  %v2964_v51 = vrot.slane %v6507_v31, 3 }
 0x276   : > { %v5148_v3 = vpop.f32.mrf.mxu0  ;;  %5578 = vmatprep.mubr.msk.bf16.mxu1 %vm6219_vm0, %v8510_v61  ;;  %v5248_v37 = vpop.f32.mrf.mxu1  ;;  %5660 = vmatprep.subr.bf16.mxu0 %v8510_v61 }
 0x277   : > { %v7443_v26 = vadd.f32 %v1760_v15, %v1507_v50  ;;  %v2965_v31 = vor.u32 %v2964_v51, %v2963_v33 }
 0x278   : > { %v1451_v24 = vpop.f32.mrf.mxu0  ;;  %v1763_v0 = vpop.f32.mrf.mxu1 }
 0x279   : > { %v1508_v35 = vadd.f32 %v1451_v24, %v8601_v46  ;;  %5661 = vmatpush3.bf16.msra.mxu0 %v6003_v7  ;;  %v8602_v7 = vld [vmem:[#allocation73_spill] sm:$0xff]  ;;  %v2966_v24 = vsel %vm2951_vm5, %v2961_v9, %v2965_v31  ;;  %v2967_v46 = vrot.slane %v6532_v54, 2 }
 0x27a   : > { %v5149_v25 = vpop.f32.mrf.mxu0  ;;  %5662 = vmatprep.subr.bf16.mxu0 %v8510_v61  ;;  %v5249_v13 = vpop.f32.mrf.mxu1 }
 0x27b   : > { %v7451_v52 = vadd.f32 %v1763_v0, %v1508_v35  ;;  %v8603_v35 = vld [vmem:[#allocation18_spill] sm:$0xff]  ;;  %v6006_v25 = vld [vmem:[#allocation5 + $0x218] sm:$0xff]  }
 0x27c   : > { %v1456_v57 = vpop.f32.mrf.mxu0  ;;  %5479 = vmatmul.mubr.bf16.gmra.mxu0 %v7077_v32  ;;  %v1768_v10 = vpop.f32.mrf.mxu1  ;;  %5579 = vmatmul.mubr.bf16.gmra.mxu1 %v2962_v29  ;;  %v2968_v0 = vrot.slane %v8603_v35, 3 }
 0x27d   : > { %v1509_v2 = vadd.f32 %v1456_v57, %v7064_v34  ;;  %5482 = vmatprep.mubr.msk.bf16.mxu0 %vm6219_vm0, %v8510_v61  ;;  %5582 = vmatprep.mubr.msk.bf16.mxu1 %vm6219_vm0, %v8510_v61 }
 0x27e   : > { %v5152_v8 = vpop.f32.mrf.mxu0  ;;  %5663 = vmatpush3.bf16.msra.mxu0 %v6004_v1  ;;  %v5252_v15 = vpop.f32.mrf.mxu1  ;;  %v8604_v1 = vld [vmem:[#allocation74_spill] sm:$0xff]  ;;  %v2969_v9 = vor.u32 %v2968_v0, %v2967_v46 }
 0x27f   : > { %v7459_v50 = vadd.f32 %v1768_v10, %v1509_v2  ;;  %5664 = vmatprep.subr.bf16.mxu0 %v8510_v61  ;;  %v6007_v2 = vld [vmem:[#allocation5 + $0x210] sm:$0xff]  }
 0x280   : > { %v1459_v32 = vpop.f32.mrf.mxu0  ;;  %v1771_v3 = vpop.f32.mrf.mxu1 }
 0x281   : > { %v1510_v34 = vadd.f32 %v1459_v32, %v8602_v7  ;;  %v2970_v7 = vsel %vm2951_vm5, %v2965_v31, %v2969_v9  ;;  %v6009_v31 = vld [vmem:[#allocation5 + $0x200] sm:$0xff]  }
 0x282   : > { %v5153_v37 = vpop.f32.mrf.mxu0  ;;  %5665 = vmatpush3.bf16.msra.mxu0 %v6005_v48  ;;  %v5253_v33 = vpop.f32.mrf.mxu1 }
 0x283   : > { %v7466_v29 = vadd.f32 %v1771_v3, %v1510_v34  ;;  %5666 = vmatprep.subr.bf16.mxu0 %v8510_v61  ;;  %v2971_v34 = vrot.slane %v6543_v62, 2  ;;  %v2972_v3 = vrot.slane %v6538_v59, 3  ;;  %v6008_v37 = vld [vmem:[#allocation5 + $0x208] sm:$0xff]  }
 0x284   : > { %v1464_v51 = vpop.f32.mrf.mxu0  ;;  %5483 = vmatmul.mubr.bf16.gmra.mxu0 %v7097_v38  ;;  %v1776_v57 = vpop.f32.mrf.mxu1  ;;  %5583 = vmatmul.mubr.bf16.gmra.mxu1 %v2966_v24 }
 0x285   : > { %v1511_v13 = vadd.f32 %v1464_v51, %v8604_v1  ;;  %5486 = vmatprep.mubr.msk.bf16.mxu0 %vm6219_vm0, %v8510_v61  ;;  %5586 = vmatprep.mubr.msk.bf16.mxu1 %vm6219_vm0, %v8510_v61  ;;  %v2973_v59 = vor.u32 %v2972_v3, %v2971_v34  ;;  %v2979_v3 = vrot.slane %v6597_v30, 2 }
 0x286   : > { %v5156_v54 = vpop.f32.mrf.mxu0  ;;  %5667 = vmatpush3.bf16.msra.mxu0 %v6006_v25  ;;  %v5256_v8 = vpop.f32.mrf.mxu1 }
 0x287   : > { %v7475_v10 = vadd.f32 %v1776_v57, %v1511_v13  ;;  %5668 = vmatprep.subr.bf16.mxu0 %v8510_v61  ;;  %v2974_v13 = vsel %vm2951_vm5, %v2969_v9, %v2973_v59  ;;  %v2975_v57 = vrot.slane %v6562_v12, 2  ;;  %v2976_v54 = vrot.slane %v6554_v5, 3 }
 0x288   : > { %v1467_v38 = vpop.f32.mrf.mxu0  ;;  %v1779_v15 = vpop.f32.mrf.mxu1 }
 0x289   : > { %v1512_v48 = vadd.f32 %v1467_v38, %v7094_v40  ;;  %v2977_v12 = vor.u32 %v2976_v54, %v2975_v57  ;;  %v8607_v57 = vld [vmem:[#allocation22_spill] sm:$0xff] }
 0x28a   : > { %v5157_v32 = vpop.f32.mrf.mxu0  ;;  %5669 = vmatpush3.bf16.msra.mxu0 %v6007_v2  ;;  %v5257_v46 = vpop.f32.mrf.mxu1  ;;  %v2984_v54 = vrot.slane %v8607_v57, 3 }
 0x28b   : > { %v7482_v24 = vadd.f32 %v1779_v15, %v1512_v48  ;;  %5670 = vmatprep.subr.bf16.mxu0 %v8510_v61 }
 0x28c   : > { %v2040_v35 = vpop.f32.mrf.mxu0  ;;  %5487 = vmatmul.mubr.bf16.gmra.mxu0 %v7117_v21  ;;  %v2413_v0 = vpop.f32.mrf.mxu1  ;;  %5587 = vmatmul.mubr.bf16.gmra.mxu1 %v2970_v7 }
 0x28d   : > { %v2207_v40 = vadd.f32 %v2040_v35, %v7107_v27  ;;  %5490 = vmatprep.mubr.msk.bf16.mxu0 %vm6219_vm0, %v8510_v61  ;;  %5590 = vmatprep.mubr.msk.bf16.mxu1 %vm6219_vm0, %v8510_v61 }
 0x28e   : > { %v5276_v62 = vpop.f32.mrf.mxu0  ;;  %5671 = vmatpush3.bf16.msra.mxu0 %v6008_v37  ;;  %v5376_v33 = vpop.f32.mrf.mxu1  ;;  %v2980_v37 = vrot.slane %v6576_v19, 3 }
 0x28f   : > { %v7491_v25 = vadd.f32 %v2413_v0, %v2207_v40  ;;  %5672 = vmatprep.subr.bf16.mxu0 %v8510_v61  ;;  %v8605_v0 = vld [vmem:[#allocation75_spill] sm:$0xff] }
 0x290   : > { %v2043_v21 = vpop.f32.mrf.mxu0  ;;  %v2416_v51 = vpop.f32.mrf.mxu1  ;;  %v2981_v30 = vor.u32 %v2980_v37, %v2979_v3 }
 0x291   : > { %v2208_v27 = vadd.f32 %v2043_v21, %v7119_v16  ;;  %v8606_v21 = vld [vmem:[#allocation76_spill] sm:$0xff] }
 0x292   : > { %v5277_v1 = vpop.f32.mrf.mxu0  ;;  %5673 = vmatpush3.bf16.msra.mxu0 %v6009_v31  ;;  %v5377_v8 = vpop.f32.mrf.mxu1 }
 0x293   : > { %v7498_v2 = vadd.f32 %v2416_v51, %v2208_v27  ;;  %v2982_v1 = vsel %vm2951_vm5, %v2977_v12, %v2981_v30 }
 0x294   : > { %v2048_v38 = vpop.f32.mrf.mxu0  ;;  %5491 = vmatmul.mubr.bf16.gmra.mxu0 %v7138_v43  ;;  %v2421_v15 = vpop.f32.mrf.mxu1  ;;  %5591 = vmatmul.mubr.bf16.gmra.mxu1 %v2974_v13  ;;  %v2983_v13 = vrot.slane %v8517_v45, 2 }
 0x295   : > { %v2209_v48 = vadd.f32 %v2048_v38, %v7130_v20  ;;  %5494 = vmatprep.mubr.msk.bf16.mxu0 %vm6219_vm0, %v8510_v61  ;;  %5594 = vmatprep.mubr.msk.bf16.mxu1 %vm6219_vm0, %v8510_v61  ;;  %v2978_v20 = vsel %vm2951_vm5, %v2973_v59, %v2977_v12 }
 0x296   : > { %v5280_v16 = vpop.f32.mrf.mxu0  ;;  %v5380_v9 = vpop.f32.mrf.mxu1  ;;  %v2985_v45 = vor.u32 %v2984_v54, %v2983_v13  ;;  %v8614_v54 = vld [vmem:[#allocation27_spill] sm:$0xff] }
 0x297   : > { %v7506_v5 = vadd.f32 %v2421_v15, %v2209_v48  ;;  %v8608_v15 = vld [vmem:[#allocation24_spill] sm:$0xff]  ;;  %v8609_v16 = vld [vmem:[#allocation77_spill] sm:$0xff] }
 0x298   : > { %v2051_v32 = vpop.f32.mrf.mxu0  ;;  %v2424_v34 = vpop.f32.mrf.mxu1 }
 0x299   : > { %v2210_v7 = vadd.f32 %v2051_v32, %v7140_v14 }
 0x29a   : > { %v5281_v43 = vpop.f32.mrf.mxu0  ;;  %v5381_v35 = vpop.f32.mrf.mxu1 }
 0x29b   : > { %v7512_v46 = vadd.f32 %v2424_v34, %v2210_v7 }
 0x29c   : > { %v2056_v40 = vpop.f32.mrf.mxu0  ;;  %5495 = vmatmul.mubr.bf16.gmra.mxu0 %v7157_v49  ;;  %v2429_v31 = vpop.f32.mrf.mxu1  ;;  %5595 = vmatmul.mubr.bf16.gmra.mxu1 %v2978_v20  ;;  %v8610_v20 = vld [vmem:[#allocation78_spill] sm:$0xff] }
 0x29d   : > { %v2211_v62 = vadd.f32 %v2056_v40, %v8605_v0  ;;  %5498 = vmatprep.mubr.msk.bf16.mxu0 %vm6219_vm0, %v8510_v61  ;;  %5598 = vmatprep.mubr.msk.bf16.mxu1 %vm6219_vm0, %v8510_v61  ;;  %v2986_v40 = vsel %vm2951_vm5, %v2981_v30, %v2985_v45  ;;  %v2987_v0 = vrot.slane %v8524_v63, 2 }
 0x29e   : > { %v5284_v14 = vpop.f32.mrf.mxu0  ;;  %v5384_v19 = vpop.f32.mrf.mxu1 }
 0x29f   : > { %v7520_v59 = vadd.f32 %v2429_v31, %v2211_v62  ;;  %v8611_v62 = vld [vmem:[#allocation25_spill] sm:$0xff] }
 0x2a0   : > { %v2059_v33 = vpop.f32.mrf.mxu0  ;;  %v2432_v51 = vpop.f32.mrf.mxu1  ;;  %v2988_v31 = vrot.slane %v8611_v62, 3 }
 0x2a1   : > { %v2212_v27 = vadd.f32 %v2059_v33, %v8606_v21  ;;  %v8612_v21 = vld [vmem:[#allocation56_spill] sm:$0xff] }
 0x2a2   : > { %v5285_v49 = vpop.f32.mrf.mxu0  ;;  %v5385_v38 = vpop.f32.mrf.mxu1  ;;  %v2989_v63 = vor.u32 %v2988_v31, %v2987_v0 }
 0x2a3   : > { %v7526_v8 = vadd.f32 %v2432_v51, %v2212_v27  ;;  %v8613_v27 = vld [vmem:[#allocation79_spill] sm:$0xff] }
 0x2a4   : > { %v2064_v48 = vpop.f32.mrf.mxu0  ;;  %5499 = vmatmul.mubr.bf16.gmra.mxu0 %v8608_v15  ;;  %v2437_v32 = vpop.f32.mrf.mxu1  ;;  %5599 = vmatmul.mubr.bf16.gmra.mxu1 %v2982_v1 }
 0x2a5   : > { %v2213_v9 = vadd.f32 %v2064_v48, %v8609_v16  ;;  %5502 = vmatprep.mubr.msk.bf16.mxu0 %vm6219_vm0, %v8510_v61  ;;  %5602 = vmatprep.mubr.msk.bf16.mxu1 %vm6219_vm0, %v8510_v61  ;;  %v2990_v16 = vsel %vm2951_vm5, %v2985_v45, %v2989_v63 }
 0x2a6   : > { %v5288_v7 = vpop.f32.mrf.mxu0  ;;  %v5388_v34 = vpop.f32.mrf.mxu1 }
 0x2a7   : > { %v7534_v12 = vadd.f32 %v2437_v32, %v2213_v9  ;;  %v2991_v9 = vrot.slane %v8531_v23, 2  ;;  %v8615_v32 = vld [vmem:[#allocation28_spill] sm:$0xff] }
 0x2a8   : > { %v2067_v43 = vpop.f32.mrf.mxu0  ;;  %v2440_v37 = vpop.f32.mrf.mxu1  ;;  %v2992_v7 = vrot.slane %v8615_v32, 3 }
 0x2a9   : > { %v2214_v3 = vadd.f32 %v2067_v43, %v8610_v20 }
 0x2aa   : > { %v5289_v35 = vpop.f32.mrf.mxu0  ;;  %v5389_v19 = vpop.f32.mrf.mxu1  ;;  %v2993_v23 = vor.u32 %v2992_v7, %v2991_v9 }
 0x2ab   : > { %v7540_v14 = vadd.f32 %v2440_v37, %v2214_v3  ;;  %v8616_v3 = vld [vmem:[#allocation57_spill] sm:$0xff]  ;;  %v8617_v37 = vld [vmem:[#allocation80_spill] sm:$0xff]  ;;  %v8618_v19 = vld [vmem:[#allocation30_spill] sm:$0xff] }
 0x2ac   : > { %v2072_v33 = vpop.f32.mrf.mxu0  ;;  %5503 = vmatmul.mubr.bf16.gmra.mxu0 %v8612_v21  ;;  %v2445_v49 = vpop.f32.mrf.mxu1  ;;  %5603 = vmatmul.mubr.bf16.gmra.mxu1 %v2986_v40 }
 0x2ad   : > { %v2215_v51 = vadd.f32 %v2072_v33, %v8613_v27  ;;  %5506 = vmatprep.mubr.msk.bf16.mxu0 %vm6219_vm0, %v8510_v61  ;;  %5606 = vmatprep.mubr.msk.bf16.mxu1 %vm6219_vm0, %v8510_v61 }
 0x2ae   : > { %v5292_v1 = vpop.f32.mrf.mxu0  ;;  %v5392_v13 = vpop.f32.mrf.mxu1 }
 0x2af   : > { %v7548_v30 = vadd.f32 %v2445_v49, %v2215_v51  ;;  %v2994_v51 = vsel %vm2951_vm5, %v2989_v63, %v2993_v23  ;;  %v2995_v49 = vrot.slane %v8538_v17, 2  ;;  %v8619_v1 = vld [vmem:[#allocation31_spill] sm:$0xff] }
 0x2b0   : > { %v2075_v57 = vpop.f32.mrf.mxu0  ;;  %v2448_v48 = vpop.f32.mrf.mxu1  ;;  %v2996_v13 = vrot.slane %v8619_v1, 3 }
 0x2b1   : > { %v2216_v38 = vadd.f32 %v2075_v57, %v8614_v54 }
 0x2b2   : > { %v5293_v15 = vpop.f32.mrf.mxu0  ;;  %v5393_v43 = vpop.f32.mrf.mxu1  ;;  %v2997_v17 = vor.u32 %v2996_v13, %v2995_v49  ;;  %v8625_v49 = vld [vmem:[#allocation82_spill] sm:$0xff] }
 0x2b3   : > { %v7554_v34 = vadd.f32 %v2448_v48, %v2216_v38  ;;  %v8620_v48 = vld [vmem:[#allocation58_spill] sm:$0xff]  ;;  %v8621_v15 = vld [vmem:[#allocation81_spill] sm:$0xff] }
 0x2b4   : > { %v2080_v20 = vpop.f32.mrf.mxu0  ;;  %5507 = vmatmul.mubr.bf16.gmra.mxu0 %v8616_v3  ;;  %v2453_v40 = vpop.f32.mrf.mxu1  ;;  %5607 = vmatmul.mubr.bf16.gmra.mxu1 %v2990_v16 }
 0x2b5   : > { %v2217_v35 = vadd.f32 %v2080_v20, %v8617_v37  ;;  %5510 = vmatprep.mubr.msk.bf16.mxu0 %vm6219_vm0, %v8510_v61  ;;  %5610 = vmatprep.mubr.msk.bf16.mxu1 %vm6219_vm0, %v8510_v61  ;;  %v8622_v20 = vld [vmem:[#allocation33_spill] sm:$0xff] }
 0x2b6   : > { %v5296_v0 = vpop.f32.mrf.mxu0  ;;  %v5396_v62 = vpop.f32.mrf.mxu1 }
 0x2b7   : > { %v7562_v45 = vadd.f32 %v2453_v40, %v2217_v35  ;;  %v2998_v40 = vsel %vm2951_vm5, %v2993_v23, %v2997_v17  ;;  %v2999_v0 = vrot.slane %v8545_v11, 2  ;;  %v8623_v62 = vld [vmem:[#allocation34_spill] sm:$0xff] }
 0x2b8   : > { %v2083_v31 = vpop.f32.mrf.mxu0  ;;  %v2456_v21 = vpop.f32.mrf.mxu1 }
 0x2b9   : > { %v2218_v33 = vadd.f32 %v2083_v31, %v8618_v19  ;;  %v3000_v31 = vrot.slane %v8623_v62, 3  ;;  %v8629_v62 = vld [vmem:[#allocation83_spill] sm:$0xff] }
 0x2ba   : > { %v5297_v27 = vpop.f32.mrf.mxu0  ;;  %v5397_v54 = vpop.f32.mrf.mxu1 }
 0x2bb   : > { %v7568_v57 = vadd.f32 %v2456_v21, %v2218_v33  ;;  %v6010_v21 = vld [vmem:[#allocation7 + $0x38] sm:$0xff]   ;;  %v3001_v11 = vor.u32 %v3000_v31, %v2999_v0  ;;  %v8628_v0 = vld [vmem:[#allocation60_spill] sm:$0xff] }
 0x2bc   : > { %v2088_v38 = vpop.f32.mrf.mxu0  ;;  %5511 = vmatmul.mubr.bf16.gmra.mxu0 %v8620_v48  ;;  %v2461_v9 = vpop.f32.mrf.mxu1  ;;  %5611 = vmatmul.mubr.bf16.gmra.mxu1 %v2994_v51  ;;  %v8624_v51 = vld [vmem:[#allocation59_spill] sm:$0xff] }
 0x2bd   : > { %v2219_v16 = vadd.f32 %v2088_v38, %v8621_v15  ;;  %5514 = vmatprep.mubr.msk.bf16.mxu0 %vm6219_vm0, %v8510_v61  ;;  %5614 = vmatprep.mubr.msk.bf16.mxu1 %vm6219_vm0, %v8510_v61  ;;  %v8626_v15 = vld [vmem:[#allocation36_spill] sm:$0xff] }
 0x2be   : > { %v5300_v32 = vpop.f32.mrf.mxu0  ;;  %v5400_v7 = vpop.f32.mrf.mxu1  ;;  %5759 = vmatpush3.bf16.msra.mxu1 %v6010_v21 }
 0x2bf   : > { %v7576_v63 = vadd.f32 %v2461_v9, %v2219_v16  ;;  %5760 = vmatprep.subr.bf16.mxu1 %v8510_v61  ;;  %v3002_v7 = vsel %vm2951_vm5, %v2997_v17, %v3001_v11 }
 0x2c0   : > { %v2091_v43 = vpop.f32.mrf.mxu0  ;;  %v2464_v37 = vpop.f32.mrf.mxu1 }
 0x2c1   : > { %v2220_v3 = vadd.f32 %v2091_v43, %v8622_v20  ;;  %v3003_v43 = vrot.slane %v8552_v55, 2  ;;  %v8627_v20 = vld [vmem:[#allocation37_spill] sm:$0xff] }
 0x2c2   : > { %v5301_v35 = vpop.f32.mrf.mxu0  ;;  %v5401_v33 = vpop.f32.mrf.mxu1 }
 0x2c3   : > { %v7582_v19 = vadd.f32 %v2464_v37, %v2220_v3  ;;  %v3004_v3 = vrot.slane %v8627_v20, 3  ;;  %v8632_v20 = vld [vmem:[#allocation61_spill] sm:$0xff] }
 0x2c4   : > { %v2096_v27 = vpop.f32.mrf.mxu0  ;;  %5515 = vmatmul.mubr.bf16.gmra.mxu0 %v8624_v51  ;;  %v2469_v13 = vpop.f32.mrf.mxu1  ;;  %5615 = vmatmul.mubr.bf16.gmra.mxu1 %v2998_v40 }
 0x2c5   : > { %v2221_v1 = vadd.f32 %v2096_v27, %v8625_v49  ;;  %5518 = vmatprep.mubr.msk.bf16.mxu0 %vm6219_vm0, %v8510_v61  ;;  %5618 = vmatprep.mubr.msk.bf16.mxu1 %vm6219_vm0, %v8510_v61  ;;  %v3005_v55 = vor.u32 %v3004_v3, %v3003_v43  ;;  %v8630_v49 = vld [vmem:[#allocation39_spill] sm:$0xff]  ;;  %v8633_v43 = vld [vmem:[#allocation84_spill] sm:$0xff] }
 0x2c6   : > { %v5304_v54 = vpop.f32.mrf.mxu0  ;;  %v5404_v38 = vpop.f32.mrf.mxu1 }
 0x2c7   : > { %v7590_v23 = vadd.f32 %v2469_v13, %v2221_v1  ;;  %v3006_v38 = vsel %vm2951_vm5, %v3001_v11, %v3005_v55 }
 0x2c8   : > { %v2099_v48 = vpop.f32.mrf.mxu0  ;;  %v2472_v9 = vpop.f32.mrf.mxu1 }
 0x2c9   : > { %v2222_v16 = vadd.f32 %v2099_v48, %v8626_v15  ;;  %v3007_v48 = vrot.slane %v8559_v36, 2  ;;  %v8631_v15 = vld [vmem:[#allocation40_spill] sm:$0xff] }
 0x2ca   : > { %v5305_v32 = vpop.f32.mrf.mxu0  ;;  %v5405_v35 = vpop.f32.mrf.mxu1 }
 0x2cb   : > { %v7597_v37 = vadd.f32 %v2472_v9, %v2222_v16  ;;  %v3008_v16 = vrot.slane %v8631_v15, 3 }
 0x2cc   : > { %v2104_v40 = vpop.f32.mrf.mxu0  ;;  %5519 = vmatmul.mubr.bf16.gmra.mxu0 %v8628_v0  ;;  %v2477_v33 = vpop.f32.mrf.mxu1  ;;  %5619 = vmatmul.mubr.bf16.gmra.mxu1 %v3002_v7 }
 0x2cd   : > { %v2223_v31 = vadd.f32 %v2104_v40, %v8629_v62  ;;  %5522 = vmatprep.mubr.msk.bf16.mxu0 %vm6219_vm0, %v8510_v61  ;;  %5622 = vmatprep.mubr.msk.bf16.mxu1 %vm6219_vm0, %v8510_v61  ;;  %v3009_v36 = vor.u32 %v3008_v16, %v3007_v48  ;;  %v6011_v62 = vld [vmem:[#allocation7 + $0x30] sm:$0xff]  }
 0x2ce   : > { %v5308_v21 = vpop.f32.mrf.mxu0  ;;  %v5408_v27 = vpop.f32.mrf.mxu1  ;;  %5761 = vmatpush3.bf16.msra.mxu1 %v6011_v62  ;;  %v8636_v16 = vld [vmem:[#allocation62_spill] sm:$0xff] }
 0x2cf   : > { %v7605_v17 = vadd.f32 %v2477_v33, %v2223_v31  ;;  %v8634_v33 = vld [vmem:[#allocation42_spill] sm:$0xff]  ;;  %5762 = vmatprep.subr.bf16.mxu1 %v8510_v61 }
 0x2d0   : > { %v2107_v51 = vpop.f32.mrf.mxu0  ;;  %v2480_v13 = vpop.f32.mrf.mxu1 }
 0x2d1   : > { %v2224_v1 = vadd.f32 %v2107_v51, %v8630_v49  ;;  %v3010_v49 = vsel %vm2951_vm5, %v3005_v55, %v3009_v36 }
 0x2d2   : > { %v5309_v54 = vpop.f32.mrf.mxu0  ;;  %v5409_v32 = vpop.f32.mrf.mxu1 }
 0x2d3   : > { %v7611_v9 = vadd.f32 %v2480_v13, %v2224_v1  ;;  %v3011_v1 = vrot.slane %v8566_v28, 2  ;;  %v8635_v13 = vld [vmem:[#allocation43_spill] sm:$0xff]  ;;  %v8637_v32 = vld [vmem:[#allocation85_spill] sm:$0xff] }
 0x2d4   : > { %v2112_v7 = vpop.f32.mrf.mxu0  ;;  %5523 = vmatmul.mubr.bf16.gmra.mxu0 %v8632_v20  ;;  %v2485_v35 = vpop.f32.mrf.mxu1  ;;  %5623 = vmatmul.mubr.bf16.gmra.mxu1 %v3006_v38  ;;  %v3012_v54 = vrot.slane %v8635_v13, 3 }
 0x2d5   : > { %v2225_v3 = vadd.f32 %v2112_v7, %v8633_v43  ;;  %5526 = vmatprep.mubr.msk.bf16.mxu0 %vm6219_vm0, %v8510_v61  ;;  %5626 = vmatprep.mubr.msk.bf16.mxu1 %vm6219_vm0, %v8510_v61 }
 0x2d6   : > { %v5312_v40 = vpop.f32.mrf.mxu0  ;;  %v5412_v0 = vpop.f32.mrf.mxu1  ;;  %v3013_v28 = vor.u32 %v3012_v54, %v3011_v1  ;;  %v8641_v1 = vld [vmem:[#allocation86_spill] sm:$0xff] }
 0x2d7   : > { %v7619_v11 = vadd.f32 %v2485_v35, %v2225_v3  ;;  %v8638_v40 = vld [vmem:[#allocation45_spill] sm:$0xff] }
 0x2d8   : > { %v2115_v31 = vpop.f32.mrf.mxu0  ;;  %v2488_v27 = vpop.f32.mrf.mxu1 }
 0x2d9   : > { %v2226_v21 = vadd.f32 %v2115_v31, %v8634_v33  ;;  %v3014_v33 = vsel %vm2951_vm5, %v3009_v36, %v3013_v28 }
 0x2da   : > { %v5313_v51 = vpop.f32.mrf.mxu0  ;;  %v5413_v48 = vpop.f32.mrf.mxu1 }
 0x2db   : > { %v7626_v38 = vadd.f32 %v2488_v27, %v2226_v21  ;;  %v3015_v21 = vrot.slane %v8573_v44, 2  ;;  %v8639_v27 = vld [vmem:[#allocation46_spill] sm:$0xff] }
 0x2dc   : > { %v2120_v15 = vpop.f32.mrf.mxu0  ;;  %5527 = vmatmul.mubr.bf16.gmra.mxu0 %v8636_v16  ;;  %v2493_v20 = vpop.f32.mrf.mxu1  ;;  %5627 = vmatmul.mubr.bf16.gmra.mxu1 %v3010_v49  ;;  %v3016_v51 = vrot.slane %v8639_v27, 3 }
 0x2dd   : > { %v2227_v7 = vadd.f32 %v2120_v15, %v8637_v32  ;;  %5530 = vmatprep.mubr.msk.bf16.mxu0 %vm6219_vm0, %v8510_v61  ;;  %5630 = vmatprep.mubr.msk.bf16.mxu1 %vm6219_vm0, %v8510_v61  ;;  %v8640_v15 = vld [vmem:[#allocation63_spill] sm:$0xff] }
 0x2de   : > { %v5316_v55 = vpop.f32.mrf.mxu0  ;;  %v5416_v3 = vpop.f32.mrf.mxu1  ;;  %v3017_v44 = vor.u32 %v3016_v51, %v3015_v21  ;;  %v8646_v21 = vld [vmem:[#allocation87_spill] sm:$0xff] }
 0x2df   : > { %v7634_v43 = vadd.f32 %v2493_v20, %v2227_v7  ;;  %v8642_v55 = vld [vmem:[#allocation48_spill] sm:$0xff] }
 0x2e0   : > { %v2123_v35 = vpop.f32.mrf.mxu0  ;;  %v2496_v62 = vpop.f32.mrf.mxu1 }
 0x2e1   : > { %v2228_v0 = vadd.f32 %v2123_v35, %v8638_v40 }
 0x2e2   : > { %v5317_v31 = vpop.f32.mrf.mxu0  ;;  %v5417_v13 = vpop.f32.mrf.mxu1 }
 0x2e3   : > { %v7640_v49 = vadd.f32 %v2496_v62, %v2228_v0  ;;  %v3018_v0 = vsel %vm2951_vm5, %v3013_v28, %v3017_v44  ;;  %v8643_v62 = vld [vmem:[#allocation51_spill] sm:$0xff] }
 0x2e4   : > { %v2128_v48 = vpop.f32.mrf.mxu0  ;;  %5531 = vmatmul.mubr.bf16.gmra.mxu0 %v8640_v15  ;;  %v2501_v16 = vpop.f32.mrf.mxu1  ;;  %5631 = vmatmul.mubr.bf16.gmra.mxu1 %v3014_v33  ;;  %v3019_v31 = vrot.slane %v8643_v62, 2  ;;  %v8644_v33 = vld [vmem:[#allocation49_spill] sm:$0xff] }
 0x2e5   : > { %v2229_v54 = vadd.f32 %v2128_v48, %v8641_v1  ;;  %5534 = vmatprep.mubr.msk.bf16.mxu0 %vm6219_vm0, %v8510_v61  ;;  %5634 = vmatprep.mubr.msk.bf16.mxu1 %vm6219_vm0, %v8510_v61  ;;  %v3020_v27 = vrot.slane %v8644_v33, 3  ;;  %v8645_v1 = vld [vmem:[#allocation64_spill] sm:$0xff]  ;;  %v8648_v33 = vld [vmem:[#allocation54_spill] sm:$0xff] }
 0x2e6   : > { %v5320_v32 = vpop.f32.mrf.mxu0  ;;  %v5420_v7 = vpop.f32.mrf.mxu1 }
 0x2e7   : > { %v7648_v36 = vadd.f32 %v2501_v16, %v2229_v54  ;;  %v6012_v16 = vld [vmem:[#allocation7 + $0x28] sm:$0xff]   ;;  %v3021_v28 = vor.u32 %v3020_v27, %v3019_v31 }
 0x2e8   : > { %v2131_v20 = vpop.f32.mrf.mxu0  ;;  %v2504_v35 = vpop.f32.mrf.mxu1  ;;  %5763 = vmatpush3.bf16.msra.mxu1 %v6012_v16 }
 0x2e9   : > { %v2230_v3 = vadd.f32 %v2131_v20, %v8642_v55  ;;  %5764 = vmatprep.subr.bf16.mxu1 %v8510_v61  ;;  %v3022_v62 = vsel %vm2951_vm5, %v3017_v44, %v3021_v28 }
 0x2ea   : > { %v5321_v40 = vpop.f32.mrf.mxu0  ;;  %v5421_v48 = vpop.f32.mrf.mxu1 }
 0x2eb   : > { %v7654_v13 = vadd.f32 %v2504_v35, %v2230_v3  ;;  %v8647_v3 = vld [vmem:[#allocation88_spill] sm:$0xff]  ;;  %v3023_v48 = vrot.slane %v8648_v33, 2 }
 0x2ec   : > { %v2136_v15 = vpop.f32.mrf.mxu0  ;;  %5535 = vmatmul.mubr.bf16.gmra.mxu0 %v8645_v1  ;;  %v2509_v54 = vpop.f32.mrf.mxu1  ;;  %5635 = vmatmul.mubr.bf16.gmra.mxu1 %v3018_v0 }
 0x2ed   : > { %v2231_v51 = vadd.f32 %v2136_v15, %v8646_v21  ;;  %5538 = vmatprep.mubr.msk.bf16.mxu0 %vm6219_vm0, %v8510_v61  ;;  %5638 = vmatprep.mubr.msk.bf16.mxu1 %vm6219_vm0, %v8510_v61  ;;  %v8649_v15 = vld [vmem:[#allocation52_spill] sm:$0xff] }
 0x2ee   : > { %v5324_v32 = vpop.f32.mrf.mxu0  ;;  %v5424_v20 = vpop.f32.mrf.mxu1  ;;  %v3024_v1 = vrot.slane %v8649_v15, 3 }
 0x2ef   : > { %v7662_v7 = vadd.f32 %v2509_v54, %v2231_v51  ;;  %v8651_v51 = vld [vmem:[#allocation66_spill] sm:$0xff]  ;;  %v8652_v54 = vld [vmem:[#allocation65_spill] sm:$0xff] }
 0x2f0   : > { %v2139_v55 = vpop.f32.mrf.mxu0  ;;  %v2512_v40 = vpop.f32.mrf.mxu1  ;;  %v3025_v20 = vor.u32 %v3024_v1, %v3023_v48  ;;  %v320_v48 = vld [vmem:[%s6384_s7 + $0x178] sm:$0xff] }
 0x2f1   : > { %v2232_v35 = vadd.f32 %v2139_v55, %v8647_v3 }
 0x2f2   : > { %v5325_v0 = vpop.f32.mrf.mxu0  ;;  %v5425_v31 = vpop.f32.mrf.mxu1 }
 0x2f3   : > { %v7669_v21 = vadd.f32 %v2512_v40, %v2232_v35  ;;  %v8654_v40 = vld [vmem:[#allocation89_spill] sm:$0xff]  ;;  %v8655_v31 = vshrl.u32 %v6788_v42, 16  ;;  %v8659_v42 = vshrl.u32 %v7013_v41, 16 }
 0x2f4   : > { %v2144_v27 = vpop.f32.mrf.mxu0  ;;  %5539 = vmatmul.mubr.bf16.gmra.mxu0 %v8651_v51  ;;  %v2517_v32 = vpop.f32.mrf.mxu1  ;;  %5639 = vmatmul.mubr.bf16.gmra.mxu1 %v3022_v62  ;;  %v3026_v62 = vsel %vm2951_vm5, %v3021_v28, %v3025_v20  ;;  %v3028_v51 = vrot.slane %v8596_v47, 3 }
 0x2f5   : > { %8650 = vst [vmem:[#allocation55_spill] sm:$0xff] %v7669_v21  ;;  %v2233_v16 = vadd.f32 %v2144_v27, %v8652_v54  ;;  %5542 = vmatprep.mubr.msk.bf16.mxu0 %vm6219_vm0, %v8510_v61  ;;  %5642 = vmatprep.mubr.msk.bf16.mxu1 %vm6219_vm0, %v8510_v61  ;;  %v3027_v27 = vrot.slane %v8655_v31, 2  ;;  %v319_v21 = vld [vmem:[%s6384_s7 + $0x170] sm:$0xff]  ;;  %v8658_v31 = vld [vmem:[#allocation68_spill] sm:$0xff] }
 0x2f6   : > { %v5328_v44 = vpop.f32.mrf.mxu0  ;;  %v5428_v3 = vpop.f32.mrf.mxu1 }
 0x2f7   : > { %v7677_v55 = vadd.f32 %v2517_v32, %v2233_v16  ;;  %v8657_v16 = vld [vmem:[#allocation67_spill] sm:$0xff]  ;;  %v3029_v47 = vor.u32 %v3028_v51, %v3027_v27 }
 0x2f8   : > { %v2147_v35 = vpop.f32.mrf.mxu0  ;;  %v2520_v33 = vpop.f32.mrf.mxu1 }
 0x2f9   : > { %8653 = vst [vmem:[#allocation69_spill] sm:$0xff] %v7677_v55  ;;  %v2234_v0 = vadd.f32 %v2147_v35, %v8654_v40  ;;  %v367_v35 = vmax.f32 %v319_v21, 0.0  ;;  %v368_v40 = vmax.f32 %v320_v48, 0.0 }
 0x2fa   : > { %v5329_v15 = vpop.f32.mrf.mxu0  ;;  %v5429_v44 = vpop.f32.mrf.mxu1 }
 0x2fb   : > { %v7684_v54 = vadd.f32 %v2520_v33, %v2234_v0  ;;  %v7702_v27 = vpack.c.bf16 %v368_v40, %v367_v35 }
 0x2fc   : > { %v2152_v1 = vpop.f32.mrf.mxu0  ;;  %5543 = vmatmul.mubr.bf16.gmra.mxu0 %v7375_v22  ;;  %v2525_v3 = vpop.f32.mrf.mxu1  ;;  %5643 = vmatmul.mubr.bf16.gmra.mxu1 %v3026_v62  ;;  %v3030_v62 = vsel %vm2951_vm5, %v3025_v20, %v3029_v47 }
 0x2fd   : > { %8656 = vst [vmem:[#allocation70_spill] sm:$0xff] %v7684_v54  ;;  %v2235_v32 = vadd.f32 %v2152_v1, %v8657_v16  ;;  %5546 = vmatprep.mubr.msk.bf16.mxu0 %vm6219_vm0, %v8510_v61  ;;  %5646 = vmatprep.mubr.msk.bf16.mxu1 %vm6219_vm0, %v8510_v61  ;;  %v6013_v1 = vld [vmem:[#allocation7 + $0x20] sm:$0xff]   ;;  %v8660_v54 = vshll.u32 %v7013_v41, 16  ;;  %v3039_v35 = vshll.u32 %v7702_v27, 16 }
 0x2fe   : > { %v5332_v28 = vpop.f32.mrf.mxu0  ;;  %v5432_v33 = vpop.f32.mrf.mxu1  ;;  %5765 = vmatpush3.bf16.msra.mxu1 %v6013_v1 }
 0x2ff   : > { %v7694_v0 = vadd.f32 %v2525_v3, %v2235_v32  ;;  %v3031_v28 = vrot.slane %v8659_v42, 2  ;;  %v3032_v55 = vrot.slane %v8660_v54, 3  ;;  %5766 = vmatprep.subr.bf16.mxu1 %v8510_v61  ;;  %v3036_v3 = vshrl.u32 %v7702_v27, 16 }
 0x300   : > { %v2155_v15 = vpop.f32.mrf.mxu0  ;;  %v2528_v44 = vpop.f32.mrf.mxu1  ;;  %v3041_v1 = vrot.slane %v3039_v35, 3 }
 0x301   : > { %v2236_v22 = vadd.f32 %v2155_v15, %v8658_v31  ;;  %v3033_v54 = vor.u32 %v3032_v55, %v3031_v28 }
 0x302   : > { %v5333_v16 = vpop.f32.mrf.mxu0  ;;  %v5433_v51 = vpop.f32.mrf.mxu1 }
 0x303   : > { %v7704_v21 = vadd.f32 %v2528_v44, %v2236_v22  ;;  %v3034_v22 = vsel %vm2951_vm5, %v3029_v47, %v3033_v54  ;;  %v3038_v44 = vrot.slane %v3036_v3, 2 }
 0x304   : > { %v2160_v48 = vpop.f32.mrf.mxu0  ;;  %5547 = vmatmul.mubr.bf16.gmra.mxu0 %v7397_v18  ;;  %v2533_v20 = vpop.f32.mrf.mxu1  ;;  %5647 = vmatmul.mubr.bf16.gmra.mxu1 %v3030_v62 }
 0x305   : > { %v2237_v32 = vadd.f32 %v2160_v48, %v7388_v39  ;;  %5550 = vmatprep.mubr.msk.bf16.mxu0 %vm6219_vm0, %v8510_v61  ;;  %5650 = vmatprep.mubr.msk.bf16.mxu1 %vm6219_vm0, %v8510_v61  ;;  %v3042_v47 = vor.u32 %v3041_v1, %v3038_v44 }
 0x306   : > { %v5336_v42 = vpop.f32.mrf.mxu0  ;;  %v5436_v18 = vpop.f32.mrf.mxu1 }
 0x307   : > { %v7715_v40 = vadd.f32 %v2533_v20, %v2237_v32 }
 0x308   : > { %v2163_v33 = vpop.f32.mrf.mxu0  ;;  %v2536_v15 = vpop.f32.mrf.mxu1 }
 0x309   : > { %v2238_v39 = vadd.f32 %v2163_v33, %v7399_v53  ;;  %v2640_v53 = vrot.slane %v7702_v27, 2  ;;  %v3043_v33 = vsel %vm2951_vm5, %v3033_v54, %v3042_v47 }
 0x30a   : > { %v5337_v31 = vpop.f32.mrf.mxu0  ;;  %v5437_v62 = vpop.f32.mrf.mxu1 }
 0x30b   : > { %v7719_v16 = vadd.f32 %v2536_v15, %v2238_v39  ;;  %v8663_v62 = vld [vmem:[#allocation13_spill] sm:$0xff] }
 0x30c   : > { %v2168_v55 = vpop.f32.mrf.mxu0  ;;  %5551 = vmatmul.mubr.bf16.gmra.mxu0 %v7415_v6  ;;  %v2541_v51 = vpop.f32.mrf.mxu1  ;;  %5651 = vmatmul.mubr.bf16.gmra.mxu1 %v3034_v22 }
 0x30d   : > { %v2239_v28 = vadd.f32 %v2168_v55, %v7408_v4  ;;  %5554 = vmatprep.mubr.msk.bf16.mxu0 %vm6219_vm0, %v8510_v61  ;;  %5654 = vmatprep.mubr.msk.bf16.mxu1 %vm6219_vm0, %v8510_v61  ;;  %v8661_v4 = vrot.slane %v7013_v41, 2  ;;  %v3375_v55 = vrot.slane %v8663_v62, 3 }
 0x30e   : > { %v5340_v48 = vpop.f32.mrf.mxu0  ;;  %v5440_v20 = vpop.f32.mrf.mxu1 }
 0x30f   : > { %v7728_v32 = vadd.f32 %v2541_v51, %v2239_v28  ;;  %v2641_v35 = vsel %vm2266_vm4, %v8661_v4, %v2640_v53  ;;  %v6014_v53 = vld [vmem:[#allocation7 + $0x18] sm:$0xff]  }
 0x310   : > { %v2171_v42 = vpop.f32.mrf.mxu0  ;;  %v2544_v3 = vpop.f32.mrf.mxu1  ;;  %5767 = vmatpush3.bf16.msra.mxu1 %v6014_v53 }
 0x311   : > { %v2240_v6 = vadd.f32 %v2171_v42, %v7421_v60  ;;  %v8662_v60 = vld [vmem:[#allocation12_spill] sm:$0xff]  ;;  %5768 = vmatprep.subr.bf16.mxu1 %v8510_v61 }
 0x312   : > { %v5341_v18 = vpop.f32.mrf.mxu0  ;;  %v5441_v15 = vpop.f32.mrf.mxu1  ;;  %v3374_v1 = vrot.slane %v8662_v60, 3 }
 0x313   : > { %v7735_v39 = vadd.f32 %v2544_v3, %v2240_v6 }
 0x314   : > { %v2176_v31 = vpop.f32.mrf.mxu0  ;;  %5555 = vmatmul.mubr.bf16.gmra.mxu0 %v2641_v35  ;;  %v2549_v44 = vpop.f32.mrf.mxu1  ;;  %5655 = vmatmul.mubr.bf16.gmra.mxu1 %v3043_v33  ;;  %v3376_v20 = vsel %vm3373_vm6, %v3374_v1, %v3375_v55  ;;  %v8664_v33 = vld [vmem:[#allocation14_spill] sm:$0xff] }
 0x315   : > { %v2241_v22 = vadd.f32 %v2176_v31, %v7429_v58  ;;  %5674 = vmatprep.mubr.msk.bf16.mxu0 %vm6219_vm0, %v8510_v61  ;;  %5774 = vmatprep.mubr.msk.bf16.mxu1 %vm6219_vm0, %v8510_v61 }
 0x316   : > { %v5344_v28 = vpop.f32.mrf.mxu0  ;;  %v5444_v51 = vpop.f32.mrf.mxu1 }
 0x317   : > { %v7744_v54 = vadd.f32 %v2549_v44, %v2241_v22 }
 0x318   : > { %v2179_v48 = vpop.f32.mrf.mxu0  ;;  %v2552_v47 = vpop.f32.mrf.mxu1 }
 0x319   : > { %v2242_v58 = vadd.f32 %v2179_v48, %v7435_v56  ;;  %v3377_v56 = vrot.slane %v8664_v33, 3 }
 0x31a   : > { %v5345_v42 = vpop.f32.mrf.mxu0  ;;  %v5445_v3 = vpop.f32.mrf.mxu1 }
 0x31b   : > { %v7749_v6 = vadd.f32 %v2552_v47, %v2242_v58  ;;  %v3378_v62 = vsel %vm3373_vm6, %v3375_v55, %v3377_v56  ;;  %v8665_v47 = vld [vmem:[#allocation15_spill] sm:$0xff] }
 0x31c   : > { %v2184_v4 = vpop.f32.mrf.mxu0  ;;  %5675 = vmatmul.mubr.bf16.vlgmr.msra.gmra.mxu0 %v3376_v20  ;;  %v2557_v18 = vpop.f32.mrf.mxu1  ;;  %v3379_v20 = vrot.slane %v8665_v47, 3 }
 0x31d   : > { %v2243_v35 = vadd.f32 %v2184_v4, %v7443_v26  ;;  %5678 = vmatprep.mubr.msk.bf16.mxu0 %vm6219_vm0, %v8510_v61 }
 0x31e   : > { %v5348_v15 = vpop.f32.mrf.mxu0  ;;  %v5448_v22 = vpop.f32.mrf.mxu1 }
 0x31f   : > { %v7755_v31 = vadd.f32 %v2557_v18, %v2243_v35  ;;  %v3380_v18 = vsel %vm3373_vm6, %v3377_v56, %v3379_v20  ;;  %v6015_v22 = vld [vmem:[#allocation7 + $0x10] sm:$0xff]  }
 0x320   : > { %v2187_v44 = vpop.f32.mrf.mxu0  ;;  %v2560_v1 = vpop.f32.mrf.mxu1  ;;  %5769 = vmatpush3.bf16.msra.mxu1 %v6015_v22 }
 0x321   : > { %v2244_v60 = vadd.f32 %v2187_v44, %v7451_v52  ;;  %5770 = vmatprep.subr.bf16.mxu1 %v8510_v61 }
 0x322   : > { %v5349_v28 = vpop.f32.mrf.mxu0  ;;  %v5449_v26 = vpop.f32.mrf.mxu1 }
 0x323   : > { %v7759_v51 = vadd.f32 %v2560_v1, %v2244_v60 }
 0x324   : > { %v2192_v53 = vpop.f32.mrf.mxu0  ;;  %5679 = vmatmul.mubr.bf16.gmra.mxu0 %v3378_v62  ;;  %v2565_v58 = vpop.f32.mrf.mxu1  ;;  %v8666_v62 = vld [vmem:[#allocation16_spill] sm:$0xff] }
 0x325   : > { %v2245_v48 = vadd.f32 %v2192_v53, %v7459_v50  ;;  %5682 = vmatprep.mubr.msk.bf16.mxu0 %vm6219_vm0, %v8510_v61  ;;  %v3381_v28 = vrot.slane %v8666_v62, 3 }
 0x326   : > { %v5352_v42 = vpop.f32.mrf.mxu0  ;;  %v5452_v52 = vpop.f32.mrf.mxu1 }
 0x327   : > { %v7765_v3 = vadd.f32 %v2565_v58, %v2245_v48  ;;  %v3382_v47 = vsel %vm3373_vm6, %v3379_v20, %v3381_v28 }
 0x328   : > { %v2195_v4 = vpop.f32.mrf.mxu0  ;;  %v2568_v35 = vpop.f32.mrf.mxu1 }
 0x329   : > { %v2246_v55 = vadd.f32 %v2195_v4, %v7466_v29 }
 0x32a   : > { %v5353_v33 = vpop.f32.mrf.mxu0  ;;  %v5453_v50 = vpop.f32.mrf.mxu1 }
 0x32b   : > { %v7769_v15 = vadd.f32 %v2568_v35, %v2246_v55 }
 0x32c   : > { %v2200_v44 = vpop.f32.mrf.mxu0  ;;  %5683 = vmatmul.mubr.bf16.gmra.mxu0 %v3380_v18  ;;  %v2573_v1 = vpop.f32.mrf.mxu1  ;;  %v8667_v18 = vld [vmem:[#allocation17_spill] sm:$0xff] }
 0x32d   : > { %v2247_v60 = vadd.f32 %v2200_v44, %v7475_v10  ;;  %5686 = vmatprep.mubr.msk.bf16.mxu0 %vm6219_vm0, %v8510_v61  ;;  %v3383_v33 = vrot.slane %v8667_v18, 3  ;;  %v6016_v18 = vld [vmem:[#allocation7 + $0x8] sm:$0xff]  }
 0x32e   : > { %v5356_v29 = vpop.f32.mrf.mxu0  ;;  %v5456_v26 = vpop.f32.mrf.mxu1  ;;  %5771 = vmatpush3.bf16.msra.mxu1 %v6016_v18 }
 0x32f   : > { %v7776_v56 = vadd.f32 %v2573_v1, %v2247_v60  ;;  %v3384_v1 = vsel %vm3373_vm6, %v3381_v28, %v3383_v33  ;;  %5772 = vmatprep.subr.bf16.mxu1 %v8510_v61 }
 0x330   : > { %v2203_v53 = vpop.f32.mrf.mxu0  ;;  %v2576_v58 = vpop.f32.mrf.mxu1 }
 0x331   : > { %v2248_v48 = vadd.f32 %v2203_v53, %v7482_v24 }
 0x332   : > { %v5357_v10 = vpop.f32.mrf.mxu0  ;;  %v5457_v52 = vpop.f32.mrf.mxu1 }
 0x333   : > { %v7780_v42 = vadd.f32 %v2576_v58, %v2248_v48  ;;  %v8668_v58 = vld [vmem:[#allocation19_spill] sm:$0xff] }
 0x334   : > { %v2725_v4 = vpop.f32.mrf.mxu0  ;;  %5687 = vmatmul.mubr.bf16.gmra.mxu0 %v3382_v47  ;;  %v3147_v35 = vpop.f32.mrf.mxu1  ;;  %v3385_v47 = vrot.slane %v8668_v58, 3 }
 0x335   : > { %v2892_v55 = vadd.f32 %v2725_v4, %v7491_v25  ;;  %5690 = vmatprep.mubr.msk.bf16.mxu0 %vm6219_vm0, %v8510_v61 }
 0x336   : > { %v5476_v50 = vpop.f32.mrf.mxu0  ;;  %v5576_v24 = vpop.f32.mrf.mxu1 }
 0x337   : > { %v7786_v22 = vadd.f32 %v3147_v35, %v2892_v55  ;;  %v3386_v35 = vsel %vm3373_vm6, %v3383_v33, %v3385_v47 }
 0x338   : > { %v2728_v44 = vpop.f32.mrf.mxu0  ;;  %v3150_v60 = vpop.f32.mrf.mxu1 }
 0x339   : > { %v2893_v20 = vadd.f32 %v2728_v44, %v7498_v2 }
 0x33a   : > { %v5477_v62 = vpop.f32.mrf.mxu0  ;;  %v5577_v25 = vpop.f32.mrf.mxu1 }
 0x33b   : > { %v7790_v29 = vadd.f32 %v3150_v60, %v2893_v20 }
 0x33c   : > { %v2733_v26 = vpop.f32.mrf.mxu0  ;;  %5691 = vmatmul.mubr.bf16.gmra.mxu0 %v3384_v1  ;;  %v3155_v48 = vpop.f32.mrf.mxu1 }
 0x33d   : > { %v2894_v53 = vadd.f32 %v2733_v26, %v7506_v5  ;;  %5694 = vmatprep.mubr.msk.bf16.mxu0 %vm6219_vm0, %v8510_v61 }
 0x33e   : > { %v5480_v10 = vpop.f32.mrf.mxu0  ;;  %v5580_v2 = vpop.f32.mrf.mxu1 }
 0x33f   : > { %v7796_v52 = vadd.f32 %v3155_v48, %v2894_v53 }
 0x340   : > { %v2736_v4 = vpop.f32.mrf.mxu0  ;;  %v3158_v55 = vpop.f32.mrf.mxu1 }
 0x341   : > { %v2895_v28 = vadd.f32 %v2736_v4, %v7512_v46  ;;  %v8669_v46 = vld [vmem:[#allocation20_spill] sm:$0xff] }
 0x342   : > { %v5481_v50 = vpop.f32.mrf.mxu0  ;;  %v5581_v5 = vpop.f32.mrf.mxu1  ;;  %v3387_v1 = vrot.slane %v8669_v46, 3 }
 0x343   : > { %v7800_v24 = vadd.f32 %v3158_v55, %v2895_v28 }
 0x344   : > { %v2741_v44 = vpop.f32.mrf.mxu0  ;;  %5695 = vmatmul.mubr.bf16.gmra.mxu0 %v3386_v35  ;;  %v3163_v60 = vpop.f32.mrf.mxu1  ;;  %v3388_v58 = vsel %vm3373_vm6, %v3385_v47, %v3387_v1  ;;  %v8670_v35 = vld [vmem:[#allocation21_spill] sm:$0xff] }
 0x345   : > { %v2896_v20 = vadd.f32 %v2741_v44, %v7520_v59  ;;  %5698 = vmatprep.mubr.msk.bf16.mxu0 %vm6219_vm0, %v8510_v61  ;;  %v3389_v18 = vrot.slane %v8670_v35, 3 }
 0x346   : > { %v5484_v62 = vpop.f32.mrf.mxu0  ;;  %v5584_v25 = vpop.f32.mrf.mxu1 }
 0x347   : > { %v7807_v33 = vadd.f32 %v3163_v60, %v2896_v20  ;;  %v3390_v60 = vsel %vm3373_vm6, %v3387_v1, %v3389_v18 }
 0x348   : > { %v2744_v26 = vpop.f32.mrf.mxu0  ;;  %v3166_v48 = vpop.f32.mrf.mxu1 }
 0x349   : > { %v2897_v53 = vadd.f32 %v2744_v26, %v7526_v8 }
 0x34a   : > { %v5485_v10 = vpop.f32.mrf.mxu0  ;;  %v5585_v59 = vpop.f32.mrf.mxu1 }
 0x34b   : > { %v7811_v2 = vadd.f32 %v3166_v48, %v2897_v53  ;;  %v8671_v48 = vld [vmem:[#allocation23_spill] sm:$0xff]  ;;  %v6017_v10 = vld [vmem:[#allocation7] sm:$0xff]  }
 0x34c   : > { %v2749_v4 = vpop.f32.mrf.mxu0  ;;  %5699 = vmatmul.mubr.bf16.gmra.mxu0 %v3388_v58  ;;  %v3171_v55 = vpop.f32.mrf.mxu1  ;;  %v3391_v58 = vrot.slane %v8671_v48, 3  ;;  %5773 = vmatpush3.bf16.msra.mxu1 %v6017_v10 }
 0x34d   : > { %v2898_v28 = vadd.f32 %v2749_v4, %v7534_v12  ;;  %5702 = vmatprep.mubr.msk.bf16.mxu0 %vm6219_vm0, %v8510_v61 }
 0x34e   : > { %v5488_v50 = vpop.f32.mrf.mxu0  ;;  %v5588_v8 = vpop.f32.mrf.mxu1  ;;  %v3392_v35 = vsel %vm3373_vm6, %v3389_v18, %v3391_v58 }
 0x34f   : > { %v7817_v5 = vadd.f32 %v3171_v55, %v2898_v28 }
 0x350   : > { %v2752_v44 = vpop.f32.mrf.mxu0  ;;  %v3174_v20 = vpop.f32.mrf.mxu1 }
 0x351   : > { %v2899_v47 = vadd.f32 %v2752_v44, %v7540_v14 }
 0x352   : > { %v5489_v46 = vpop.f32.mrf.mxu0  ;;  %v5589_v12 = vpop.f32.mrf.mxu1 }
 0x353   : > { %v7821_v62 = vadd.f32 %v3174_v20, %v2899_v47 }
 0x354   : > { %v2757_v25 = vpop.f32.mrf.mxu0  ;;  %5703 = vmatmul.mubr.bf16.gmra.mxu0 %v3390_v60  ;;  %v3179_v53 = vpop.f32.mrf.mxu1  ;;  %v8672_v60 = vld [vmem:[#allocation26_spill] sm:$0xff] }
 0x355   : > { %v2900_v26 = vadd.f32 %v2757_v25, %v7548_v30  ;;  %5706 = vmatprep.mubr.msk.bf16.mxu0 %vm6219_vm0, %v8510_v61  ;;  %v3393_v46 = vrot.slane %v8672_v60, 3 }
 0x356   : > { %v5492_v59 = vpop.f32.mrf.mxu0  ;;  %v5592_v4 = vpop.f32.mrf.mxu1 }
 0x357   : > { %v7827_v14 = vadd.f32 %v3179_v53, %v2900_v26  ;;  %v3394_v48 = vsel %vm3373_vm6, %v3391_v58, %v3393_v46 }
 0x358   : > { %v2760_v1 = vpop.f32.mrf.mxu0  ;;  %v3182_v55 = vpop.f32.mrf.mxu1 }
 0x359   : > { %v2901_v28 = vadd.f32 %v2760_v1, %v7554_v34 }
 0x35a   : > { %v5493_v50 = vpop.f32.mrf.mxu0  ;;  %v5593_v8 = vpop.f32.mrf.mxu1 }
 0x35b   : > { %v7831_v30 = vadd.f32 %v3182_v55, %v2901_v28  ;;  %v8673_v55 = vld [vmem:[#allocation29_spill] sm:$0xff] }
 0x35c   : > { %v2765_v44 = vpop.f32.mrf.mxu0  ;;  %5707 = vmatmul.mubr.bf16.gmra.mxu0 %v3392_v35  ;;  %v3187_v20 = vpop.f32.mrf.mxu1  ;;  %v3395_v35 = vrot.slane %v8673_v55, 3 }
 0x35d   : > { %v2902_v47 = vadd.f32 %v2765_v44, %v7562_v45  ;;  %5710 = vmatprep.mubr.msk.bf16.mxu0 %vm6219_vm0, %v8510_v61 }
 0x35e   : > { %v5496_v12 = vpop.f32.mrf.mxu0  ;;  %v5596_v34 = vpop.f32.mrf.mxu1 }
 0x35f   : > { %v7837_v25 = vadd.f32 %v3187_v20, %v2902_v47  ;;  %v3396_v20 = vsel %vm3373_vm6, %v3393_v46, %v3395_v35 }
 0x360   : > { %v2768_v26 = vpop.f32.mrf.mxu0  ;;  %v3190_v53 = vpop.f32.mrf.mxu1 }
 0x361   : > { %v2903_v18 = vadd.f32 %v2768_v26, %v7568_v57 }
 0x362   : > { %v5497_v10 = vpop.f32.mrf.mxu0  ;;  %v5597_v45 = vpop.f32.mrf.mxu1 }
 0x363   : > { %v7841_v59 = vadd.f32 %v3190_v53, %v2903_v18  ;;  %v8674_v53 = vld [vmem:[#allocation32_spill] sm:$0xff] }
 0x364   : > { %v2773_v4 = vpop.f32.mrf.mxu0  ;;  %5711 = vmatmul.mubr.bf16.gmra.mxu0 %v3394_v48  ;;  %v3195_v28 = vpop.f32.mrf.mxu1  ;;  %v3397_v48 = vrot.slane %v8674_v53, 3 }
 0x365   : > { %v2904_v1 = vadd.f32 %v2773_v4, %v7576_v63  ;;  %5714 = vmatprep.mubr.msk.bf16.mxu0 %vm6219_vm0, %v8510_v61 }
 0x366   : > { %v5500_v50 = vpop.f32.mrf.mxu0  ;;  %v5600_v57 = vpop.f32.mrf.mxu1 }
 0x367   : > { %v7847_v8 = vadd.f32 %v3195_v28, %v2904_v1  ;;  %v3398_v28 = vsel %vm3373_vm6, %v3395_v35, %v3397_v48 }
 0x368   : > { %v2776_v44 = vpop.f32.mrf.mxu0  ;;  %v3198_v47 = vpop.f32.mrf.mxu1 }
 0x369   : > { %v2905_v58 = vadd.f32 %v2776_v44, %v7582_v19 }
 0x36a   : > { %v5501_v60 = vpop.f32.mrf.mxu0  ;;  %v5601_v63 = vpop.f32.mrf.mxu1 }
 0x36b   : > { %v7851_v12 = vadd.f32 %v3198_v47, %v2905_v58  ;;  %v8675_v47 = vld [vmem:[#allocation35_spill] sm:$0xff] }
 0x36c   : > { %v2781_v34 = vpop.f32.mrf.mxu0  ;;  %5715 = vmatmul.mubr.bf16.gmra.mxu0 %v3396_v20  ;;  %v3203_v18 = vpop.f32.mrf.mxu1  ;;  %v3399_v20 = vrot.slane %v8675_v47, 3 }
 0x36d   : > { %v2906_v26 = vadd.f32 %v2781_v34, %v7590_v23  ;;  %5718 = vmatprep.mubr.msk.bf16.mxu0 %vm6219_vm0, %v8510_v61 }
 0x36e   : > { %v5504_v10 = vpop.f32.mrf.mxu0  ;;  %v5604_v19 = vpop.f32.mrf.mxu1 }
 0x36f   : > { %v7857_v45 = vadd.f32 %v3203_v18, %v2906_v26  ;;  %v3400_v18 = vsel %vm3373_vm6, %v3397_v48, %v3399_v20 }
 0x370   : > { %v2784_v4 = vpop.f32.mrf.mxu0  ;;  %v3206_v1 = vpop.f32.mrf.mxu1 }
 0x371   : > { %v2907_v46 = vadd.f32 %v2784_v4, %v7597_v37 }
 0x372   : > { %v5505_v55 = vpop.f32.mrf.mxu0  ;;  %v5605_v23 = vpop.f32.mrf.mxu1 }
 0x373   : > { %v7861_v50 = vadd.f32 %v3206_v1, %v2907_v46  ;;  %v8676_v1 = vld [vmem:[#allocation38_spill] sm:$0xff] }
 0x374   : > { %v2789_v57 = vpop.f32.mrf.mxu0  ;;  %5719 = vmatmul.mubr.bf16.gmra.mxu0 %v3398_v28  ;;  %v3211_v58 = vpop.f32.mrf.mxu1  ;;  %v3401_v28 = vrot.slane %v8676_v1, 3 }
 0x375   : > { %v2908_v44 = vadd.f32 %v2789_v57, %v7605_v17  ;;  %5722 = vmatprep.mubr.msk.bf16.mxu0 %vm6219_vm0, %v8510_v61 }
 0x376   : > { %v5508_v60 = vpop.f32.mrf.mxu0  ;;  %v5608_v37 = vpop.f32.mrf.mxu1 }
 0x377   : > { %v7867_v63 = vadd.f32 %v3211_v58, %v2908_v44  ;;  %v3402_v58 = vsel %vm3373_vm6, %v3399_v20, %v3401_v28 }
 0x378   : > { %v2792_v34 = vpop.f32.mrf.mxu0  ;;  %v3214_v26 = vpop.f32.mrf.mxu1 }
 0x379   : > { %v2909_v35 = vadd.f32 %v2792_v34, %v7611_v9 }
 0x37a   : > { %v5509_v53 = vpop.f32.mrf.mxu0  ;;  %v5609_v17 = vpop.f32.mrf.mxu1 }
 0x37b   : > { %v7871_v10 = vadd.f32 %v3214_v26, %v2909_v35  ;;  %v8677_v26 = vld [vmem:[#allocation41_spill] sm:$0xff] }
 0x37c   : > { %v2797_v19 = vpop.f32.mrf.mxu0  ;;  %5723 = vmatmul.mubr.bf16.gmra.mxu0 %v3400_v18  ;;  %v3219_v46 = vpop.f32.mrf.mxu1  ;;  %v3403_v18 = vrot.slane %v8677_v26, 3 }
 0x37d   : > { %v2910_v4 = vadd.f32 %v2797_v19, %v7619_v11  ;;  %5726 = vmatprep.mubr.msk.bf16.mxu0 %vm6219_vm0, %v8510_v61 }
 0x37e   : > { %v5512_v55 = vpop.f32.mrf.mxu0  ;;  %v5612_v9 = vpop.f32.mrf.mxu1 }
 0x37f   : > { %v7877_v23 = vadd.f32 %v3219_v46, %v2910_v4  ;;  %v3404_v46 = vsel %vm3373_vm6, %v3401_v28, %v3403_v18 }
 0x380   : > { %v2800_v57 = vpop.f32.mrf.mxu0  ;;  %v3222_v44 = vpop.f32.mrf.mxu1 }
 0x381   : > { %v2911_v48 = vadd.f32 %v2800_v57, %v7626_v38 }
 0x382   : > { %v5513_v47 = vpop.f32.mrf.mxu0  ;;  %v5613_v11 = vpop.f32.mrf.mxu1 }
 0x383   : > { %v7881_v60 = vadd.f32 %v3222_v44, %v2911_v48  ;;  %v8678_v44 = vld [vmem:[#allocation44_spill] sm:$0xff] }
 0x384   : > { %v2805_v37 = vpop.f32.mrf.mxu0  ;;  %5727 = vmatmul.mubr.bf16.gmra.mxu0 %v3402_v58  ;;  %v3227_v35 = vpop.f32.mrf.mxu1  ;;  %v3405_v58 = vrot.slane %v8678_v44, 3 }
 0x385   : > { %v2912_v34 = vadd.f32 %v2805_v37, %v7634_v43  ;;  %5730 = vmatprep.mubr.msk.bf16.mxu0 %vm6219_vm0, %v8510_v61 }
 0x386   : > { %v5516_v53 = vpop.f32.mrf.mxu0  ;;  %v5616_v38 = vpop.f32.mrf.mxu1 }
 0x387   : > { %v7887_v17 = vadd.f32 %v3227_v35, %v2912_v34  ;;  %v3406_v35 = vsel %vm3373_vm6, %v3403_v18, %v3405_v58  ;;  %v8680_v18 = vld [vmem:[#allocation55_spill] sm:$0xff] }
 0x388   : > { %v2808_v19 = vpop.f32.mrf.mxu0  ;;  %v3230_v4 = vpop.f32.mrf.mxu1 }
 0x389   : > { %v2913_v20 = vadd.f32 %v2808_v19, %v7640_v49 }
 0x38a   : > { %v5517_v1 = vpop.f32.mrf.mxu0  ;;  %v5617_v43 = vpop.f32.mrf.mxu1 }
 0x38b   : > { %v7891_v55 = vadd.f32 %v3230_v4, %v2913_v20  ;;  %v8679_v4 = vld [vmem:[#allocation47_spill] sm:$0xff] }
 0x38c   : > { %v2813_v9 = vpop.f32.mrf.mxu0  ;;  %5731 = vmatmul.mubr.bf16.gmra.mxu0 %v3404_v46  ;;  %v3235_v48 = vpop.f32.mrf.mxu1  ;;  %v3407_v46 = vrot.slane %v8679_v4, 3 }
 0x38d   : > { %v2914_v57 = vadd.f32 %v2813_v9, %v7648_v36  ;;  %5734 = vmatprep.mubr.msk.bf16.mxu0 %vm6219_vm0, %v8510_v61 }
 0x38e   : > { %v5520_v47 = vpop.f32.mrf.mxu0  ;;  %v5620_v49 = vpop.f32.mrf.mxu1  ;;  %v3408_v44 = vsel %vm3373_vm6, %v3405_v58, %v3407_v46  ;;  %v8683_v58 = vld [vmem:[#allocation70_spill] sm:$0xff] }
 0x38f   : > { %v7897_v11 = vadd.f32 %v3235_v48, %v2914_v57 }
 0x390   : > { %v2816_v37 = vpop.f32.mrf.mxu0  ;;  %v3238_v34 = vpop.f32.mrf.mxu1 }
 0x391   : > { %v2915_v28 = vadd.f32 %v2816_v37, %v7654_v13 }
 0x392   : > { %v5521_v26 = vpop.f32.mrf.mxu0  ;;  %v5621_v36 = vpop.f32.mrf.mxu1 }
 0x393   : > { %v7901_v53 = vadd.f32 %v3238_v34, %v2915_v28  ;;  %v8681_v28 = vld [vmem:[#allocation69_spill] sm:$0xff]  ;;  %v8682_v26 = vld [vmem:[#allocation50_spill] sm:$0xff] }
 0x394   : > { %v2821_v38 = vpop.f32.mrf.mxu0  ;;  %5735 = vmatmul.mubr.bf16.gmra.mxu0 %v3406_v35  ;;  %v3243_v20 = vpop.f32.mrf.mxu1  ;;  %v3409_v36 = vrot.slane %v8682_v26, 3 }
 0x395   : > { %v2916_v19 = vadd.f32 %v2821_v38, %v7662_v7  ;;  %5738 = vmatprep.mubr.msk.bf16.mxu0 %vm6219_vm0, %v8510_v61 }
 0x396   : > { %v5524_v1 = vpop.f32.mrf.mxu0  ;;  %v5624_v13 = vpop.f32.mrf.mxu1 }
 0x397   : > { %v7907_v43 = vadd.f32 %v3243_v20, %v2916_v19 }
 0x398   : > { %v2824_v9 = vpop.f32.mrf.mxu0  ;;  %v3246_v48 = vpop.f32.mrf.mxu1 }
 0x399   : > { %v2917_v57 = vadd.f32 %v2824_v9, %v8680_v18  ;;  %v3410_v9 = vsel %vm3373_vm6, %v3407_v46, %v3409_v36 }
 0x39a   : > { %v5525_v47 = vpop.f32.mrf.mxu0  ;;  %v5625_v7 = vpop.f32.mrf.mxu1 }
 0x39b   : > { %v7911_v49 = vadd.f32 %v3246_v48, %v2917_v57 }
 0x39c   : > { %v2829_v37 = vpop.f32.mrf.mxu0  ;;  %5739 = vmatmul.mubr.bf16.gmra.mxu0 %v3408_v44  ;;  %v3251_v35 = vpop.f32.mrf.mxu1 }
 0x39d   : > { %v2918_v34 = vadd.f32 %v2829_v37, %v8681_v28  ;;  %5742 = vmatprep.mubr.msk.bf16.mxu0 %vm6219_vm0, %v8510_v61  ;;  %v8684_v37 = vld [vmem:[#allocation53_spill] sm:$0xff] }
 0x39e   : > { %v5528_v38 = vpop.f32.mrf.mxu0  ;;  %v5628_v20 = vpop.f32.mrf.mxu1  ;;  %v3411_v28 = vrot.slane %v8684_v37, 3 }
 0x39f   : > { %v7917_v19 = vadd.f32 %v3251_v35, %v2918_v34 }
 0x3a0   : > { %v2832_v4 = vpop.f32.mrf.mxu0  ;;  %v3254_v13 = vpop.f32.mrf.mxu1 }
 0x3a1   : > { %v2919_v1 = vadd.f32 %v2832_v4, %v8683_v58  ;;  %v3412_v4 = vsel %vm3373_vm6, %v3409_v36, %v3411_v28 }
 0x3a2   : > { %v5529_v18 = vpop.f32.mrf.mxu0  ;;  %v5629_v48 = vpop.f32.mrf.mxu1 }
 0x3a3   : > { %v7921_v57 = vadd.f32 %v3254_v13, %v2919_v1  ;;  %v3413_v48 = vrot.slane %v7013_v41, 3  ;;  %v3415_v41 = vrot.slane %v7702_v27, 3 }
 0x3a4   : > { %v2837_v44 = vpop.f32.mrf.mxu0  ;;  %5743 = vmatmul.mubr.bf16.gmra.mxu0 %v3410_v9  ;;  %v3259_v7 = vpop.f32.mrf.mxu1 }
 0x3a5   : > { %v2920_v47 = vadd.f32 %v2837_v44, %v7694_v0  ;;  %5746 = vmatprep.mubr.msk.bf16.mxu0 %vm6219_vm0, %v8510_v61 }
 0x3a6   : > { %v5532_v34 = vpop.f32.mrf.mxu0  ;;  %v5632_v26 = vpop.f32.mrf.mxu1 }
 0x3a7   : > { %v7927_v35 = vadd.f32 %v3259_v7, %v2920_v47  ;;  %v3414_v34 = vsel %vm3373_vm6, %v3411_v28, %v3413_v48 }
 0x3a8   : > { %v2840_v38 = vpop.f32.mrf.mxu0  ;;  %v3262_v20 = vpop.f32.mrf.mxu1 }
 0x3a9   : > { %v2921_v46 = vadd.f32 %v2840_v38, %v7704_v21 }
 0x3aa   : > { %v5533_v58 = vpop.f32.mrf.mxu0  ;;  %v5633_v0 = vpop.f32.mrf.mxu1 }
 0x3ab   : > { %v7931_v1 = vadd.f32 %v3262_v20, %v2921_v46 }
 0x3ac   : > { %v2845_v13 = vpop.f32.mrf.mxu0  ;;  %5747 = vmatmul.mubr.bf16.gmra.mxu0 %v3412_v4  ;;  %v3267_v18 = vpop.f32.mrf.mxu1 }
 0x3ad   : > { %v2922_v9 = vadd.f32 %v2845_v13, %v7715_v40  ;;  %5750 = vmatprep.mubr.msk.bf16.mxu0 %vm6219_vm0, %v8510_v61 }
 0x3ae   : > { %v5536_v44 = vpop.f32.mrf.mxu0  ;;  %v5636_v21 = vpop.f32.mrf.mxu1 }
 0x3af   : > { %v7937_v47 = vadd.f32 %v3267_v18, %v2922_v9  ;;  %v3416_v18 = vsel %vm3373_vm6, %v3413_v48, %v3415_v41 }
 0x3b0   : > { %v2848_v7 = vpop.f32.mrf.mxu0  ;;  %v3270_v37 = vpop.f32.mrf.mxu1 }
 0x3b1   : > { %v2923_v36 = vadd.f32 %v2848_v7, %v7719_v16 }
 0x3b2   : > { %v5537_v26 = vpop.f32.mrf.mxu0  ;;  %v5637_v40 = vpop.f32.mrf.mxu1 }
 0x3b3   : > { %v7941_v38 = vadd.f32 %v3270_v37, %v2923_v36 }
 0x3b4   : > { %v2853_v46 = vpop.f32.mrf.mxu0  ;;  %5751 = vmatmul.mubr.bf16.gmra.mxu0 %v3414_v34  ;;  %v3275_v4 = vpop.f32.mrf.mxu1 }
 0x3b5   : > { %v2924_v20 = vadd.f32 %v2853_v46, %v7728_v32  ;;  %5754 = vmatprep.mubr.msk.bf16.mxu0 %vm6219_vm0, %v8510_v61 }
 0x3b6   : > { %v5540_v58 = vpop.f32.mrf.mxu0  ;;  %v5640_v16 = vpop.f32.mrf.mxu1 }
 0x3b7   : > { %v7947_v0 = vadd.f32 %v3275_v4, %v2924_v20 }
 0x3b8   : > { %v2856_v13 = vpop.f32.mrf.mxu0  ;;  %v3278_v9 = vpop.f32.mrf.mxu1 }
 0x3b9   : > { %v2925_v28 = vadd.f32 %v2856_v13, %v7735_v39 }
 0x3ba   : > { %v5541_v44 = vpop.f32.mrf.mxu0  ;;  %v5641_v32 = vpop.f32.mrf.mxu1 }
 0x3bb   : > { %v7951_v21 = vadd.f32 %v3278_v9, %v2925_v28 }
 0x3bc   : > { %v2861_v7 = vpop.f32.mrf.mxu0  ;;  %5755 = vmatmul.mubr.bf16.gmra.mxu0 %v3416_v18  ;;  %v3283_v37 = vpop.f32.mrf.mxu1 }
 0x3bd   : > { %v2926_v36 = vadd.f32 %v2861_v7, %v7744_v54 }
 0x3be   : > { %v5544_v27 = vpop.f32.mrf.mxu0  ;;  %v5644_v26 = vpop.f32.mrf.mxu1 }
 0x3bf   : > { %v7954_v34 = vadd.f32 %v3283_v37, %v2926_v36 }
 0x3c0   : > { %v2864_v40 = vpop.f32.mrf.mxu0  ;;  %v3286_v39 = vpop.f32.mrf.mxu1 }
 0x3c1   : > { %v2927_v46 = vadd.f32 %v2864_v40, %v7749_v6 }
 0x3c2   : > { %v5545_v20 = vpop.f32.mrf.mxu0  ;;  %v5645_v48 = vpop.f32.mrf.mxu1 }
 0x3c3   : > { %v7957_v4 = vadd.f32 %v3286_v39, %v2927_v46 }
 0x3c4   : > { %v2869_v41 = vpop.f32.mrf.mxu0  ;;  %v3291_v16 = vpop.f32.mrf.mxu1 }
 0x3c5   : > { %v2928_v58 = vadd.f32 %v2869_v41, %v7755_v31 }
 0x3c6   : > { %v5548_v13 = vpop.f32.mrf.mxu0  ;;  %v5648_v54 = vpop.f32.mrf.mxu1 }
 0x3c7   : > { %v7960_v28 = vadd.f32 %v3291_v16, %v2928_v58 }
 0x3c8   : > { %v2872_v9 = vpop.f32.mrf.mxu0  ;;  %v3294_v44 = vpop.f32.mrf.mxu1 }
 0x3c9   : > { %v2929_v18 = vadd.f32 %v2872_v9, %v7759_v51 }
 0x3ca   : > { %v5549_v32 = vpop.f32.mrf.mxu0  ;;  %v5649_v6 = vpop.f32.mrf.mxu1 }
 0x3cb   : > { %v7963_v7 = vadd.f32 %v3294_v44, %v2929_v18 }
 0x3cc   : > { %v2877_v36 = vpop.f32.mrf.mxu0  ;;  %v3299_v27 = vpop.f32.mrf.mxu1 }
 0x3cd   : > { %v2930_v37 = vadd.f32 %v2877_v36, %v7765_v3 }
 0x3ce   : > { %v5552_v26 = vpop.f32.mrf.mxu0  ;;  %v5652_v31 = vpop.f32.mrf.mxu1 }
 0x3cf   : > { %v7966_v40 = vadd.f32 %v3299_v27, %v2930_v37 }
 0x3d0   : > { %v2880_v46 = vpop.f32.mrf.mxu0  ;;  %v3302_v20 = vpop.f32.mrf.mxu1 }
 0x3d1   : > { %v2931_v39 = vadd.f32 %v2880_v46, %v7769_v15 }
 0x3d2   : > { %v5553_v48 = vpop.f32.mrf.mxu0  ;;  %v5653_v51 = vpop.f32.mrf.mxu1 }
 0x3d3   : > { %v7969_v41 = vadd.f32 %v3302_v20, %v2931_v39 }
 0x3d4   : > { %v2885_v58 = vpop.f32.mrf.mxu0  ;;  %v3307_v13 = vpop.f32.mrf.mxu1 }
 0x3d5   : > { %v2932_v16 = vadd.f32 %v2885_v58, %v7776_v56  ;;  %v7981_v56 = vld [vmem:[%s8335_s2] ss:$0 sm:$0xff] }
 0x3d6   : > { %v5556_v54 = vpop.f32.mrf.mxu0  ;;  %v5656_v3 = vpop.f32.mrf.mxu1 }
 0x3d7   : > { %v7972_v9 = vadd.f32 %v3307_v13, %v2932_v16 }
 0x3d8   : > { %v2888_v18 = vpop.f32.mrf.mxu0  ;;  %v3310_v32 = vpop.f32.mrf.mxu1 }
 0x3d9   : > { %v2933_v44 = vadd.f32 %v2888_v18, %v7780_v42 }
 0x3da   : > { %v5557_v6 = vpop.f32.mrf.mxu0  ;;  %v5657_v15 = vpop.f32.mrf.mxu1 }
 0x3db   : > { %v7975_v36 = vadd.f32 %v3310_v32, %v2933_v44 }
 0x3dc   : > { %v3520_v37 = vpop.f32.mrf.mxu0 }
 0x3dd   : > { %v3687_v27 = vadd.f32 %v3520_v37, %v7786_v22 }
 0x3de   : > { %v5676_v26 = vpop.f32.mrf.mxu0 }
 0x3df   : > { %v3736_v46 = vadd.f32 %v7981_v56, %v3687_v27 }
 0x3e0   : > { %v3523_v31 = vpop.f32.mrf.mxu0 }
 0x3e1   : > { %v3688_v39 = vadd.f32 %v3523_v31, %v7790_v29  ;;  %v3778_v51 = vmax.f32 %v3736_v46, 0.0 }
 0x3e2   : > { %v5677_v42 = vpop.f32.mrf.mxu0 }
 0x3e3   : > { %v3737_v20 = vadd.f32 %v7981_v56, %v3688_v39 }
 0x3e4   : > { %v3528_v48 = vpop.f32.mrf.mxu0 }
 0x3e5   : > { %v3779_v58 = vmax.f32 %v3737_v20, 0.0  ;;  %v3689_v16 = vadd.f32 %v3528_v48, %v7796_v52 }
 0x3e6   : > { %v5680_v22 = vpop.f32.mrf.mxu0 }
 0x3e7   : > { %v3820_v13 = vpack.c.bf16 %v3779_v58, %v3778_v51  ;;  %v3738_v3 = vadd.f32 %v7981_v56, %v3689_v16 }
 0x3e8   : > { %v3531_v54 = vpop.f32.mrf.mxu0 }
 0x3e9   : > { %v3690_v18 = vadd.f32 %v3531_v54, %v7800_v24  ;;  %5775 = vmatmul.mubr.bf16.vlgmr.msra.gmra.mxu1 %v3820_v13  ;;  %v3780_v6 = vmax.f32 %v3738_v3, 0.0 }
 0x3ea   : > { %v5681_v44 = vpop.f32.mrf.mxu0  ;;  %5778 = vmatprep.mubr.msk.bf16.mxu1 %vm6219_vm0, %v8510_v61 }
 0x3eb   : > { %v3739_v29 = vadd.f32 %v7981_v56, %v3690_v18 }
 0x3ec   : > { %v3536_v32 = vpop.f32.mrf.mxu0 }
 0x3ed   : > { %v3781_v15 = vmax.f32 %v3739_v29, 0.0  ;;  %v3691_v37 = vadd.f32 %v3536_v32, %v7807_v33 }
 0x3ee   : > { %v5684_v52 = vpop.f32.mrf.mxu0 }
 0x3ef   : > { %v3821_v27 = vpack.c.bf16 %v3781_v15, %v3780_v6  ;;  %v3740_v31 = vadd.f32 %v7981_v56, %v3691_v37 }
 0x3f0   : > { %v3539_v26 = vpop.f32.mrf.mxu0 }
 0x3f1   : > { %v3692_v46 = vadd.f32 %v3539_v26, %v7811_v2  ;;  %5779 = vmatmul.mubr.bf16.gmra.mxu1 %v3821_v27  ;;  %v3782_v20 = vmax.f32 %v3740_v31, 0.0 }
 0x3f2   : > { %v5685_v24 = vpop.f32.mrf.mxu0  ;;  %5782 = vmatprep.mubr.msk.bf16.mxu1 %vm6219_vm0, %v8510_v61 }
 0x3f3   : > { %v3741_v39 = vadd.f32 %v7981_v56, %v3692_v46 }
 0x3f4   : > { %v3544_v42 = vpop.f32.mrf.mxu0 }
 0x3f5   : > { %v3783_v48 = vmax.f32 %v3741_v39, 0.0  ;;  %v3693_v51 = vadd.f32 %v3544_v42, %v7817_v5 }
 0x3f6   : > { %v5688_v33 = vpop.f32.mrf.mxu0 }
 0x3f7   : > { %v3822_v58 = vpack.c.bf16 %v3783_v48, %v3782_v20  ;;  %v3742_v22 = vadd.f32 %v7981_v56, %v3693_v51 }
 0x3f8   : > { %v3547_v16 = vpop.f32.mrf.mxu0 }
 0x3f9   : > { %v3694_v13 = vadd.f32 %v3547_v16, %v7821_v62  ;;  %5783 = vmatmul.mubr.bf16.gmra.mxu1 %v3822_v58  ;;  %v3784_v18 = vmax.f32 %v3742_v22, 0.0 }
 0x3fa   : > { %v5689_v2 = vpop.f32.mrf.mxu0  ;;  %5786 = vmatprep.mubr.msk.bf16.mxu1 %vm6219_vm0, %v8510_v61 }
 0x3fb   : > { %v3743_v54 = vadd.f32 %v7981_v56, %v3694_v13 }
 0x3fc   : > { %v3552_v3 = vpop.f32.mrf.mxu0 }
 0x3fd   : > { %v3785_v44 = vmax.f32 %v3743_v54, 0.0  ;;  %v3695_v29 = vadd.f32 %v3552_v3, %v7827_v14 }
 0x3fe   : > { %v5692_v5 = vpop.f32.mrf.mxu0 }
 0x3ff   : > { %v3823_v32 = vpack.c.bf16 %v3785_v44, %v3784_v18  ;;  %v3744_v15 = vadd.f32 %v7981_v56, %v3695_v29 }
 0x400   : > { %v3555_v6 = vpop.f32.mrf.mxu0 }
 0x401   : > { %v3696_v37 = vadd.f32 %v3555_v6, %v7831_v30  ;;  %5787 = vmatmul.mubr.bf16.gmra.mxu1 %v3823_v32  ;;  %v3786_v26 = vmax.f32 %v3744_v15, 0.0 }
 0x402   : > { %v5693_v62 = vpop.f32.mrf.mxu0  ;;  %5790 = vmatprep.mubr.msk.bf16.mxu1 %vm6219_vm0, %v8510_v61 }
 0x403   : > { %v3745_v52 = vadd.f32 %v7981_v56, %v3696_v37 }
 0x404   : > { %v3560_v27 = vpop.f32.mrf.mxu0 }
 0x405   : > { %v3787_v31 = vmax.f32 %v3745_v52, 0.0  ;;  %v3697_v46 = vadd.f32 %v3560_v27, %v7837_v25 }
 0x406   : > { %v5696_v14 = vpop.f32.mrf.mxu0 }
 0x407   : > { %v3824_v24 = vpack.c.bf16 %v3787_v31, %v3786_v26  ;;  %v3746_v42 = vadd.f32 %v7981_v56, %v3697_v46 }
 0x408   : > { %v3563_v39 = vpop.f32.mrf.mxu0 }
 0x409   : > { %v3698_v20 = vadd.f32 %v3563_v39, %v7841_v59  ;;  %5791 = vmatmul.mubr.bf16.gmra.mxu1 %v3824_v24  ;;  %v3788_v33 = vmax.f32 %v3746_v42, 0.0 }
 0x40a   : > { %v5697_v30 = vpop.f32.mrf.mxu0  ;;  %5794 = vmatprep.mubr.msk.bf16.mxu1 %vm6219_vm0, %v8510_v61 }
 0x40b   : > { %v3747_v48 = vadd.f32 %v7981_v56, %v3698_v20 }
 0x40c   : > { %v3568_v51 = vpop.f32.mrf.mxu0 }
 0x40d   : > { %v3789_v58 = vmax.f32 %v3747_v48, 0.0  ;;  %v3699_v16 = vadd.f32 %v3568_v51, %v7847_v8 }
 0x40e   : > { %v5700_v25 = vpop.f32.mrf.mxu0 }
 0x40f   : > { %v3825_v22 = vpack.c.bf16 %v3789_v58, %v3788_v33  ;;  %v3748_v2 = vadd.f32 %v7981_v56, %v3699_v16 }
 0x410   : > { %v3571_v13 = vpop.f32.mrf.mxu0 }
 0x411   : > { %v3700_v54 = vadd.f32 %v3571_v13, %v7851_v12  ;;  %5795 = vmatmul.mubr.bf16.gmra.mxu1 %v3825_v22  ;;  %v3790_v44 = vmax.f32 %v3748_v2, 0.0 }
 0x412   : > { %v5701_v59 = vpop.f32.mrf.mxu0  ;;  %5798 = vmatprep.mubr.msk.bf16.mxu1 %vm6219_vm0, %v8510_v61 }
 0x413   : > { %v3749_v3 = vadd.f32 %v7981_v56, %v3700_v54 }
 0x414   : > { %v3576_v18 = vpop.f32.mrf.mxu0 }
 0x415   : > { %v3791_v29 = vmax.f32 %v3749_v3, 0.0  ;;  %v3701_v5 = vadd.f32 %v3576_v18, %v7857_v45 }
 0x416   : > { %v5704_v8 = vpop.f32.mrf.mxu0 }
 0x417   : > { %v3826_v32 = vpack.c.bf16 %v3791_v29, %v3790_v44  ;;  %v3750_v15 = vadd.f32 %v7981_v56, %v3701_v5 }
 0x418   : > { %v3579_v6 = vpop.f32.mrf.mxu0 }
 0x419   : > { %v3702_v37 = vadd.f32 %v3579_v6, %v7861_v50  ;;  %5799 = vmatmul.mubr.bf16.gmra.mxu1 %v3826_v32  ;;  %v3792_v27 = vmax.f32 %v3750_v15, 0.0 }
 0x41a   : > { %v5705_v12 = vpop.f32.mrf.mxu0  ;;  %5802 = vmatprep.mubr.msk.bf16.mxu1 %vm6219_vm0, %v8510_v61 }
 0x41b   : > { %v3751_v62 = vadd.f32 %v7981_v56, %v3702_v37 }
 0x41c   : > { %v3584_v52 = vpop.f32.mrf.mxu0 }
 0x41d   : > { %v3793_v26 = vmax.f32 %v3751_v62, 0.0  ;;  %v3703_v31 = vadd.f32 %v3584_v52, %v7867_v63 }
 0x41e   : > { %v5708_v45 = vpop.f32.mrf.mxu0 }
 0x41f   : > { %v3827_v46 = vpack.c.bf16 %v3793_v26, %v3792_v27  ;;  %v3752_v24 = vadd.f32 %v7981_v56, %v3703_v31 }
 0x420   : > { %v3587_v14 = vpop.f32.mrf.mxu0 }
 0x421   : > { %v3704_v39 = vadd.f32 %v3587_v14, %v7871_v10  ;;  %5803 = vmatmul.mubr.bf16.gmra.mxu1 %v3827_v46  ;;  %v3794_v30 = vmax.f32 %v3752_v24, 0.0 }
 0x422   : > { %v5709_v50 = vpop.f32.mrf.mxu0  ;;  %5806 = vmatprep.mubr.msk.bf16.mxu1 %vm6219_vm0, %v8510_v61 }
 0x423   : > { %v3753_v42 = vadd.f32 %v7981_v56, %v3704_v39 }
 0x424   : > { %v3592_v20 = vpop.f32.mrf.mxu0 }
 0x425   : > { %v3795_v48 = vmax.f32 %v3753_v42, 0.0  ;;  %v3705_v51 = vadd.f32 %v3592_v20, %v7877_v23 }
 0x426   : > { %v5712_v63 = vpop.f32.mrf.mxu0 }
 0x427   : > { %v3828_v33 = vpack.c.bf16 %v3795_v48, %v3794_v30  ;;  %v3754_v16 = vadd.f32 %v7981_v56, %v3705_v51 }
 0x428   : > { %v3595_v58 = vpop.f32.mrf.mxu0 }
 0x429   : > { %v3706_v25 = vadd.f32 %v3595_v58, %v7881_v60  ;;  %5807 = vmatmul.mubr.bf16.gmra.mxu1 %v3828_v33  ;;  %v3796_v2 = vmax.f32 %v3754_v16, 0.0 }
 0x42a   : > { %v5713_v10 = vpop.f32.mrf.mxu0  ;;  %5810 = vmatprep.mubr.msk.bf16.mxu1 %vm6219_vm0, %v8510_v61 }
 0x42b   : > { %v3755_v22 = vadd.f32 %v7981_v56, %v3706_v25 }
 0x42c   : > { %v3600_v13 = vpop.f32.mrf.mxu0 }
 0x42d   : > { %v3797_v54 = vmax.f32 %v3755_v22, 0.0  ;;  %v3707_v59 = vadd.f32 %v3600_v13, %v7887_v17 }
 0x42e   : > { %v5716_v23 = vpop.f32.mrf.mxu0 }
 0x42f   : > { %v3829_v3 = vpack.c.bf16 %v3797_v54, %v3796_v2  ;;  %v3756_v44 = vadd.f32 %v7981_v56, %v3707_v59 }
 0x430   : > { %v3603_v18 = vpop.f32.mrf.mxu0 }
 0x431   : > { %v3708_v29 = vadd.f32 %v3603_v18, %v7891_v55  ;;  %5811 = vmatmul.mubr.bf16.gmra.mxu1 %v3829_v3  ;;  %v3798_v32 = vmax.f32 %v3756_v44, 0.0 }
 0x432   : > { %v5717_v60 = vpop.f32.mrf.mxu0  ;;  %5814 = vmatprep.mubr.msk.bf16.mxu1 %vm6219_vm0, %v8510_v61 }
 0x433   : > { %v3757_v5 = vadd.f32 %v7981_v56, %v3708_v29 }
 0x434   : > { %v3608_v8 = vpop.f32.mrf.mxu0 }
 0x435   : > { %v3799_v6 = vmax.f32 %v3757_v5, 0.0  ;;  %v3709_v15 = vadd.f32 %v3608_v8, %v7897_v11 }
 0x436   : > { %v5720_v17 = vpop.f32.mrf.mxu0 }
 0x437   : > { %v3830_v37 = vpack.c.bf16 %v3799_v6, %v3798_v32  ;;  %v3758_v62 = vadd.f32 %v7981_v56, %v3709_v15 }
 0x438   : > { %v3611_v12 = vpop.f32.mrf.mxu0 }
 0x439   : > { %v3710_v52 = vadd.f32 %v3611_v12, %v7901_v53  ;;  %5815 = vmatmul.mubr.bf16.gmra.mxu1 %v3830_v37  ;;  %v3800_v31 = vmax.f32 %v3758_v62, 0.0 }
 0x43a   : > { %v5721_v55 = vpop.f32.mrf.mxu0  ;;  %5818 = vmatprep.mubr.msk.bf16.mxu1 %vm6219_vm0, %v8510_v61 }
 0x43b   : > { %v3759_v27 = vadd.f32 %v7981_v56, %v3710_v52 }
 0x43c   : > { %v3616_v26 = vpop.f32.mrf.mxu0 }
 0x43d   : > { %v3801_v45 = vmax.f32 %v3759_v27, 0.0  ;;  %v3711_v46 = vadd.f32 %v3616_v26, %v7907_v43 }
 0x43e   : > { %v5724_v11 = vpop.f32.mrf.mxu0 }
 0x43f   : > { %v3831_v14 = vpack.c.bf16 %v3801_v45, %v3800_v31  ;;  %v3760_v39 = vadd.f32 %v7981_v56, %v3711_v46 }
 0x440   : > { %v3619_v24 = vpop.f32.mrf.mxu0 }
 0x441   : > { %v3712_v50 = vadd.f32 %v3619_v24, %v7911_v49  ;;  %5819 = vmatmul.mubr.bf16.gmra.mxu1 %v3831_v14  ;;  %v3802_v30 = vmax.f32 %v3760_v39, 0.0 }
 0x442   : > { %v5725_v53 = vpop.f32.mrf.mxu0  ;;  %5822 = vmatprep.mubr.msk.bf16.mxu1 %vm6219_vm0, %v8510_v61 }
 0x443   : > { %v3761_v42 = vadd.f32 %v7981_v56, %v3712_v50 }
 0x444   : > { %v3624_v20 = vpop.f32.mrf.mxu0 }
 0x445   : > { %v3803_v48 = vmax.f32 %v3761_v42, 0.0  ;;  %v3713_v51 = vadd.f32 %v3624_v20, %v7917_v19 }
 0x446   : > { %v5728_v43 = vpop.f32.mrf.mxu0 }
 0x447   : > { %v3832_v63 = vpack.c.bf16 %v3803_v48, %v3802_v30  ;;  %v3762_v58 = vadd.f32 %v7981_v56, %v3713_v51 }
 0x448   : > { %v3627_v33 = vpop.f32.mrf.mxu0 }
 0x449   : > { %v3714_v16 = vadd.f32 %v3627_v33, %v7921_v57  ;;  %5823 = vmatmul.mubr.bf16.gmra.mxu1 %v3832_v63  ;;  %v3804_v22 = vmax.f32 %v3762_v58, 0.0 }
 0x44a   : > { %v5729_v49 = vpop.f32.mrf.mxu0  ;;  %5826 = vmatprep.mubr.msk.bf16.mxu1 %vm6219_vm0, %v8510_v61 }
 0x44b   : > { %v3763_v25 = vadd.f32 %v7981_v56, %v3714_v16 }
 0x44c   : > { %v3632_v10 = vpop.f32.mrf.mxu0 }
 0x44d   : > { %v3805_v13 = vmax.f32 %v3763_v25, 0.0  ;;  %v3715_v2 = vadd.f32 %v3632_v10, %v7927_v35 }
 0x44e   : > { %v5732_v19 = vpop.f32.mrf.mxu0 }
 0x44f   : > { %v3833_v54 = vpack.c.bf16 %v3805_v13, %v3804_v22  ;;  %v3764_v23 = vadd.f32 %v7981_v56, %v3715_v2 }
 0x450   : > { %v3635_v59 = vpop.f32.mrf.mxu0 }
 0x451   : > { %v3716_v3 = vadd.f32 %v3635_v59, %v7931_v1  ;;  %5827 = vmatmul.mubr.bf16.gmra.mxu1 %v3833_v54  ;;  %v3806_v29 = vmax.f32 %v3764_v23, 0.0 }
 0x452   : > { %v5733_v57 = vpop.f32.mrf.mxu0  ;;  %5830 = vmatprep.mubr.msk.bf16.mxu1 %vm6219_vm0, %v8510_v61 }
 0x453   : > { %v3765_v18 = vadd.f32 %v7981_v56, %v3716_v3 }
 0x454   : > { %v3640_v44 = vpop.f32.mrf.mxu0 }
 0x455   : > { %v3807_v60 = vmax.f32 %v3765_v18, 0.0  ;;  %v3717_v5 = vadd.f32 %v3640_v44, %v7937_v47 }
 0x456   : > { %v5736_v35 = vpop.f32.mrf.mxu0 }
 0x457   : > { %v3834_v8 = vpack.c.bf16 %v3807_v60, %v3806_v29  ;;  %v3766_v6 = vadd.f32 %v7981_v56, %v3717_v5 }
 0x458   : > { %v3643_v32 = vpop.f32.mrf.mxu0 }
 0x459   : > { %v3718_v15 = vadd.f32 %v3643_v32, %v7941_v38  ;;  %5831 = vmatmul.mubr.bf16.gmra.mxu1 %v3834_v8  ;;  %v3808_v12 = vmax.f32 %v3766_v6, 0.0 }
 0x45a   : > { %v5737_v1 = vpop.f32.mrf.mxu0  ;;  %5834 = vmatprep.mubr.msk.bf16.mxu1 %vm6219_vm0, %v8510_v61 }
 0x45b   : > { %v3767_v17 = vadd.f32 %v7981_v56, %v3718_v15 }
 0x45c   : > { %v3648_v37 = vpop.f32.mrf.mxu0 }
 0x45d   : > { %v3809_v62 = vmax.f32 %v3767_v17, 0.0  ;;  %v3719_v52 = vadd.f32 %v3648_v37, %v7947_v0 }
 0x45e   : > { %v5740_v47 = vpop.f32.mrf.mxu0 }
 0x45f   : > { %v3835_v55 = vpack.c.bf16 %v3809_v62, %v3808_v12  ;;  %v3768_v26 = vadd.f32 %v7981_v56, %v3719_v52 }
 0x460   : > { %v3651_v27 = vpop.f32.mrf.mxu0 }
 0x461   : > { %v3720_v31 = vadd.f32 %v3651_v27, %v7951_v21  ;;  %5835 = vmatmul.mubr.bf16.gmra.mxu1 %v3835_v55  ;;  %v3810_v11 = vmax.f32 %v3768_v26, 0.0 }
 0x462   : > { %v5741_v38 = vpop.f32.mrf.mxu0  ;;  %5838 = vmatprep.mubr.msk.bf16.mxu1 %vm6219_vm0, %v8510_v61 }
 0x463   : > { %v3769_v45 = vadd.f32 %v7981_v56, %v3720_v31  ;;  %v6019_v31 = vld [vmem:[%s6384_s7 + $0x18] sm:$0xff] }
 0x464   : > { %v3656_v46 = vpop.f32.mrf.mxu0 }
 0x465   : > { %v3811_v14 = vmax.f32 %v3769_v45, 0.0  ;;  %v3721_v24 = vadd.f32 %v3656_v46, %v7954_v34 }
 0x466   : > { %v5744_v0 = vpop.f32.mrf.mxu0 }
 0x467   : > { %v3836_v39 = vpack.c.bf16 %v3811_v14, %v3810_v11  ;;  %v3770_v53 = vadd.f32 %v7981_v56, %v3721_v24  ;;  %v6020_v0 = vld [vmem:[%s6384_s7 + $0x20] sm:$0xff] }
 0x468   : > { %v3659_v50 = vpop.f32.mrf.mxu0 }
 0x469   : > { %v3722_v42 = vadd.f32 %v3659_v50, %v7957_v4  ;;  %5839 = vmatmul.mubr.bf16.gmra.mxu1 %v3836_v39  ;;  %v3812_v48 = vmax.f32 %v3770_v53, 0.0 }
 0x46a   : > { %v5745_v21 = vpop.f32.mrf.mxu0  ;;  %5842 = vmatprep.mubr.msk.bf16.mxu1 %vm6219_vm0, %v8510_v61 }
 0x46b   : > { %v3771_v20 = vadd.f32 %v7981_v56, %v3722_v42 }
 0x46c   : > { %v3664_v30 = vpop.f32.mrf.mxu0 }
 0x46d   : > { %v3813_v51 = vmax.f32 %v3771_v20, 0.0  ;;  %v3723_v43 = vadd.f32 %v3664_v30, %v7960_v28  ;;  %v6021_v30 = vld [vmem:[%s6384_s7 + $0x28] sm:$0xff] }
 0x46e   : > { %v5748_v34 = vpop.f32.mrf.mxu0 }
 0x46f   : > { %v3837_v63 = vpack.c.bf16 %v3813_v51, %v3812_v48  ;;  %v3772_v58 = vadd.f32 %v7981_v56, %v3723_v43 }
 0x470   : > { %v3667_v33 = vpop.f32.mrf.mxu0 }
 0x471   : > { %v3724_v16 = vadd.f32 %v3667_v33, %v7963_v7  ;;  %5843 = vmatmul.mubr.bf16.gmra.mxu1 %v3837_v63  ;;  %v3814_v10 = vmax.f32 %v3772_v58, 0.0  ;;  %v6022_v58 = vld [vmem:[%s6384_s7 + $0x30] sm:$0xff] }
 0x472   : > { %v5749_v4 = vpop.f32.mrf.mxu0  ;;  %5846 = vmatprep.mubr.msk.bf16.mxu1 %vm6219_vm0, %v8510_v61 }
 0x473   : > { %v3773_v49 = vadd.f32 %v7981_v56, %v3724_v16 }
 0x474   : > { %v3672_v25 = vpop.f32.mrf.mxu0 }
 0x475   : > { %v3815_v22 = vmax.f32 %v3773_v49, 0.0  ;;  %v3725_v13 = vadd.f32 %v3672_v25, %v7966_v40 }
 0x476   : > { %v5752_v28 = vpop.f32.mrf.mxu0 }
 0x477   : > { %v3838_v2 = vpack.c.bf16 %v3815_v22, %v3814_v10  ;;  %v3774_v54 = vadd.f32 %v7981_v56, %v3725_v13  ;;  %v6023_v13 = vld [vmem:[%s6384_s7 + $0x38] sm:$0xff] }
 0x478   : > { %v3675_v19 = vpop.f32.mrf.mxu0 }
 0x479   : > { %v3726_v59 = vadd.f32 %v3675_v19, %v7969_v41  ;;  %5847 = vmatmul.mubr.bf16.gmra.mxu1 %v3838_v2  ;;  %v3816_v57 = vmax.f32 %v3774_v54, 0.0 }
 0x47a   : > { %v5753_v7 = vpop.f32.mrf.mxu0  ;;  %5850 = vmatprep.mubr.msk.bf16.mxu1 %vm6219_vm0, %v8510_v61 }
 0x47b   : > { %v3775_v23 = vadd.f32 %v7981_v56, %v3726_v59 }
 0x47c   : > { %v3680_v3 = vpop.f32.mrf.mxu0 }
 0x47d   : > { %v3817_v18 = vmax.f32 %v3775_v23, 0.0  ;;  %v3727_v40 = vadd.f32 %v3680_v3, %v7972_v9  ;;  %v8109_v9 = vld [vmem:[%s8337_s4] ss:$0 sm:$0xff] }
 0x47e   : > { %v5756_v44 = vpop.f32.mrf.mxu0  ;;  %v6024_v23 = vld [vmem:[%s6384_s7 + $0x40] sm:$0xff] }
 0x47f   : > { %v3839_v29 = vpack.c.bf16 %v3817_v18, %v3816_v57  ;;  %v3776_v5 = vadd.f32 %v7981_v56, %v3727_v40 }
 0x480   : > { %v3683_v60 = vpop.f32.mrf.mxu0 }
 0x481   : > { %v3728_v41 = vadd.f32 %v3683_v60, %v7975_v36  ;;  %5851 = vmatmul.mubr.bf16.gmra.mxu1 %v3839_v29  ;;  %v3818_v32 = vmax.f32 %v3776_v5, 0.0  ;;  %v6025_v60 = vld [vmem:[%s6384_s7 + $0x48] sm:$0xff] }
 0x482   : > { %v5757_v35 = vpop.f32.mrf.mxu0  ;;  %5854 = vmatprep.mubr.msk.bf16.mxu1 %vm6219_vm0, %v8510_v61  ;;  %v6018_v61 = vld [vmem:[%s6384_s7 + $0x10] sm:$0xff] }
 0x483   : > { %v3777_v8 = vadd.f32 %v7981_v56, %v3728_v41 }
 0x485   : > { %v3819_v6 = vmax.f32 %v3777_v8, 0.0 }
 0x487   : > { %v3840_v15 = vpack.c.bf16 %v3819_v6, %v3818_v32 }
 0x489   : > { %5855 = vmatmul.mubr.bf16.gmra.mxu1 %v3840_v15  ;;  %v6026_v15 = vld [vmem:[%s6384_s7 + $0x50] sm:$0xff] }
 0x4a9   : > { %v3946_v1 = vpop.f32.mrf.mxu1 }
 0x4aa   : > { %v3947_v36 = vadd.f32 %v8109_v9, %v3946_v1 }
 0x4ab   : > { %v5776_v17 = vpop.f32.mrf.mxu1 }
 0x4ac   : > { %v4156_v37 = vrot.slane %v3947_v36, 5 }
 0x4ad   : > { %v3949_v12 = vpop.f32.mrf.mxu1 }
 0x4ae   : > { %v4282_v62 = vadd.f32 %v6018_v61, %v4156_v37  ;;  %v3950_v56 = vadd.f32 %v8109_v9, %v3949_v12 }
 0x4af   : > { %v5777_v52 = vpop.f32.mrf.mxu1 }
 0x4b0   : > { %4325 = vst [vmem:[%s8115_s12 - $0x3] sm:$0xf8] %v4282_v62  ;;  %v4157_v47 = vrot.slane %v3950_v56, 5  ;;  %v6027_v62 = vld [vmem:[%s6384_s7 + $0x58] sm:$0xff] }
 0x4b1   : > { %v3954_v55 = vpop.f32.mrf.mxu1 }
 0x4b2   : > { %v4158_v27 = vsel %vm4155_vm7, %v4156_v37, %v4157_v47  ;;  %v3955_v26 = vadd.f32 %v8109_v9, %v3954_v55 }
 0x4b3   : > { %v4283_v38 = vadd.f32 %v6019_v31, %v4158_v27  ;;  %v5780_v45 = vpop.f32.mrf.mxu1  ;;  %v6028_v31 = vld [vmem:[%s6384_s7 + $0x60] sm:$0xff] }
 0x4b4   : > { %v4159_v46 = vrot.slane %v3955_v26, 5 }
 0x4b5   : > { %4326 = vst [vmem:[%s8115_s12 + $0x5] sm:$0xff] %v4283_v38  ;;  %v3957_v11 = vpop.f32.mrf.mxu1 }
 0x4b6   : > { %v4160_v14 = vsel %vm4155_vm7, %v4157_v47, %v4159_v46  ;;  %v3958_v24 = vadd.f32 %v8109_v9, %v3957_v11 }
 0x4b7   : > { %v4284_v39 = vadd.f32 %v6020_v0, %v4160_v14  ;;  %v5781_v50 = vpop.f32.mrf.mxu1  ;;  %v6029_v0 = vld [vmem:[%s6384_s7 + $0x68] sm:$0xff] }
 0x4b8   : > { %v4161_v53 = vrot.slane %v3958_v24, 5 }
 0x4b9   : > { %4327 = vst [vmem:[%s8115_s12 + $0xd] sm:$0xff] %v4284_v39  ;;  %v3962_v42 = vpop.f32.mrf.mxu1 }
 0x4ba   : > { %v4162_v21 = vsel %vm4155_vm7, %v4159_v46, %v4161_v53  ;;  %v3963_v20 = vadd.f32 %v8109_v9, %v3962_v42 }
 0x4bb   : > { %v4285_v48 = vadd.f32 %v6021_v30, %v4162_v21  ;;  %v5784_v51 = vpop.f32.mrf.mxu1  ;;  %v6030_v30 = vld [vmem:[%s6384_s7 + $0x70] sm:$0xff] }
 0x4bc   : > { %v4163_v43 = vrot.slane %v3963_v20, 5 }
 0x4bd   : > { %4328 = vst [vmem:[%s8115_s12 + $0x15] sm:$0xff] %v4285_v48  ;;  %v3965_v34 = vpop.f32.mrf.mxu1 }
 0x4be   : > { %v4164_v63 = vsel %vm4155_vm7, %v4161_v53, %v4163_v43  ;;  %v3966_v33 = vadd.f32 %v8109_v9, %v3965_v34 }
 0x4bf   : > { %v4286_v16 = vadd.f32 %v6022_v58, %v4164_v63  ;;  %v5785_v4 = vpop.f32.mrf.mxu1  ;;  %v6031_v58 = vld [vmem:[%s6384_s7 + $0x78] sm:$0xff] }
 0x4c0   : > { %v4165_v49 = vrot.slane %v3966_v33, 5 }
 0x4c1   : > { %4329 = vst [vmem:[%s8115_s12 + $0x1d] sm:$0xff] %v4286_v16  ;;  %v3970_v25 = vpop.f32.mrf.mxu1 }
 0x4c2   : > { %v4166_v10 = vsel %vm4155_vm7, %v4163_v43, %v4165_v49  ;;  %v3971_v22 = vadd.f32 %v8109_v9, %v3970_v25 }
 0x4c3   : > { %v4287_v28 = vadd.f32 %v6023_v13, %v4166_v10  ;;  %v5788_v2 = vpop.f32.mrf.mxu1  ;;  %v6032_v13 = vld [vmem:[%s6384_s7 + $0x80] sm:$0xff] }
 0x4c4   : > { %v4167_v19 = vrot.slane %v3971_v22, 5 }
 0x4c5   : > { %4330 = vst [vmem:[%s8115_s12 + $0x25] sm:$0xff] %v4287_v28  ;;  %v3973_v54 = vpop.f32.mrf.mxu1 }
 0x4c6   : > { %v4168_v59 = vsel %vm4155_vm7, %v4165_v49, %v4167_v19  ;;  %v3974_v7 = vadd.f32 %v8109_v9, %v3973_v54 }
 0x4c7   : > { %v4288_v3 = vadd.f32 %v6024_v23, %v4168_v59  ;;  %v5789_v57 = vpop.f32.mrf.mxu1  ;;  %v6033_v23 = vld [vmem:[%s6384_s7 + $0x88] sm:$0xff] }
 0x4c8   : > { %v4169_v18 = vrot.slane %v3974_v7, 5 }
 0x4c9   : > { %4331 = vst [vmem:[%s8115_s12 + $0x2d] sm:$0xff] %v4288_v3  ;;  %v3978_v40 = vpop.f32.mrf.mxu1 }
 0x4ca   : > { %v4170_v44 = vsel %vm4155_vm7, %v4167_v19, %v4169_v18  ;;  %v3979_v29 = vadd.f32 %v8109_v9, %v3978_v40 }
 0x4cb   : > { %v4289_v5 = vadd.f32 %v6025_v60, %v4170_v44  ;;  %v5792_v41 = vpop.f32.mrf.mxu1  ;;  %v6034_v60 = vld [vmem:[%s6384_s7 + $0x90] sm:$0xff] }
 0x4cc   : > { %v4171_v35 = vrot.slane %v3979_v29, 5 }
 0x4cd   : > { %4332 = vst [vmem:[%s8115_s12 + $0x35] sm:$0xff] %v4289_v5  ;;  %v3981_v8 = vpop.f32.mrf.mxu1 }
 0x4ce   : > { %v4172_v32 = vsel %vm4155_vm7, %v4169_v18, %v4171_v35  ;;  %v3982_v6 = vadd.f32 %v8109_v9, %v3981_v8 }
 0x4cf   : > { %v4290_v1 = vadd.f32 %v6026_v15, %v4172_v32  ;;  %v5793_v36 = vpop.f32.mrf.mxu1  ;;  %v6035_v15 = vld [vmem:[%s6384_s7 + $0x98] sm:$0xff] }
 0x4d0   : > { %v4173_v17 = vrot.slane %v3982_v6, 5 }
 0x4d1   : > { %4333 = vst [vmem:[%s8115_s12 + $0x3d] sm:$0xff] %v4290_v1  ;;  %v3986_v37 = vpop.f32.mrf.mxu1 }
 0x4d2   : > { %v4174_v12 = vsel %vm4155_vm7, %v4171_v35, %v4173_v17  ;;  %v3987_v61 = vadd.f32 %v8109_v9, %v3986_v37 }
 0x4d3   : > { %v4291_v56 = vadd.f32 %v6027_v62, %v4174_v12  ;;  %v5796_v52 = vpop.f32.mrf.mxu1  ;;  %v6036_v62 = vld [vmem:[%s6384_s7 + $0xa0] sm:$0xff] }
 0x4d4   : > { %v4175_v47 = vrot.slane %v3987_v61, 5 }
 0x4d5   : > { %4334 = vst [vmem:[%s8115_s12 + $0x45] sm:$0xff] %v4291_v56  ;;  %v3989_v55 = vpop.f32.mrf.mxu1 }
 0x4d6   : > { %v4176_v27 = vsel %vm4155_vm7, %v4173_v17, %v4175_v47  ;;  %v3990_v26 = vadd.f32 %v8109_v9, %v3989_v55 }
 0x4d7   : > { %v4292_v38 = vadd.f32 %v6028_v31, %v4176_v27  ;;  %v5797_v45 = vpop.f32.mrf.mxu1  ;;  %v6037_v31 = vld [vmem:[%s6384_s7 + $0xa8] sm:$0xff] }
 0x4d8   : > { %v4177_v46 = vrot.slane %v3990_v26, 5 }
 0x4d9   : > { %4335 = vst [vmem:[%s8115_s12 + $0x4d] sm:$0xff] %v4292_v38  ;;  %v3994_v11 = vpop.f32.mrf.mxu1 }
 0x4da   : > { %v4178_v14 = vsel %vm4155_vm7, %v4175_v47, %v4177_v46  ;;  %v3995_v24 = vadd.f32 %v8109_v9, %v3994_v11 }
 0x4db   : > { %v4293_v39 = vadd.f32 %v6029_v0, %v4178_v14  ;;  %v5800_v50 = vpop.f32.mrf.mxu1  ;;  %v6038_v0 = vld [vmem:[%s6384_s7 + $0xb0] sm:$0xff] }
 0x4dc   : > { %v4179_v53 = vrot.slane %v3995_v24, 5 }
 0x4dd   : > { %4336 = vst [vmem:[%s8115_s12 + $0x55] sm:$0xff] %v4293_v39  ;;  %v3997_v42 = vpop.f32.mrf.mxu1 }
 0x4de   : > { %v4180_v21 = vsel %vm4155_vm7, %v4177_v46, %v4179_v53  ;;  %v3998_v20 = vadd.f32 %v8109_v9, %v3997_v42 }
 0x4df   : > { %v4294_v48 = vadd.f32 %v6030_v30, %v4180_v21  ;;  %v5801_v51 = vpop.f32.mrf.mxu1  ;;  %v6039_v30 = vld [vmem:[%s6384_s7 + $0xb8] sm:$0xff] }
 0x4e0   : > { %v4181_v43 = vrot.slane %v3998_v20, 5 }
 0x4e1   : > { %4337 = vst [vmem:[%s8115_s12 + $0x5d] sm:$0xff] %v4294_v48  ;;  %v4002_v34 = vpop.f32.mrf.mxu1 }
 0x4e2   : > { %v4182_v63 = vsel %vm4155_vm7, %v4179_v53, %v4181_v43  ;;  %v4003_v33 = vadd.f32 %v8109_v9, %v4002_v34 }
 0x4e3   : > { %v4295_v16 = vadd.f32 %v6031_v58, %v4182_v63  ;;  %v5804_v4 = vpop.f32.mrf.mxu1  ;;  %v6040_v58 = vld [vmem:[%s6384_s7 + $0xc0] sm:$0xff] }
 0x4e4   : > { %v4183_v49 = vrot.slane %v4003_v33, 5 }
 0x4e5   : > { %4338 = vst [vmem:[%s8115_s12 + $0x65] sm:$0xff] %v4295_v16  ;;  %v4005_v25 = vpop.f32.mrf.mxu1 }
 0x4e6   : > { %v4184_v10 = vsel %vm4155_vm7, %v4181_v43, %v4183_v49  ;;  %v4006_v22 = vadd.f32 %v8109_v9, %v4005_v25 }
 0x4e7   : > { %v4296_v28 = vadd.f32 %v6032_v13, %v4184_v10  ;;  %v5805_v2 = vpop.f32.mrf.mxu1  ;;  %v6041_v13 = vld [vmem:[%s6384_s7 + $0xc8] sm:$0xff] }
 0x4e8   : > { %v4185_v19 = vrot.slane %v4006_v22, 5 }
 0x4e9   : > { %4339 = vst [vmem:[%s8115_s12 + $0x6d] sm:$0xff] %v4296_v28  ;;  %v4010_v54 = vpop.f32.mrf.mxu1 }
 0x4ea   : > { %v4186_v59 = vsel %vm4155_vm7, %v4183_v49, %v4185_v19  ;;  %v4011_v7 = vadd.f32 %v8109_v9, %v4010_v54 }
 0x4eb   : > { %v4297_v3 = vadd.f32 %v6033_v23, %v4186_v59  ;;  %v5808_v57 = vpop.f32.mrf.mxu1  ;;  %v6042_v23 = vld [vmem:[%s6384_s7 + $0xd0] sm:$0xff] }
 0x4ec   : > { %v4187_v18 = vrot.slane %v4011_v7, 5 }
 0x4ed   : > { %4340 = vst [vmem:[%s8115_s12 + $0x75] sm:$0xff] %v4297_v3  ;;  %v4013_v40 = vpop.f32.mrf.mxu1 }
 0x4ee   : > { %v4188_v44 = vsel %vm4155_vm7, %v4185_v19, %v4187_v18  ;;  %v4014_v29 = vadd.f32 %v8109_v9, %v4013_v40 }
 0x4ef   : > { %v4298_v5 = vadd.f32 %v6034_v60, %v4188_v44  ;;  %v5809_v41 = vpop.f32.mrf.mxu1  ;;  %v6043_v60 = vld [vmem:[%s6384_s7 + $0xd8] sm:$0xff] }
 0x4f0   : > { %v4189_v35 = vrot.slane %v4014_v29, 5 }
 0x4f1   : > { %4341 = vst [vmem:[%s8115_s12 + $0x7d] sm:$0xff] %v4298_v5  ;;  %v4018_v8 = vpop.f32.mrf.mxu1 }
 0x4f2   : > { %v4190_v32 = vsel %vm4155_vm7, %v4187_v18, %v4189_v35  ;;  %v4019_v6 = vadd.f32 %v8109_v9, %v4018_v8 }
 0x4f3   : > { %v4299_v1 = vadd.f32 %v6035_v15, %v4190_v32  ;;  %v5812_v36 = vpop.f32.mrf.mxu1  ;;  %v6044_v15 = vld [vmem:[%s6384_s7 + $0xe0] sm:$0xff] }
 0x4f4   : > { %v4191_v17 = vrot.slane %v4019_v6, 5 }
 0x4f5   : > { %4342 = vst [vmem:[%s8115_s12 + $0x85] sm:$0xff] %v4299_v1  ;;  %v4021_v37 = vpop.f32.mrf.mxu1 }
 0x4f6   : > { %v4192_v12 = vsel %vm4155_vm7, %v4189_v35, %v4191_v17  ;;  %v4022_v61 = vadd.f32 %v8109_v9, %v4021_v37 }
 0x4f7   : > { %v4300_v56 = vadd.f32 %v6036_v62, %v4192_v12  ;;  %v5813_v52 = vpop.f32.mrf.mxu1  ;;  %v6045_v62 = vld [vmem:[%s6384_s7 + $0xe8] sm:$0xff] }
 0x4f8   : > { %v4193_v47 = vrot.slane %v4022_v61, 5 }
 0x4f9   : > { %4343 = vst [vmem:[%s8115_s12 + $0x8d] sm:$0xff] %v4300_v56  ;;  %v4026_v55 = vpop.f32.mrf.mxu1 }
 0x4fa   : > { %v4194_v27 = vsel %vm4155_vm7, %v4191_v17, %v4193_v47  ;;  %v4027_v26 = vadd.f32 %v8109_v9, %v4026_v55 }
 0x4fb   : > { %v4301_v38 = vadd.f32 %v6037_v31, %v4194_v27  ;;  %v5816_v45 = vpop.f32.mrf.mxu1  ;;  %v6046_v31 = vld [vmem:[%s6384_s7 + $0xf0] sm:$0xff] }
 0x4fc   : > { %v4195_v46 = vrot.slane %v4027_v26, 5 }
 0x4fd   : > { %4344 = vst [vmem:[%s8115_s12 + $0x95] sm:$0xff] %v4301_v38  ;;  %v4029_v11 = vpop.f32.mrf.mxu1 }
 0x4fe   : > { %v4196_v14 = vsel %vm4155_vm7, %v4193_v47, %v4195_v46  ;;  %v4030_v24 = vadd.f32 %v8109_v9, %v4029_v11 }
 0x4ff   : > { %v4302_v39 = vadd.f32 %v6038_v0, %v4196_v14  ;;  %v5817_v50 = vpop.f32.mrf.mxu1  ;;  %v6047_v0 = vld [vmem:[%s6384_s7 + $0xf8] sm:$0xff] }
 0x500   : > { %v4197_v53 = vrot.slane %v4030_v24, 5 }
 0x501   : > { %4345 = vst [vmem:[%s8115_s12 + $0x9d] sm:$0xff] %v4302_v39  ;;  %v4034_v42 = vpop.f32.mrf.mxu1 }
 0x502   : > { %v4198_v21 = vsel %vm4155_vm7, %v4195_v46, %v4197_v53  ;;  %v4035_v20 = vadd.f32 %v8109_v9, %v4034_v42 }
 0x503   : > { %v4303_v48 = vadd.f32 %v6039_v30, %v4198_v21  ;;  %v5820_v51 = vpop.f32.mrf.mxu1  ;;  %v6048_v30 = vld [vmem:[%s6384_s7 + $0x100] sm:$0xff] }
 0x504   : > { %v4199_v43 = vrot.slane %v4035_v20, 5 }
 0x505   : > { %4346 = vst [vmem:[%s8115_s12 + $0xa5] sm:$0xff] %v4303_v48  ;;  %v4037_v34 = vpop.f32.mrf.mxu1 }
 0x506   : > { %v4200_v63 = vsel %vm4155_vm7, %v4197_v53, %v4199_v43  ;;  %v4038_v33 = vadd.f32 %v8109_v9, %v4037_v34 }
 0x507   : > { %v4304_v16 = vadd.f32 %v6040_v58, %v4200_v63  ;;  %v5821_v4 = vpop.f32.mrf.mxu1  ;;  %v6049_v58 = vld [vmem:[%s6384_s7 + $0x108] sm:$0xff] }
 0x508   : > { %v4201_v49 = vrot.slane %v4038_v33, 5 }
 0x509   : > { %4347 = vst [vmem:[%s8115_s12 + $0xad] sm:$0xff] %v4304_v16  ;;  %v4042_v25 = vpop.f32.mrf.mxu1 }
 0x50a   : > { %v4202_v10 = vsel %vm4155_vm7, %v4199_v43, %v4201_v49  ;;  %v4043_v22 = vadd.f32 %v8109_v9, %v4042_v25 }
 0x50b   : > { %v4305_v28 = vadd.f32 %v6041_v13, %v4202_v10  ;;  %v5824_v2 = vpop.f32.mrf.mxu1  ;;  %v6050_v13 = vld [vmem:[%s6384_s7 + $0x110] sm:$0xff] }
 0x50c   : > { %v4203_v19 = vrot.slane %v4043_v22, 5 }
 0x50d   : > { %4348 = vst [vmem:[%s8115_s12 + $0xb5] sm:$0xff] %v4305_v28  ;;  %v4045_v54 = vpop.f32.mrf.mxu1 }
 0x50e   : > { %v4204_v59 = vsel %vm4155_vm7, %v4201_v49, %v4203_v19  ;;  %v4046_v7 = vadd.f32 %v8109_v9, %v4045_v54 }
 0x50f   : > { %v4306_v3 = vadd.f32 %v6042_v23, %v4204_v59  ;;  %v5825_v57 = vpop.f32.mrf.mxu1  ;;  %v6051_v23 = vld [vmem:[%s6384_s7 + $0x118] sm:$0xff] }
 0x510   : > { %v4205_v18 = vrot.slane %v4046_v7, 5 }
 0x511   : > { %4349 = vst [vmem:[%s8115_s12 + $0xbd] sm:$0xff] %v4306_v3  ;;  %v4050_v40 = vpop.f32.mrf.mxu1 }
 0x512   : > { %v4206_v44 = vsel %vm4155_vm7, %v4203_v19, %v4205_v18  ;;  %v4051_v29 = vadd.f32 %v8109_v9, %v4050_v40 }
 0x513   : > { %v4307_v5 = vadd.f32 %v6043_v60, %v4206_v44  ;;  %v5828_v41 = vpop.f32.mrf.mxu1  ;;  %v6052_v60 = vld [vmem:[%s6384_s7 + $0x120] sm:$0xff] }
 0x514   : > { %v4207_v35 = vrot.slane %v4051_v29, 5 }
 0x515   : > { %4350 = vst [vmem:[%s8115_s12 + $0xc5] sm:$0xff] %v4307_v5  ;;  %v4053_v8 = vpop.f32.mrf.mxu1 }
 0x516   : > { %v4208_v32 = vsel %vm4155_vm7, %v4205_v18, %v4207_v35  ;;  %v4054_v6 = vadd.f32 %v8109_v9, %v4053_v8 }
 0x517   : > { %v4308_v1 = vadd.f32 %v6044_v15, %v4208_v32  ;;  %v5829_v36 = vpop.f32.mrf.mxu1  ;;  %v6053_v15 = vld [vmem:[%s6384_s7 + $0x128] sm:$0xff] }
 0x518   : > { %v4209_v17 = vrot.slane %v4054_v6, 5 }
 0x519   : > { %4351 = vst [vmem:[%s8115_s12 + $0xcd] sm:$0xff] %v4308_v1  ;;  %v4058_v37 = vpop.f32.mrf.mxu1 }
 0x51a   : > { %v4210_v12 = vsel %vm4155_vm7, %v4207_v35, %v4209_v17  ;;  %v4059_v61 = vadd.f32 %v8109_v9, %v4058_v37 }
 0x51b   : > { %v4309_v56 = vadd.f32 %v6045_v62, %v4210_v12  ;;  %v5832_v52 = vpop.f32.mrf.mxu1  ;;  %v6054_v62 = vld [vmem:[%s6384_s7 + $0x130] sm:$0xff] }
 0x51c   : > { %v4211_v47 = vrot.slane %v4059_v61, 5 }
 0x51d   : > { %4352 = vst [vmem:[%s8115_s12 + $0xd5] sm:$0xff] %v4309_v56  ;;  %v4061_v55 = vpop.f32.mrf.mxu1 }
 0x51e   : > { %v4212_v27 = vsel %vm4155_vm7, %v4209_v17, %v4211_v47  ;;  %v4062_v26 = vadd.f32 %v8109_v9, %v4061_v55 }
 0x51f   : > { %v4310_v38 = vadd.f32 %v6046_v31, %v4212_v27  ;;  %v5833_v45 = vpop.f32.mrf.mxu1  ;;  %v6055_v31 = vld [vmem:[%s6384_s7 + $0x138] sm:$0xff] }
 0x520   : > { %v4213_v46 = vrot.slane %v4062_v26, 5 }
 0x521   : > { %4353 = vst [vmem:[%s8115_s12 + $0xdd] sm:$0xff] %v4310_v38  ;;  %v4066_v11 = vpop.f32.mrf.mxu1 }
 0x522   : > { %v4214_v14 = vsel %vm4155_vm7, %v4211_v47, %v4213_v46  ;;  %v4067_v24 = vadd.f32 %v8109_v9, %v4066_v11 }
 0x523   : > { %v4311_v39 = vadd.f32 %v6047_v0, %v4214_v14  ;;  %v5836_v50 = vpop.f32.mrf.mxu1  ;;  %v6056_v0 = vld [vmem:[%s6384_s7 + $0x140] sm:$0xff] }
 0x524   : > { %v4215_v53 = vrot.slane %v4067_v24, 5 }
 0x525   : > { %4354 = vst [vmem:[%s8115_s12 + $0xe5] sm:$0xff] %v4311_v39  ;;  %v4069_v42 = vpop.f32.mrf.mxu1 }
 0x526   : > { %v4216_v21 = vsel %vm4155_vm7, %v4213_v46, %v4215_v53  ;;  %v4070_v20 = vadd.f32 %v8109_v9, %v4069_v42 }
 0x527   : > { %v4312_v48 = vadd.f32 %v6048_v30, %v4216_v21  ;;  %v5837_v51 = vpop.f32.mrf.mxu1  ;;  %v6057_v30 = vld [vmem:[%s6384_s7 + $0x148] sm:$0xff] }
 0x528   : > { %v4217_v43 = vrot.slane %v4070_v20, 5 }
 0x529   : > { %4355 = vst [vmem:[%s8115_s12 + $0xed] sm:$0xff] %v4312_v48  ;;  %v4074_v34 = vpop.f32.mrf.mxu1 }
 0x52a   : > { %v4218_v63 = vsel %vm4155_vm7, %v4215_v53, %v4217_v43  ;;  %v4075_v33 = vadd.f32 %v8109_v9, %v4074_v34 }
 0x52b   : > { %v4313_v16 = vadd.f32 %v6049_v58, %v4218_v63  ;;  %v5840_v4 = vpop.f32.mrf.mxu1  ;;  %v6058_v58 = vld [vmem:[%s6384_s7 + $0x150] sm:$0xff] }
 0x52c   : > { %v4219_v49 = vrot.slane %v4075_v33, 5 }
 0x52d   : > { %4356 = vst [vmem:[%s8115_s12 + $0xf5] sm:$0xff] %v4313_v16  ;;  %v4077_v25 = vpop.f32.mrf.mxu1 }
 0x52e   : > { %v4220_v10 = vsel %vm4155_vm7, %v4217_v43, %v4219_v49  ;;  %v4078_v22 = vadd.f32 %v8109_v9, %v4077_v25 }
 0x52f   : > { %v4314_v28 = vadd.f32 %v6050_v13, %v4220_v10  ;;  %v5841_v2 = vpop.f32.mrf.mxu1  ;;  %v6059_v10 = vld [vmem:[%s6384_s7 + $0x160] sm:$0xff] }
 0x530   : > { %v4221_v19 = vrot.slane %v4078_v22, 5 }
 0x531   : > { %4357 = vst [vmem:[%s8115_s12 + $0xfd] sm:$0xff] %v4314_v28  ;;  %v4082_v54 = vpop.f32.mrf.mxu1 }
 0x532   : > { %v4222_v59 = vsel %vm4155_vm7, %v4219_v49, %v4221_v19  ;;  %v4083_v7 = vadd.f32 %v8109_v9, %v4082_v54 }
 0x533   : > { %v4315_v3 = vadd.f32 %v6051_v23, %v4222_v59  ;;  %v5844_v57 = vpop.f32.mrf.mxu1 }
 0x534   : > { %v4223_v18 = vrot.slane %v4083_v7, 5 }
 0x535   : > { %4358 = vst [vmem:[%s8115_s12 + $0x105] sm:$0xff] %v4315_v3  ;;  %v4085_v40 = vpop.f32.mrf.mxu1 }
 0x536   : > { %v4224_v44 = vsel %vm4155_vm7, %v4221_v19, %v4223_v18  ;;  %v4086_v29 = vadd.f32 %v8109_v9, %v4085_v40 }
 0x537   : > { %v4316_v5 = vadd.f32 %v6052_v60, %v4224_v44  ;;  %v5845_v41 = vpop.f32.mrf.mxu1 }
 0x538   : > { %v4225_v35 = vrot.slane %v4086_v29, 5 }
 0x539   : > { %4359 = vst [vmem:[%s8115_s12 + $0x10d] sm:$0xff] %v4316_v5  ;;  %v4090_v8 = vpop.f32.mrf.mxu1 }
 0x53a   : > { %v4226_v32 = vsel %vm4155_vm7, %v4223_v18, %v4225_v35  ;;  %v4091_v6 = vadd.f32 %v8109_v9, %v4090_v8 }
 0x53b   : > { %v4317_v1 = vadd.f32 %v6053_v15, %v4226_v32  ;;  %v5848_v36 = vpop.f32.mrf.mxu1 }
 0x53c   : > { %v4227_v17 = vrot.slane %v4091_v6, 5 }
 0x53d   : > { %4360 = vst [vmem:[%s8115_s12 + $0x115] sm:$0xff] %v4317_v1  ;;  %v4093_v37 = vpop.f32.mrf.mxu1 }
 0x53e   : > { %v4228_v12 = vsel %vm4155_vm7, %v4225_v35, %v4227_v17  ;;  %v4094_v61 = vadd.f32 %v8109_v9, %v4093_v37 }
 0x53f   : > { %v4318_v56 = vadd.f32 %v6054_v62, %v4228_v12  ;;  %v5849_v52 = vpop.f32.mrf.mxu1 }
 0x540   : > { %v4229_v47 = vrot.slane %v4094_v61, 5 }
 0x541   : > { %4361 = vst [vmem:[%s8115_s12 + $0x11d] sm:$0xff] %v4318_v56  ;;  %v4098_v55 = vpop.f32.mrf.mxu1 }
 0x542   : > { %v4230_v27 = vsel %vm4155_vm7, %v4227_v17, %v4229_v47  ;;  %v4099_v26 = vadd.f32 %v8109_v9, %v4098_v55 }
 0x543   : > { %v4319_v38 = vadd.f32 %v6055_v31, %v4230_v27  ;;  %v5852_v45 = vpop.f32.mrf.mxu1 }
 0x544   : > { %v4231_v46 = vrot.slane %v4099_v26, 5 }
 0x545   : > { %4362 = vst [vmem:[%s8115_s12 + $0x125] sm:$0xff] %v4319_v38  ;;  %v4101_v11 = vpop.f32.mrf.mxu1 }
 0x546   : > { %v4232_v14 = vsel %vm4155_vm7, %v4229_v47, %v4231_v46  ;;  %v4102_v24 = vadd.f32 %v8109_v9, %v4101_v11 }
 0x547   : > { %v4320_v39 = vadd.f32 %v6056_v0, %v4232_v14  ;;  %v5853_v50 = vpop.f32.mrf.mxu1 }
 0x548   : > { %v4233_v53 = vrot.slane %v4102_v24, 5 }
 0x549   : > { %4363 = vst [vmem:[%s8115_s12 + $0x12d] sm:$0xff] %v4320_v39  ;;  %v4106_v42 = vpop.f32.mrf.mxu1 }
 0x54a   : > { %v4234_v21 = vsel %vm4155_vm7, %v4231_v46, %v4233_v53  ;;  %v4107_v20 = vadd.f32 %v8109_v9, %v4106_v42 }
 0x54b   : > { %v4321_v48 = vadd.f32 %v6057_v30, %v4234_v21  ;;  %v5856_v51 = vpop.f32.mrf.mxu1 }
 0x54c   : > { %v4235_v43 = vrot.slane %v4107_v20, 5 }
 0x54d   : > { %4364 = vst [vmem:[%s8115_s12 + $0x135] sm:$0xff] %v4321_v48  ;;  %v4109_v34 = vpop.f32.mrf.mxu1 }
 0x54e   : > { %v4236_v63 = vsel %vm4155_vm7, %v4233_v53, %v4235_v43  ;;  %v4110_v33 = vadd.f32 %v8109_v9, %v4109_v34  ;;  %v6060_v9 = vld [vmem:[%s6384_s7 + $0x158] sm:$0xff] }
 0x54f   : > { %v4322_v16 = vadd.f32 %v6058_v58, %v4236_v63  ;;  %v5857_v4 = vpop.f32.mrf.mxu1 }
 0x550   : > { %v4237_v49 = vrot.slane %v4110_v33, 5 }
 0x551   : > { %4365 = vst [vmem:[%s8115_s12 + $0x13d] sm:$0xff] %v4322_v16 }
 0x552   : > { %v4238_v25 = vsel %vm4155_vm7, %v4235_v43, %v4237_v49  ;;  %v4324_v22 = vadd.f32 %v6059_v10, %v4237_v49 }
 0x553   : > { %v4323_v13 = vadd.f32 %v6060_v9, %v4238_v25 }
 0x554   : > { %4367 = vst [vmem:[%s8115_s12 + $0x14d] sm:$0x7] %v4324_v22 }
 0x555   : > { %4366 = vst [vmem:[%s8115_s12 + $0x145] sm:$0xff] %v4323_v13 }
 0x556   : > { %6154 = shalt.err (!%p6151_p9)
}
 0x557   : > { %s6155_s7 = scalar_lea.hbm %s8285_s13, 5376  ;;  %s6159_s9 = scalar_lea.hbm %s8338_s5, 10752 }
 0x558   : > { %p6156_p13 = scmp.ne.s32.totalorder %s8285_s13, %s6155_s7  ;;  %p6160_p4 = scmp.lt.s32.totalorder %s8285_s13, %s8338_s5 }
 0x559   : > { %p6161_p8 = scmp.lt.s32.totalorder %s6159_s9, %s6155_s7 }
 0x55a   : > { %p6157_p5 = pnand %p6156_p13, %p8685_p10 }
 0x55b   : > { %p6162_p3 = por %p6161_p8, %p6160_p4 }
 0x55c   : > { %p6158_p0 = pneg %p6157_p5 }
 0x55e   : > { %p6163_p11 = pnand %p6162_p3, %p6158_p0 }
 0x560   : > { %6166 = shalt.err (!%p6163_p11)
}
 0x561   : > { %s6221_s28 = smov 128   ;;  %s6222_s8 = smov 8  }
 0x562   : > { %5873 = dma.vmem_to_hbm [thread:$0]  (%p8685_p10), %s8287_s29, 5376, %s8285_s13, %s4369_s22, %s6221_s28, %s6221_s28, %s6222_s8  }
 0x563 PF: > { %s4397_s10 = sand.u32 1, %s6197_s18   ;;  %p8686_p1 = scmp.ne.s32.totalorder %s8439_s25, 0 }
 0x564   : > { %p8687_p2 = scmp.ge.s32.totalorder %s6209_s21, 2  ;;  %s4398_s14 = scalar_lea.sflag [#allocation4], %s4397_s10 }
 0x566   : > { %p5887_p6 = pnand %p8687_p2, %p8686_p1 }
 0x568   : > { %p5888_p12 = pneg %p5887_p6 }
 0x56a   : > { %6192 = dma.done.wait (%p5888_p12), %s4398_s14, 5376  }
 0x56b   : > { %6194 = vsyncadd (%p5888_p12), %s4398_s14, 4294961920  ;;  %p19_p7 = scmp.ge.s32.totalorder %s6325_s15, 4   ;;  %s8688_s18 = smov %s6201_s19 }
 0x56c   : > { %s8689_s19 = smov %s6205_s20  ;;  %s8690_s20 = smov %s6341_s27 }
 0x56d   : > { %s8691_s21 = smov %s6325_s15  ;;  %21 = sbr.rel (!%p19_p7) target bundleno = 6 (0x6), region = 101 }
 0x572   :  { %4403 = vsyncpa [#allocation3], 1 }
 0x573   :  { %4405 = vsyncpa [#allocation3 + $0x1], 1 }
 0x574   :  { %4406 = vsyncpa [#allocation6], 1 }
 0x575   :  { %4407 = vsyncpa [#allocation4], 1 }
 0x576   :  { %4409 = vsyncpa [#allocation4 + $0x1], 1 }

</bundles_post_ra>
